<compile_context>
chip_gen: v7x
topology: tpu7x:2x2x1
jax: 0.10.0
libtpu: 0.0.40
codegen_flags: <defaults>
</compile_context>

<pallas_src>
import jax
import jax.numpy as jnp
from jax.experimental import pallas as pl
from jax.experimental.pallas import tpu as pltpu

IN_FEATURES = 39
OUT_FEATURES = 1
LANES = 128  # rows packed into the lane dimension of the output slab


def _linear_kernel(x_ref, w_ref, b_ref, o_ref):
    # x_ref: [TB, 128, IN]  (VMEM)   w_ref: [1, 1, IN] (VMEM, resident)
    # b_ref: [1]            (SMEM)   o_ref: [TB, 128]  (VMEM, lane-dense)
    x = x_ref[...].astype(jnp.float32)
    w = w_ref[...].astype(jnp.float32)          # broadcasts over (TB, 128, IN)
    prod = x * w                                # VPU
    y = jnp.sum(prod, axis=-1)                  # XLU lane reduce -> (TB, 128)
    o_ref[...] = (y + b_ref[0]).astype(o_ref.dtype)


def baseline_forward(x, w, b, *, tb=16):
    """y = x @ w + b, implemented as a Pallas TPU kernel.

    x: [B, IN_FEATURES] float32
    w: [IN_FEATURES, OUT_FEATURES] float32
    b: [OUT_FEATURES] float32
    returns: [B, OUT_FEATURES] float32

    tb: number of 128-row groups per grid step (tb*128 rows per block).
    """
    B = x.shape[0]
    dtype = x.dtype

    # Pad batch to a multiple of tb*128 rows so blocks tile exactly.
    rows_per_block = tb * LANES
    num_blocks = pl.cdiv(B, rows_per_block)
    g_pad = num_blocks * tb          # number of 128-row groups after padding
    b_pad = g_pad * LANES            # padded batch size
    if b_pad != B:
        x = jnp.pad(x, ((0, b_pad - B), (0, 0)))

    # Pure-metadata reshapes: x stays contiguous row-major.
    x3 = x.reshape(g_pad, LANES, IN_FEATURES)
    w3 = w.reshape(1, OUT_FEATURES, IN_FEATURES)    # (1, 1, 39)
    b1 = b.reshape(OUT_FEATURES)                    # (1,) scalar -> SMEM

    out = pl.pallas_call(
        _linear_kernel,
        out_shape=jax.ShapeDtypeStruct((g_pad, LANES), dtype),
        grid=(num_blocks,),
        in_specs=[
            # Tiled x blocks: (tb, 128, 39); last dim equals full array dim.
            pl.BlockSpec((tb, LANES, IN_FEATURES), lambda i: (i, 0, 0)),
            # Weight: single resident VMEM block, constant across the grid.
            pl.BlockSpec((1, OUT_FEATURES, IN_FEATURES), lambda i: (0, 0, 0)),
            # Bias: scalar in SMEM, no tiled DMA / double-buffer bookkeeping.
            pl.BlockSpec(memory_space=pltpu.MemorySpace.SMEM),
        ],
        # Lane-dense output slab: last dim is 128 -> unmasked vector stores.
        out_specs=pl.BlockSpec((tb, LANES), lambda i: (i, 0)),
        compiler_params=pltpu.CompilerParams(
            dimension_semantics=("parallel",),
            vmem_limit_bytes=64 * 1024 * 1024,
        ),
    )(x3, w3, b1)

    # Back to the PyTorch layout [B, 1]; drop padded rows.
    return out.reshape(b_pad, OUT_FEATURES)[:B]


def reference_forward(x, w, b):
    return x @ w + b[None, :]


if __name__ == "__main__":
    key = jax.random.PRNGKey(0)
    kx, kw, kb = jax.random.split(key, 3)

    # Small batch consistent with the module: Linear(39 -> 1).
    B = 8
    x = jax.random.normal(kx, (B, IN_FEATURES), dtype=jnp.float32)

    # Deterministic parameter init (PyTorch-style uniform bound 1/sqrt(fan_in)).
    bound = 1.0 / jnp.sqrt(float(IN_FEATURES))
    w = jax.random.uniform(
        kw, (IN_FEATURES, OUT_FEATURES), minval=-bound, maxval=bound,
        dtype=jnp.float32)
    b = jax.random.uniform(
        kb, (OUT_FEATURES,), minval=-bound, maxval=bound, dtype=jnp.float32)

    out = baseline_forward(x, w, b)
    out = jax.block_until_ready(out)

    ref = reference_forward(x, w, b)
    assert out.shape == (B, OUT_FEATURES)
    assert jnp.allclose(out, ref, atol=1e-5, rtol=1e-5)

    print("KERNEL_OK")
</pallas_src>

<mosaic_0001>
module attributes {stable_mosaic.version = 11 : i64} {
  func.func @_linear_kernel(%arg0: i32, %arg1: memref<16x128x39xf32, #tpu.memory_space<vmem>>, %arg2: memref<1x1x39xf32, #tpu.memory_space<vmem>>, %arg3: memref<1xf32, #tpu.memory_space<smem>>, %arg4: memref<16x128xf32, #tpu.memory_space<vmem>>) attributes {dimension_semantics = [#tpu.dimension_semantics<parallel>], iteration_bounds = array<i64: 1>, scalar_prefetch = 0 : i64, scratch_operands = 0 : i64, tpu.core_type = #tpu.core_type<tc>, window_params = [{transform_indices = @transform_0, window_bounds = array<i64: 16, 128, 39>}, {pipeline_mode = #tpu.pipeline_mode<synchronous>, transform_indices = @transform_1, window_bounds = array<i64: 1, 1, 39>}, {transform_indices = @transform_2, window_bounds = array<i64: 1>}, {transform_indices = @transform_3, window_bounds = array<i64: 16, 128>}]} {
    %c0 = arith.constant 0 : index
    %c0_0 = arith.constant 0 : index
    %c0_1 = arith.constant 0 : index
    %0 = vector.load %arg1[%c0, %c0_0, %c0_1] : memref<16x128x39xf32, #tpu.memory_space<vmem>>, vector<16x128x39xf32>
    %c0_2 = arith.constant 0 : index
    %c0_3 = arith.constant 0 : index
    %c0_4 = arith.constant 0 : index
    %1 = vector.load %arg2[%c0_2, %c0_3, %c0_4] : memref<1x1x39xf32, #tpu.memory_space<vmem>>, vector<1x1x39xf32>
    %2 = vector.broadcast %1 : vector<1x1x39xf32> to vector<16x128x39xf32>
    %3 = arith.mulf %0, %2 : vector<16x128x39xf32>
    %cst = arith.constant dense<0.000000e+00> : vector<16x128xf32>
    %4 = vector.multi_reduction <add>, %3, %cst [2] : vector<16x128x39xf32> to vector<16x128xf32>
    %c0_5 = arith.constant 0 : index
    %5 = memref.load %arg3[%c0_5] : memref<1xf32, #tpu.memory_space<smem>>
    %6 = vector.broadcast %5 : f32 to vector<16x128xf32>
    %7 = arith.addf %4, %6 : vector<16x128xf32>
    %c0_6 = arith.constant 0 : index
    %c0_7 = arith.constant 0 : index
    %8 = vector.load %arg4[%c0_6, %c0_7] : memref<16x128xf32, #tpu.memory_space<vmem>>, vector<16x128xf32>
    tpu.vector_store %arg4[%c0_6, %c0_7], %7 {strides = array<i32>} : memref<16x128xf32, #tpu.memory_space<vmem>>, vector<16x128xf32>,
    return
  }
  func.func @transform_0(%arg0: i32) -> (i32, i32, i32) {
    %c0_i32 = arith.constant 0 : i32
    %c0_i32_0 = arith.constant 0 : i32
    %c0_i32_1 = arith.constant 0 : i32
    return %arg0, %c0_i32, %c0_i32_0 : i32, i32, i32
  }
  func.func @transform_1(%arg0: i32) -> (i32, i32, i32) {
    %c0_i32 = arith.constant 0 : i32
    %c0_i32_0 = arith.constant 0 : i32
    %c0_i32_1 = arith.constant 0 : i32
    %c0_i32_2 = arith.constant 0 : i32
    return %c0_i32, %c0_i32_0, %c0_i32_1 : i32, i32, i32
  }
  func.func @transform_2(%arg0: i32) -> i32 {
    %c0_i32 = arith.constant 0 : i32
    %c0_i32_0 = arith.constant 0 : i32
    return %c0_i32 : i32
  }
  func.func @transform_3(%arg0: i32) -> (i32, i32) {
    %c0_i32 = arith.constant 0 : i32
    %c0_i32_0 = arith.constant 0 : i32
    return %arg0, %c0_i32 : i32, i32
  }
}

</mosaic_0001>

<bundles_post_ra>
// kernel: tpu_custom_call.1
= control target key start
LH: loop header
LB: loop body
LE: loop exit
PB: predicated region body
PF: predicated region fallthrough
CT: control target
= control target key end

     0   :  { %9 = vsyncpa [#allocation4], 0  ;;  %s4783_s0 = inlined_call_operand.hbm [shape: f32[16,128,39], index: 0, kind: input, shape index: {}]   ;;  %s4784_s1 = inlined_call_operand.hbm [shape: f32[1,1,39], index: 1, kind: input, shape index: {}]   ;;  %s4785_s2 = inlined_call_operand.<no memory space> [shape: f32[1], index: 2, kind: input, shape index: {}]   ;;  %s4786_s3 = inlined_call_operand.hbm [shape: f32[16,128], index: 3, kind: output, shape index: {}]  }
   0x1   :  { %10 = vsyncpa [#allocation7], 0 }
   0x2   :  { %11 = vsyncpa [#allocation5], 0  ;;  %s3264_s12 = smov [#allocation3]   ;;  %s3192_s16 = scalar_lea.hbm %s4783_s0, 32768 }
   0x3   :  { %s17_s13 = sshll.u32 %s3264_s12, 4  ;;  %p3193_p0 = scmp.ne.s32.totalorder %s4783_s0, %s3192_s16  ;;  %s18_s13 = int_to_ptr.vmem [resolvable:$true] %s17_s13 }
   0x4   :  { %p3196_p1 = scmp.lt.u32.totalorder %s3192_s16, %s4783_s0 }
   0x6   :  { %p3198_p2 = pnand %p3196_p1, %p3193_p0 }
   0x8   :  { %3201 = shalt.err (!%p3198_p2)
}
   0x9   :  { %s3202_s21 = scalar_lea.vmem %s18_s13, 32768  ;;  %p3207_p4 = scmp.lt.s32.totalorder %s18_s13, %s18_s13 }
   0xa   :  { %p3203_p3 = scmp.ne.s32.totalorder %s18_s13, %s3202_s21  ;;  %p3208_p5 = scmp.lt.s32.totalorder %s3202_s21, %s3202_s21 }
   0xc   :  { %p3209_p6 = por %p3208_p5, %p3207_p4 }
   0xe   :  { %p3210_p7 = pnand %p3209_p6, %p3203_p3 }
  0x10   :  { %3213 = shalt.err (!%p3210_p7)
}
  0x11   :  { %s3265_s22 = smov 128   ;;  %s3266_s23 = smov 8  }
  0x12   :  { %23 = dma.hbm_to_vmem [thread:$0]  %s4783_s0, 32768, %s18_s13, [#allocation4], %s3265_s22, %s3265_s22, %s3266_s23  }
  0x13   :  { %s3267_s26 = smov [#allocation6]   ;;  %s3214_s30 = scalar_lea.hbm %s4784_s1, 16 }
  0x14   :  { %s30_s27 = sshll.u32 %s3267_s26, 4  ;;  %p3215_p8 = scmp.ne.s32.totalorder %s4784_s1, %s3214_s30  ;;  %s31_s27 = int_to_ptr.vmem [resolvable:$true] %s30_s27 }
  0x15   :  { %p3218_p9 = scmp.lt.u32.totalorder %s3214_s30, %s4784_s1 }
  0x17   :  { %p3220_p10 = pnand %p3218_p9, %p3215_p8 }
  0x19   :  { %3223 = shalt.err (!%p3220_p10)
}
  0x1a   :  { %s3224_s8 = scalar_lea.vmem %s31_s27, 16  ;;  %s3228_s0 = scalar_lea.vmem %s31_s27, 32 }
  0x1b   :  { %p3225_p11 = scmp.ne.s32.totalorder %s31_s27, %s3224_s8  ;;  %p3229_p12 = scmp.lt.s32.totalorder %s31_s27, %s31_s27 }
  0x1c   :  { %p3230_p13 = scmp.lt.s32.totalorder %s3228_s0, %s3224_s8 }
  0x1e   :  { %p3231_p0 = por %p3230_p13, %p3229_p12 }
  0x20   :  { %p3232_p1 = pnand %p3231_p0, %p3225_p11 }
  0x22   :  { %3235 = shalt.err (!%p3232_p1)
}
  0x23   :  { %33 = dma.hbm_to_vmem [thread:$0]  %s4784_s1, 16, %s31_s27, [#allocation7]  }
  0x24   :  { %3258 = dma.done.wait [#allocation4], 32768  }
  0x25   :  { %3259 = vsyncadd [#allocation4], 4294934528 }
  0x26   :  { %3260 = dma.done.wait [#allocation7], 16  }
  0x27   :  { %3261 = vsyncadd [#allocation7], 4294967280  ;;  %v44_v0 = vld [vmem:[#allocation3 + $0x10] sm:$0xff]  ;;  %v3316_v1 = vld [vmem:[#allocation6] ss:$0 sm:$0xff]  ;;  %vm561_vm0 = vcmask 318464  }
  0x28   :  { %v42_v2 = vld [vmem:[#allocation3] sm:$0xff]  ;;  %v307_v3 = vmul.f32 %v3316_v1, %v44_v0  ;;  %v45_v5 = vld [vmem:[#allocation3 + $0x18] sm:$0xff]  ;;  %v43_v6 = vld [vmem:[#allocation3 + $0x8] sm:$0xff]  ;;  %vm1855_vm1 = vcmask 130112   ;;  %vm1862_vm2 = vcmask 195712   ;;  %vm1869_vm3 = vcmask 261312  }
  0x29   :  { %v305_v4 = vmul.f32 %v3316_v1, %v42_v2  ;;  %v308_v7 = vmul.f32 %v3316_v1, %v45_v5  ;;  %v306_v8 = vmul.f32 %v3316_v1, %v43_v6  ;;  %v47_v9 = vld [vmem:[#allocation3 + $0x28] sm:$0xff]  ;;  %v46_v10 = vld [vmem:[#allocation3 + $0x20] sm:$0xff]  ;;  %v49_v17 = vld [vmem:[#allocation3 + $0x38] sm:$0xff]  ;;  %vm1876_vm4 = vcmask 326912  }
  0x2a   :  { %v568_v11 = vsel %vm561_vm0, %v307_v3, 0.0  ;;  %v310_v15 = vmul.f32 %v3316_v1, %v47_v9  ;;  %v309_v16 = vmul.f32 %v3316_v1, %v46_v10  ;;  %v48_v18 = vld [vmem:[#allocation3 + $0x30] sm:$0xff]  ;;  %v312_v21 = vmul.f32 %v3316_v1, %v49_v17  ;;  %v51_v23 = vld [vmem:[#allocation3 + $0x48] sm:$0xff]  ;;  %v50_v24 = vld [vmem:[#allocation3 + $0x40] sm:$0xff] }
  0x2b   :  { %v562_v12 = vsel %vm561_vm0, %v305_v4, 0.0  ;;  %569 = vadd.xlane.f32.xlu1 %v568_v11  ;;  %v571_v13 = vsel %vm561_vm0, %v308_v7, 0.0  ;;  %v565_v14 = vsel %vm561_vm0, %v306_v8, 0.0  ;;  %v311_v22 = vmul.f32 %v3316_v1, %v48_v18  ;;  %v53_v29 = vld [vmem:[#allocation3 + $0x58] sm:$0xff]  ;;  %v52_v30 = vld [vmem:[#allocation3 + $0x50] sm:$0xff]  ;;  %v55_v35 = vld [vmem:[#allocation3 + $0x68] sm:$0xff] }
  0x2c   :  { %563 = vadd.xlane.f32.xlu0 %v562_v12  ;;  %v577_v19 = vsel %vm561_vm0, %v310_v15, 0.0  ;;  %v574_v20 = vsel %vm561_vm0, %v309_v16, 0.0  ;;  %v583_v25 = vsel %vm561_vm0, %v312_v21, 0.0  ;;  %v314_v27 = vmul.f32 %v3316_v1, %v51_v23  ;;  %v54_v36 = vld [vmem:[#allocation3 + $0x60] sm:$0xff]  ;;  %v57_v41 = vld [vmem:[#allocation3 + $0x78] sm:$0xff]  ;;  %v56_v42 = vld [vmem:[#allocation3 + $0x70] sm:$0xff] }
  0x2d   :  { %v580_v26 = vsel %vm561_vm0, %v311_v22, 0.0  ;;  %v313_v28 = vmul.f32 %v3316_v1, %v50_v24  ;;  %v316_v33 = vmul.f32 %v3316_v1, %v53_v29  ;;  %v315_v34 = vmul.f32 %v3316_v1, %v52_v30  ;;  %v59_v47 = vld [vmem:[#allocation3 + $0x88] sm:$0xff]  ;;  %v58_v48 = vld [vmem:[#allocation3 + $0x80] sm:$0xff]  ;;  %v61_v53 = vld [vmem:[#allocation3 + $0x98] sm:$0xff] }
  0x2e   :  { %v589_v31 = vsel %vm561_vm0, %v314_v27, 0.0  ;;  %v318_v39 = vmul.f32 %v3316_v1, %v55_v35  ;;  %v317_v40 = vmul.f32 %v3316_v1, %v54_v36  ;;  %v320_v45 = vmul.f32 %v3316_v1, %v57_v41  ;;  %v60_v54 = vld [vmem:[#allocation3 + $0x90] sm:$0xff]  ;;  %v63_v59 = vld [vmem:[#allocation3 + $0xa8] sm:$0xff]  ;;  %v62_v60 = vld [vmem:[#allocation3 + $0xa0] sm:$0xff] }
  0x2f   :  { %572 = vadd.xlane.f32.xlu1 %v571_v13  ;;  %v586_v32 = vsel %vm561_vm0, %v313_v28, 0.0  ;;  %v595_v37 = vsel %vm561_vm0, %v316_v33, 0.0  ;;  %v592_v38 = vsel %vm561_vm0, %v315_v34, 0.0  ;;  %v319_v46 = vmul.f32 %v3316_v1, %v56_v42  ;;  %v65_v2 = vld [vmem:[#allocation3 + $0xb8] sm:$0xff]  ;;  %v64_v3 = vld [vmem:[#allocation3 + $0xb0] sm:$0xff]  ;;  %v67_v8 = vld [vmem:[#allocation3 + $0xc8] sm:$0xff] }
  0x30   :  { %566 = vadd.xlane.f32.xlu0 %v565_v14  ;;  %v601_v43 = vsel %vm561_vm0, %v318_v39, 0.0  ;;  %v598_v44 = vsel %vm561_vm0, %v317_v40, 0.0  ;;  %v607_v49 = vsel %vm561_vm0, %v320_v45, 0.0  ;;  %v322_v51 = vmul.f32 %v3316_v1, %v59_v47  ;;  %v66_v9 = vld [vmem:[#allocation3 + $0xc0] sm:$0xff]  ;;  %v69_v14 = vld [vmem:[#allocation3 + $0xd8] sm:$0xff]  ;;  %v68_v15 = vld [vmem:[#allocation3 + $0xd0] sm:$0xff] }
  0x31   :  { %v604_v50 = vsel %vm561_vm0, %v319_v46, 0.0  ;;  %v321_v52 = vmul.f32 %v3316_v1, %v58_v48  ;;  %v324_v57 = vmul.f32 %v3316_v1, %v61_v53  ;;  %v323_v58 = vmul.f32 %v3316_v1, %v60_v54  ;;  %v70_v21 = vld [vmem:[#allocation3 + $0xe0] sm:$0xff]  ;;  %v72_v27 = vld [vmem:[#allocation3 + $0xf0] sm:$0xff] }
  0x32   :  { %v613_v55 = vsel %vm561_vm0, %v322_v51, 0.0  ;;  %v326_v63 = vmul.f32 %v3316_v1, %v63_v59  ;;  %v325_v0 = vmul.f32 %v3316_v1, %v62_v60  ;;  %v328_v6 = vmul.f32 %v3316_v1, %v65_v2  ;;  %v74_v33 = vld [vmem:[#allocation3 + $0x100] sm:$0xff]  ;;  %v76_v39 = vld [vmem:[#allocation3 + $0x110] sm:$0xff] }
  0x33   :  { %578 = vadd.xlane.f32.xlu1 %v577_v19  ;;  %v610_v56 = vsel %vm561_vm0, %v321_v52, 0.0  ;;  %v619_v61 = vsel %vm561_vm0, %v324_v57, 0.0  ;;  %v616_v62 = vsel %vm561_vm0, %v323_v58, 0.0  ;;  %v327_v7 = vmul.f32 %v3316_v1, %v64_v3  ;;  %v78_v45 = vld [vmem:[#allocation3 + $0x120] sm:$0xff]  ;;  %v80_v51 = vld [vmem:[#allocation3 + $0x130] sm:$0xff] }
  0x34   :  { %575 = vadd.xlane.f32.xlu0 %v574_v20  ;;  %v625_v4 = vsel %vm561_vm0, %v326_v63, 0.0  ;;  %v622_v5 = vsel %vm561_vm0, %v325_v0, 0.0  ;;  %v631_v10 = vsel %vm561_vm0, %v328_v6, 0.0  ;;  %v330_v12 = vmul.f32 %v3316_v1, %v67_v8  ;;  %v71_v20 = vld [vmem:[#allocation3 + $0xe8] sm:$0xff]  ;;  %v82_v57 = vld [vmem:[#allocation3 + $0x140] sm:$0xff]  ;;  %v84_v63 = vld [vmem:[#allocation3 + $0x150] sm:$0xff] }
  0x35   :  { %v628_v11 = vsel %vm561_vm0, %v327_v7, 0.0  ;;  %v329_v13 = vmul.f32 %v3316_v1, %v66_v9  ;;  %v332_v18 = vmul.f32 %v3316_v1, %v69_v14  ;;  %v331_v19 = vmul.f32 %v3316_v1, %v68_v15  ;;  %v86_v6 = vld [vmem:[#allocation3 + $0x160] sm:$0xff] }
  0x36   :  { %v637_v16 = vsel %vm561_vm0, %v330_v12, 0.0  ;;  %v334_v24 = vmul.f32 %v3316_v1, %v71_v20  ;;  %v88_v12 = vld [vmem:[#allocation3 + $0x170] sm:$0xff]  ;;  %vm1883_vm5 = vcmask 392512   ;;  %vm1890_vm6 = vcmask 458112  }
  0x37   :  { %584 = vadd.xlane.f32.xlu1 %v583_v25  ;;  %v634_v17 = vsel %vm561_vm0, %v329_v13, 0.0  ;;  %v643_v22 = vsel %vm561_vm0, %v332_v18, 0.0  ;;  %v640_v23 = vsel %vm561_vm0, %v331_v19, 0.0  ;;  %v333_v25 = vmul.f32 %v3316_v1, %v70_v21  ;;  %v90_v18 = vld [vmem:[#allocation3 + $0x180] sm:$0xff] }
  0x38   :  { %581 = vadd.xlane.f32.xlu0 %v580_v26  ;;  %v73_v26 = vld [vmem:[#allocation3 + $0xf8] sm:$0xff]  ;;  %v649_v28 = vsel %vm561_vm0, %v334_v24, 0.0  ;;  %v92_v24 = vld [vmem:[#allocation3 + $0x190] sm:$0xff]  ;;  %vm1897_vm7 = vcmask 523712   ;;  %vm1904_vm8 = vcmask 589312   ;;  %vm1911_vm9 = vcmask 654912  }
  0x39   :  { %v646_v29 = vsel %vm561_vm0, %v333_v25, 0.0  ;;  %v336_v30 = vmul.f32 %v3316_v1, %v73_v26  ;;  %vm4793_vm10 = vcmask 720512   ;;  %vm4787_vm11 = vcmask 786112  }
  0x3a   :  { %vm1932_vm12 = vcmask 851712   ;;  %vm1939_vm13 = vcmask 917312   ;;  %vm1946_vm14 = vcmask 982912   ;;  %vm1953_vm15 = vcmask 1048512  }
  0x3b   :  { %590 = vadd.xlane.f32.xlu1 %v589_v31  ;;  %v335_v31 = vmul.f32 %v3316_v1, %v72_v27  ;;  %v655_v34 = vsel %vm561_vm0, %v336_v30, 0.0  ;;  %v94_v30 = vld [vmem:[#allocation3 + $0x1a0] sm:$0xff] }
  0x3c   :  { %587 = vadd.xlane.f32.xlu0 %v586_v32  ;;  %v75_v32 = vld [vmem:[#allocation3 + $0x108] sm:$0xff] }
  0x3d   :  { %v652_v35 = vsel %vm561_vm0, %v335_v31, 0.0  ;;  %v338_v36 = vmul.f32 %v3316_v1, %v75_v32 }
  0x3f   :  { %596 = vadd.xlane.f32.xlu1 %v595_v37  ;;  %v337_v37 = vmul.f32 %v3316_v1, %v74_v33  ;;  %v661_v40 = vsel %vm561_vm0, %v338_v36, 0.0  ;;  %v96_v36 = vld [vmem:[#allocation3 + $0x1b0] sm:$0xff] }
  0x40   :  { %593 = vadd.xlane.f32.xlu0 %v592_v38  ;;  %v77_v38 = vld [vmem:[#allocation3 + $0x118] sm:$0xff] }
  0x41   :  { %v658_v41 = vsel %vm561_vm0, %v337_v37, 0.0  ;;  %v340_v42 = vmul.f32 %v3316_v1, %v77_v38 }
  0x43   :  { %602 = vadd.xlane.f32.xlu1 %v601_v43  ;;  %v339_v43 = vmul.f32 %v3316_v1, %v76_v39  ;;  %v667_v46 = vsel %vm561_vm0, %v340_v42, 0.0  ;;  %v98_v42 = vld [vmem:[#allocation3 + $0x1c0] sm:$0xff] }
  0x44   :  { %599 = vadd.xlane.f32.xlu0 %v598_v44  ;;  %v79_v44 = vld [vmem:[#allocation3 + $0x128] sm:$0xff] }
  0x45   :  { %v664_v47 = vsel %vm561_vm0, %v339_v43, 0.0  ;;  %v342_v48 = vmul.f32 %v3316_v1, %v79_v44 }
  0x47   :  { %608 = vadd.xlane.f32.xlu1 %v607_v49  ;;  %v341_v49 = vmul.f32 %v3316_v1, %v78_v45  ;;  %v673_v52 = vsel %vm561_vm0, %v342_v48, 0.0  ;;  %v100_v48 = vld [vmem:[#allocation3 + $0x1d0] sm:$0xff] }
  0x48   :  { %605 = vadd.xlane.f32.xlu0 %v604_v50  ;;  %v81_v50 = vld [vmem:[#allocation3 + $0x138] sm:$0xff] }
  0x49   :  { %v670_v53 = vsel %vm561_vm0, %v341_v49, 0.0  ;;  %v344_v54 = vmul.f32 %v3316_v1, %v81_v50 }
  0x4b   :  { %614 = vadd.xlane.f32.xlu1 %v613_v55  ;;  %v343_v55 = vmul.f32 %v3316_v1, %v80_v51  ;;  %v679_v58 = vsel %vm561_vm0, %v344_v54, 0.0  ;;  %v102_v54 = vld [vmem:[#allocation3 + $0x1e0] sm:$0xff] }
  0x4c   :  { %611 = vadd.xlane.f32.xlu0 %v610_v56  ;;  %v83_v56 = vld [vmem:[#allocation3 + $0x148] sm:$0xff] }
  0x4d   :  { %v676_v59 = vsel %vm561_vm0, %v343_v55, 0.0  ;;  %v346_v60 = vmul.f32 %v3316_v1, %v83_v56 }
  0x4f   :  { %620 = vadd.xlane.f32.xlu1 %v619_v61  ;;  %v345_v61 = vmul.f32 %v3316_v1, %v82_v57  ;;  %v685_v0 = vsel %vm561_vm0, %v346_v60, 0.0  ;;  %v104_v60 = vld [vmem:[#allocation3 + $0x1f0] sm:$0xff] }
  0x50   :  { %617 = vadd.xlane.f32.xlu0 %v616_v62  ;;  %v85_v62 = vld [vmem:[#allocation3 + $0x158] sm:$0xff] }
  0x51   :  { %v682_v2 = vsel %vm561_vm0, %v345_v61, 0.0  ;;  %v348_v3 = vmul.f32 %v3316_v1, %v85_v62 }
  0x53   :  { %626 = vadd.xlane.f32.xlu1 %v625_v4  ;;  %v347_v4 = vmul.f32 %v3316_v1, %v84_v63  ;;  %v691_v7 = vsel %vm561_vm0, %v348_v3, 0.0  ;;  %v106_v3 = vld [vmem:[#allocation3 + $0x200] sm:$0xff] }
  0x54   :  { %623 = vadd.xlane.f32.xlu0 %v622_v5  ;;  %v87_v5 = vld [vmem:[#allocation3 + $0x168] sm:$0xff] }
  0x55   :  { %v688_v8 = vsel %vm561_vm0, %v347_v4, 0.0  ;;  %v350_v9 = vmul.f32 %v3316_v1, %v87_v5 }
  0x57   :  { %632 = vadd.xlane.f32.xlu1 %v631_v10  ;;  %v349_v10 = vmul.f32 %v3316_v1, %v86_v6  ;;  %v697_v13 = vsel %vm561_vm0, %v350_v9, 0.0  ;;  %v108_v9 = vld [vmem:[#allocation3 + $0x210] sm:$0xff] }
  0x58   :  { %629 = vadd.xlane.f32.xlu0 %v628_v11  ;;  %v89_v11 = vld [vmem:[#allocation3 + $0x178] sm:$0xff] }
  0x59   :  { %v694_v14 = vsel %vm561_vm0, %v349_v10, 0.0  ;;  %v352_v15 = vmul.f32 %v3316_v1, %v89_v11 }
  0x5b   :  { %638 = vadd.xlane.f32.xlu1 %v637_v16  ;;  %v351_v16 = vmul.f32 %v3316_v1, %v88_v12  ;;  %v703_v19 = vsel %vm561_vm0, %v352_v15, 0.0  ;;  %v110_v15 = vld [vmem:[#allocation3 + $0x220] sm:$0xff] }
  0x5c   :  { %635 = vadd.xlane.f32.xlu0 %v634_v17  ;;  %v91_v17 = vld [vmem:[#allocation3 + $0x188] sm:$0xff] }
  0x5d   :  { %v700_v20 = vsel %vm561_vm0, %v351_v16, 0.0  ;;  %v354_v21 = vmul.f32 %v3316_v1, %v91_v17 }
  0x5f   :  { %644 = vadd.xlane.f32.xlu1 %v643_v22  ;;  %v353_v22 = vmul.f32 %v3316_v1, %v90_v18  ;;  %v709_v25 = vsel %vm561_vm0, %v354_v21, 0.0  ;;  %v112_v21 = vld [vmem:[#allocation3 + $0x230] sm:$0xff] }
  0x60   :  { %641 = vadd.xlane.f32.xlu0 %v640_v23  ;;  %v93_v23 = vld [vmem:[#allocation3 + $0x198] sm:$0xff] }
  0x61   :  { %v706_v26 = vsel %vm561_vm0, %v353_v22, 0.0  ;;  %v356_v27 = vmul.f32 %v3316_v1, %v93_v23 }
  0x63   :  { %650 = vadd.xlane.f32.xlu1 %v649_v28  ;;  %v355_v28 = vmul.f32 %v3316_v1, %v92_v24  ;;  %v715_v31 = vsel %vm561_vm0, %v356_v27, 0.0  ;;  %v115_v27 = vld [vmem:[#allocation3 + $0x248] sm:$0xff] }
  0x64   :  { %647 = vadd.xlane.f32.xlu0 %v646_v29  ;;  %v95_v29 = vld [vmem:[#allocation3 + $0x1a8] sm:$0xff] }
  0x65   :  { %v712_v32 = vsel %vm561_vm0, %v355_v28, 0.0  ;;  %v358_v33 = vmul.f32 %v3316_v1, %v95_v29  ;;  %v114_v28 = vld [vmem:[#allocation3 + $0x240] sm:$0xff] }
  0x67   :  { %656 = vadd.xlane.f32.xlu1 %v655_v34  ;;  %v357_v34 = vmul.f32 %v3316_v1, %v94_v30  ;;  %v721_v37 = vsel %vm561_vm0, %v358_v33, 0.0  ;;  %v377_v33 = vmul.f32 %v3316_v1, %v114_v28 }
  0x68   :  { %653 = vadd.xlane.f32.xlu0 %v652_v35  ;;  %v97_v35 = vld [vmem:[#allocation3 + $0x1b8] sm:$0xff] }
  0x69   :  { %v718_v38 = vsel %vm561_vm0, %v357_v34, 0.0  ;;  %v360_v39 = vmul.f32 %v3316_v1, %v97_v35  ;;  %v117_v34 = vld [vmem:[#allocation3 + $0x258] sm:$0xff]  ;;  %v116_v35 = vld [vmem:[#allocation3 + $0x250] sm:$0xff] }
  0x6b   :  { %662 = vadd.xlane.f32.xlu1 %v661_v40  ;;  %v359_v40 = vmul.f32 %v3316_v1, %v96_v36  ;;  %v727_v43 = vsel %vm561_vm0, %v360_v39, 0.0 }
  0x6c   :  { %659 = vadd.xlane.f32.xlu0 %v658_v41  ;;  %v99_v41 = vld [vmem:[#allocation3 + $0x1c8] sm:$0xff] }
  0x6d   :  { %v724_v44 = vsel %vm561_vm0, %v359_v40, 0.0  ;;  %v362_v45 = vmul.f32 %v3316_v1, %v99_v41  ;;  %v380_v40 = vmul.f32 %v3316_v1, %v117_v34 }
  0x6f   :  { %668 = vadd.xlane.f32.xlu1 %v667_v46  ;;  %v361_v46 = vmul.f32 %v3316_v1, %v98_v42  ;;  %v733_v49 = vsel %vm561_vm0, %v362_v45, 0.0  ;;  %v778_v45 = vsel %vm561_vm0, %v377_v33, 0.0 }
  0x70   :  { %665 = vadd.xlane.f32.xlu0 %v664_v47  ;;  %v101_v47 = vld [vmem:[#allocation3 + $0x1d8] sm:$0xff] }
  0x71   :  { %v730_v50 = vsel %vm561_vm0, %v361_v46, 0.0  ;;  %v364_v51 = vmul.f32 %v3316_v1, %v101_v47  ;;  %v379_v46 = vmul.f32 %v3316_v1, %v116_v35  ;;  %v119_v47 = vld [vmem:[#allocation3 + $0x268] sm:$0xff] }
  0x73   :  { %674 = vadd.xlane.f32.xlu1 %v673_v52  ;;  %v363_v52 = vmul.f32 %v3316_v1, %v100_v48  ;;  %v739_v55 = vsel %vm561_vm0, %v364_v51, 0.0  ;;  %v118_v48 = vld [vmem:[#allocation3 + $0x260] sm:$0xff] }
  0x74   :  { %671 = vadd.xlane.f32.xlu0 %v670_v53  ;;  %v103_v53 = vld [vmem:[#allocation3 + $0x1e8] sm:$0xff] }
  0x75   :  { %v736_v56 = vsel %vm561_vm0, %v363_v52, 0.0  ;;  %v366_v57 = vmul.f32 %v3316_v1, %v103_v53 }
  0x77   :  { %680 = vadd.xlane.f32.xlu1 %v679_v58  ;;  %v365_v58 = vmul.f32 %v3316_v1, %v102_v54  ;;  %v745_v61 = vsel %vm561_vm0, %v366_v57, 0.0 }
  0x78   :  { %677 = vadd.xlane.f32.xlu0 %v676_v59  ;;  %v105_v59 = vld [vmem:[#allocation3 + $0x1f8] sm:$0xff] }
  0x79   :  { %v742_v62 = vsel %vm561_vm0, %v365_v58, 0.0  ;;  %v368_v63 = vmul.f32 %v3316_v1, %v105_v59 }
  0x7b   :  { %686 = vadd.xlane.f32.xlu1 %v685_v0  ;;  %v367_v0 = vmul.f32 %v3316_v1, %v104_v60  ;;  %v751_v4 = vsel %vm561_vm0, %v368_v63, 0.0 }
  0x7c   :  { %683 = vadd.xlane.f32.xlu0 %v682_v2  ;;  %v107_v2 = vld [vmem:[#allocation3 + $0x208] sm:$0xff] }
  0x7d   :  { %v748_v5 = vsel %vm561_vm0, %v367_v0, 0.0  ;;  %v370_v6 = vmul.f32 %v3316_v1, %v107_v2  ;;  %v121_v2 = vld [vmem:[#allocation3 + $0x278] sm:$0xff] }
  0x7f   :  { %692 = vadd.xlane.f32.xlu1 %v691_v7  ;;  %v369_v7 = vmul.f32 %v3316_v1, %v106_v3  ;;  %v757_v10 = vsel %vm561_vm0, %v370_v6, 0.0  ;;  %v120_v3 = vld [vmem:[#allocation3 + $0x270] sm:$0xff] }
  0x80   :  { %689 = vadd.xlane.f32.xlu0 %v688_v8  ;;  %v109_v8 = vld [vmem:[#allocation3 + $0x218] sm:$0xff] }
  0x81   :  { %v754_v11 = vsel %vm561_vm0, %v369_v7, 0.0  ;;  %v372_v12 = vmul.f32 %v3316_v1, %v109_v8 }
  0x83   :  { %698 = vadd.xlane.f32.xlu1 %v697_v13  ;;  %v371_v13 = vmul.f32 %v3316_v1, %v108_v9  ;;  %v763_v16 = vsel %vm561_vm0, %v372_v12, 0.0 }
  0x84   :  { %695 = vadd.xlane.f32.xlu0 %v694_v14  ;;  %v111_v14 = vld [vmem:[#allocation3 + $0x228] sm:$0xff] }
  0x85   :  { %v760_v17 = vsel %vm561_vm0, %v371_v13, 0.0  ;;  %v374_v18 = vmul.f32 %v3316_v1, %v111_v14 }
  0x87   :  { %704 = vadd.xlane.f32.xlu1 %v703_v19  ;;  %v373_v19 = vmul.f32 %v3316_v1, %v110_v15  ;;  %v769_v23 = vsel %vm561_vm0, %v374_v18, 0.0 }
  0x88   :  { %701 = vadd.xlane.f32.xlu0 %v700_v20  ;;  %v113_v20 = vld [vmem:[#allocation3 + $0x238] sm:$0xff] }
  0x89   :  { %v376_v22 = vmul.f32 %v3316_v1, %v113_v20  ;;  %v766_v24 = vsel %vm561_vm0, %v373_v19, 0.0 }
  0x8b   :  { %710 = vadd.xlane.f32.xlu1 %v709_v25  ;;  %v375_v25 = vmul.f32 %v3316_v1, %v112_v21  ;;  %v775_v29 = vsel %vm561_vm0, %v376_v22, 0.0  ;;  %v123_v21 = vld [vmem:[#allocation3 + $0x288] sm:$0xff]  ;;  %v122_v22 = vld [vmem:[#allocation3 + $0x280] sm:$0xff] }
  0x8c   :  { %707 = vadd.xlane.f32.xlu0 %v706_v26  ;;  %v1844_v26 = vlaneseq }
  0x8d   :  { %v772_v30 = vsel %vm561_vm0, %v375_v25, 0.0 }
  0x8e   :  { %v3466_v36 = vshrl.u32 %v1844_v26, 7 }
  0x8f   :  { %716 = vadd.xlane.f32.xlu1 %v715_v31  ;;  %v3462_v31 = vand.u32 127, %v1844_v26 }
  0x90   :  { %713 = vadd.xlane.f32.xlu0 %v712_v32  ;;  %v378_v32 = vmul.f32 %v3316_v1, %v115_v27 }
  0x91   :  { %v1850_v39 = vadd.s32 4294967288, %v3462_v31  ;;  %v1857_v41 = vadd.s32 4294967280, %v3462_v31  ;;  %v1878_v51 = vadd.s32 4294967256, %v3462_v31  ;;  %v1871_v52 = vadd.s32 4294967264, %v3462_v31 }
  0x92   :  { %v1892_v6 = vadd.s32 4294967240, %v3462_v31  ;;  %v1885_v7 = vadd.s32 4294967248, %v3462_v31  ;;  %v1906_v26 = vadd.s32 4294967224, %v3462_v31 }
  0x93   :  { %722 = vadd.xlane.f32.xlu1 %v721_v37  ;;  %v1864_v37 = vadd.s32 4294967272, %v3462_v31  ;;  %v3491_v54 = vsub.s32 %v1850_v39, %v3466_v36  ;;  %v3496_v57 = vsub.s32 %v1857_v41, %v3466_v36  ;;  %v385_v39 = vmul.f32 %v3316_v1, %v122_v22  ;;  %v129_v22 = vld [vmem:[#allocation3 + $0x2b8] sm:$0xff] }
  0x94   :  { %719 = vadd.xlane.f32.xlu0 %v718_v38  ;;  %v3472_v38 = vstv %s4785_s2  ;;  %v3527_v25 = vsub.s32 %v1885_v7, %v3466_v36  ;;  %s3268_s2 = smov [#allocation8]  }
  0x95   :  { %s3170_s12 = sshll.u32 %s3268_s2, 4  ;;  %s3171_s12 = int_to_ptr.vmem [resolvable:$true] %s3170_s12 }
  0x96   :  { %s3236_s13 = scalar_lea.vmem %s3171_s12, 256  ;;  %p3241_p3 = scmp.lt.s32.totalorder %s3171_s12, %s3171_s12 }
  0x97   :  { %728 = vadd.xlane.f32.xlu1 %v727_v43  ;;  %p3237_p2 = scmp.ne.s32.totalorder %s3171_s12, %s3236_s13  ;;  %p3242_p4 = scmp.lt.s32.totalorder %s3236_s13, %s3236_s13 }
  0x98   :  { %725 = vadd.xlane.f32.xlu0 %v724_v44  ;;  %v781_v44 = vsel %vm561_vm0, %v378_v32, 0.0 }
  0x99   :  { %p3243_p5 = por %p3242_p4, %p3241_p3 }
  0x9b   :  { %734 = vadd.xlane.f32.xlu1 %v733_v49  ;;  %v3482_v49 = vsub.s32 %v3462_v31, %v3466_v36  ;;  %p3244_p6 = pnand %p3243_p5, %p3237_p2 }
  0x9c   :  { %731 = vadd.xlane.f32.xlu0 %v730_v50  ;;  %v3485_v50 = vsub.s32 %v1864_v37, %v3466_v36  ;;  %v386_v37 = vmul.f32 %v3316_v1, %v123_v21 }
  0x9f   :  { %740 = vadd.xlane.f32.xlu1 %v739_v55  ;;  %v787_v55 = vsel %vm561_vm0, %v380_v40, 0.0 }
  0xa0   :  { %737 = vadd.xlane.f32.xlu0 %v736_v56  ;;  %v382_v56 = vmul.f32 %v3316_v1, %v119_v47  ;;  %v1920_v47 = vadd.s32 4294967208, %v3462_v31 }
  0xa2   :  { %v3561_v7 = vsub.s32 %v1920_v47, %v3466_v36  ;;  %v130_v47 = vld [vmem:[#allocation3 + $0x2c0] sm:$0xff] }
  0xa3   :  { %746 = vadd.xlane.f32.xlu1 %v745_v61  ;;  %v784_v61 = vsel %vm561_vm0, %v379_v46, 0.0  ;;  %v3543_v46 = vsub.s32 %v1906_v26, %v3466_v36 }
  0xa4   :  { %743 = vadd.xlane.f32.xlu0 %v742_v62  ;;  %v381_v62 = vmul.f32 %v3316_v1, %v118_v48 }
  0xa6   :  { %v790_v15 = vsel %vm561_vm0, %v381_v62, 0.0 }
  0xa7   :  { %752 = vadd.xlane.f32.xlu1 %v751_v4  ;;  %v3504_v4 = vsub.s32 %v1878_v51, %v3466_v36 }
  0xa8   :  { %749 = vadd.xlane.f32.xlu0 %v748_v5  ;;  %v3507_v5 = vsub.s32 %v1871_v52, %v3466_v36 }
  0xab   :  { %758 = vadd.xlane.f32.xlu1 %v757_v10 }
  0xac   :  { %755 = vadd.xlane.f32.xlu0 %v754_v11  ;;  %v793_v11 = vsel %vm561_vm0, %v382_v56, 0.0 }
  0xaf   :  { %764 = vadd.xlane.f32.xlu1 %v763_v16  ;;  %v384_v16 = vmul.f32 %v3316_v1, %v121_v2  ;;  %v127_v2 = vld [vmem:[#allocation3 + $0x2a8] sm:$0xff] }
  0xb0   :  { %761 = vadd.xlane.f32.xlu0 %v760_v17  ;;  %v383_v17 = vmul.f32 %v3316_v1, %v120_v3  ;;  %v126_v3 = vld [vmem:[#allocation3 + $0x2a0] sm:$0xff] }
  0xb1   :  { %v799_v34 = vsel %vm561_vm0, %v384_v16, 0.0 }
  0xb2   :  { %v796_v35 = vsel %vm561_vm0, %v383_v17, 0.0  ;;  %v390_v17 = vmul.f32 %v3316_v1, %v127_v2 }
  0xb3   :  { %770 = vadd.xlane.f32.xlu1 %v769_v23 }
  0xb4   :  { %767 = vadd.xlane.f32.xlu0 %v766_v24  ;;  %v3524_v24 = vsub.s32 %v1892_v6, %v3466_v36 }
  0xb7   :  { %776 = vadd.xlane.f32.xlu1 %v775_v29 }
  0xb8   :  { %773 = vadd.xlane.f32.xlu0 %v772_v30  ;;  %v570_v42 = vpop.xlane.xlu1 %569  ;;  %v1899_v30 = vadd.s32 4294967232, %v3462_v31 }
  0xb9   :  { %v564_v43 = vpop.xlane.xlu0 %563  ;;  %v1334_v58 = vadd.f32 %v3472_v38, %v570_v42 }
  0xba   :  { %v1332_v53 = vadd.f32 %v3472_v38, %v564_v43  ;;  %v125_v43 = vld [vmem:[#allocation3 + $0x298] sm:$0xff]  ;;  %v3549_v52 = vsub.s32 %v1899_v30, %v3466_v36 }
  0xbb   :  { %782 = vadd.xlane.f32.xlu1 %v781_v44  ;;  %v1861_v12 = vrot.slane %v1334_v58, %v3496_v57  ;;  %v124_v44 = vld [vmem:[#allocation3 + $0x290] sm:$0xff]  ;;  %v805_v58 = vsel %vm561_vm0, %v386_v37, 0.0  ;;  %v817_v37 = vsel %vm561_vm0, %v390_v17, 0.0 }
  0xbc   :  { %779 = vadd.xlane.f32.xlu0 %v778_v45  ;;  %v573_v59 = vpop.xlane.xlu1 %572  ;;  %v1849_v8 = vrot.slane %v1332_v53, %v3482_v49  ;;  %v1913_v53 = vadd.s32 4294967216, %v3462_v31 }
  0xbd   :  { %v567_v60 = vpop.xlane.xlu0 %566  ;;  %v1335_v63 = vadd.f32 %v3472_v38, %v573_v59  ;;  %v802_v59 = vsel %vm561_vm0, %v385_v39, 0.0 }
  0xbe   :  { %v1333_v0 = vadd.f32 %v3472_v38, %v567_v60  ;;  %v388_v60 = vmul.f32 %v3316_v1, %v125_v43 }
  0xbf   :  { %v1868_v9 = vrot.slane %v1335_v63, %v3485_v50  ;;  %788 = vadd.xlane.f32.xlu1 %v787_v55 }
  0xc0   :  { %v1854_v10 = vrot.slane %v1333_v0, %v3491_v54  ;;  %785 = vadd.xlane.f32.xlu0 %v784_v61  ;;  %v579_v13 = vpop.xlane.xlu1 %578  ;;  %v387_v61 = vmul.f32 %v3316_v1, %v124_v44 }
  0xc1   :  { %v576_v14 = vpop.xlane.xlu0 %575  ;;  %v1337_v19 = vadd.f32 %v3472_v38, %v579_v13 }
  0xc2   :  { %v1856_v18 = vsel %vm1855_vm1, %v1854_v10, %v1849_v8  ;;  %v1336_v20 = vadd.f32 %v3472_v38, %v576_v14  ;;  %v1934_v8 = vadd.s32 4294967192, %v3462_v31  ;;  %v808_v16 = vsel %vm561_vm0, %v387_v61, 0.0 }
  0xc3   :  { %v1863_v23 = vsel %vm1862_vm2, %v1861_v12, %v1856_v18  ;;  %v1882_v27 = vrot.slane %v1337_v19, %v3504_v4  ;;  %794 = vadd.xlane.f32.xlu1 %v793_v11  ;;  %v3567_v11 = vsub.s32 %v1913_v53, %v3466_v36  ;;  %v1927_v12 = vadd.s32 4294967200, %v3462_v31 }
  0xc4   :  { %v1870_v28 = vsel %vm1869_vm3, %v1868_v9, %v1863_v23  ;;  %v1875_v29 = vrot.slane %v1336_v20, %v3507_v5  ;;  %791 = vadd.xlane.f32.xlu0 %v790_v15  ;;  %v585_v32 = vpop.xlane.xlu1 %584  ;;  %v811_v15 = vsel %vm561_vm0, %v388_v60, 0.0  ;;  %v389_v18 = vmul.f32 %v3316_v1, %v126_v3  ;;  %v128_v23 = vld [vmem:[#allocation3 + $0x2b0] sm:$0xff]  ;;  %v133_v3 = vld [vmem:[#allocation3 + $0x2d8] sm:$0xff] }
  0xc5   :  { %v582_v33 = vpop.xlane.xlu0 %581  ;;  %v1339_v41 = vadd.f32 %v3472_v38, %v585_v32  ;;  %v3585_v32 = vsub.s32 %v1927_v12, %v3466_v36 }
  0xc6   :  { %v1877_v40 = vsel %vm1876_vm4, %v1875_v29, %v1870_v28  ;;  %v1338_v42 = vadd.f32 %v3472_v38, %v582_v33  ;;  %v1948_v28 = vadd.s32 4294967176, %v3462_v31  ;;  %v1941_v33 = vadd.s32 4294967184, %v3462_v31 }
  0xc7   :  { %v1884_v45 = vsel %vm1883_vm5, %v1882_v27, %v1877_v40  ;;  %v1896_v48 = vrot.slane %v1339_v41, %v3524_v24  ;;  %800 = vadd.xlane.f32.xlu1 %v799_v34  ;;  %v3579_v27 = vsub.s32 %v1934_v8, %v3466_v36  ;;  %v814_v39 = vsel %vm561_vm0, %v389_v18, 0.0 }
  0xc8   :  { %v1889_v51 = vrot.slane %v1338_v42, %v3527_v25  ;;  %797 = vadd.xlane.f32.xlu0 %v796_v35  ;;  %v591_v55 = vpop.xlane.xlu1 %590  ;;  %v392_v40 = vmul.f32 %v3316_v1, %v129_v22  ;;  %v391_v41 = vmul.f32 %v3316_v1, %v128_v23 }
  0xc9   :  { %v588_v56 = vpop.xlane.xlu0 %587  ;;  %v1341_v63 = vadd.f32 %v3472_v38, %v591_v55  ;;  %v3602_v55 = vsub.s32 %v1941_v33, %v3466_v36 }
  0xca   :  { %v1891_v62 = vsel %vm1890_vm6, %v1889_v51, %v1884_v45  ;;  %v1340_v0 = vadd.f32 %v3472_v38, %v588_v56  ;;  %v131_v45 = vld [vmem:[#allocation3 + $0x2c8] sm:$0xff]  ;;  %v820_v60 = vsel %vm561_vm0, %v391_v41, 0.0  ;;  %v137_v41 = vld [vmem:[#allocation3 + $0x2f8] sm:$0xff] }
  0xcb   :  { %v1898_v6 = vsel %vm1897_vm7, %v1896_v48, %v1891_v62  ;;  %v1910_v9 = vrot.slane %v1341_v63, %v3543_v46  ;;  %806 = vadd.xlane.f32.xlu1 %v805_v58  ;;  %v3597_v48 = vsub.s32 %v1948_v28, %v3466_v36  ;;  %v394_v61 = vmul.f32 %v3316_v1, %v131_v45 }
  0xcc   :  { %v1903_v10 = vrot.slane %v1340_v0, %v3549_v52  ;;  %803 = vadd.xlane.f32.xlu0 %v802_v59  ;;  %v597_v13 = vpop.xlane.xlu1 %596  ;;  %v823_v59 = vsel %vm561_vm0, %v392_v40, 0.0  ;;  %v393_v62 = vmul.f32 %v3316_v1, %v130_v47 }
  0xcd   :  { %v594_v14 = vpop.xlane.xlu0 %593  ;;  %v1343_v20 = vadd.f32 %v3472_v38, %v597_v13  ;;  %v829_v13 = vsel %vm561_vm0, %v394_v61, 0.0  ;;  %v139_v61 = vld [vmem:[#allocation3 + $0x308] sm:$0xff] }
  0xce   :  { %v1905_v19 = vsel %vm1904_vm8, %v1903_v10, %v1898_v6  ;;  %v1342_v21 = vadd.f32 %v3472_v38, %v594_v14  ;;  %v132_v6 = vld [vmem:[#allocation3 + $0x2d0] sm:$0xff]  ;;  %v826_v14 = vsel %vm561_vm0, %v393_v62, 0.0  ;;  %v138_v62 = vld [vmem:[#allocation3 + $0x300] sm:$0xff] }
  0xcf   :  { %v1912_v26 = vsel %vm1911_vm9, %v1910_v9, %v1905_v19  ;;  %v1924_v29 = vrot.slane %v1343_v20, %v3561_v7  ;;  %812 = vadd.xlane.f32.xlu1 %v811_v15  ;;  %v396_v15 = vmul.f32 %v3316_v1, %v133_v3  ;;  %v135_v20 = vld [vmem:[#allocation3 + $0x2e8] sm:$0xff] }
  0xd0   :  { %v1917_v30 = vrot.slane %v1342_v21, %v3567_v11  ;;  %809 = vadd.xlane.f32.xlu0 %v808_v16  ;;  %v603_v34 = vpop.xlane.xlu1 %602  ;;  %v395_v16 = vmul.f32 %v3316_v1, %v132_v6  ;;  %v134_v21 = vld [vmem:[#allocation3 + $0x2e0] sm:$0xff] }
  0xd1   :  { %v600_v35 = vpop.xlane.xlu0 %599  ;;  %v1345_v43 = vadd.f32 %v3472_v38, %v603_v34  ;;  %v398_v34 = vmul.f32 %v3316_v1, %v135_v20 }
  0xd2   :  { %v1919_v42 = vsel %vm4793_vm10, %v1917_v30, %v1912_v26  ;;  %v1344_v44 = vadd.f32 %v3472_v38, %v600_v35  ;;  %v835_v30 = vsel %vm561_vm0, %v396_v15, 0.0  ;;  %v832_v33 = vsel %vm561_vm0, %v395_v16, 0.0  ;;  %v141_v15 = vld [vmem:[#allocation3 + $0x318] sm:$0xff]  ;;  %v140_v16 = vld [vmem:[#allocation3 + $0x310] sm:$0xff] }
  0xd3   :  { %v1926_v31 = vsel %vm4787_vm11, %v1924_v29, %v1919_v42  ;;  %v1938_v51 = vrot.slane %v1345_v43, %v3579_v27  ;;  %818 = vadd.xlane.f32.xlu1 %v817_v37  ;;  %v397_v35 = vmul.f32 %v3316_v1, %v134_v21  ;;  %v136_v42 = vld [vmem:[#allocation3 + $0x2f0] sm:$0xff] }
  0xd4   :  { %v1931_v53 = vrot.slane %v1344_v44, %v3585_v32  ;;  %815 = vadd.xlane.f32.xlu0 %v814_v39  ;;  %v609_v56 = vpop.xlane.xlu1 %608 }
  0xd5   :  { %v606_v58 = vpop.xlane.xlu0 %605  ;;  %v1347_v0 = vadd.f32 %v3472_v38, %v609_v56  ;;  %v399_v56 = vmul.f32 %v3316_v1, %v136_v42 }
  0xd6   :  { %v1933_v63 = vsel %vm1932_vm12, %v1931_v53, %v1926_v31  ;;  %v1346_v2 = vadd.f32 %v3472_v38, %v606_v58  ;;  %v841_v31 = vsel %vm561_vm0, %v398_v34, 0.0  ;;  %v400_v53 = vmul.f32 %v3316_v1, %v137_v41 }
  0xd7   :  { %v1940_v36 = vsel %vm1939_vm13, %v1938_v51, %v1933_v63  ;;  %v1952_v8 = vrot.slane %v1347_v0, %v3597_v48  ;;  %824 = vadd.xlane.f32.xlu1 %v823_v59  ;;  %v838_v51 = vsel %vm561_vm0, %v397_v35, 0.0  ;;  %v143_v35 = vld [vmem:[#allocation3 + $0x328] sm:$0xff] }
  0xd8   :  { %v1945_v9 = vrot.slane %v1346_v2, %v3602_v55  ;;  %821 = vadd.xlane.f32.xlu0 %v820_v60  ;;  %v615_v10 = vpop.xlane.xlu1 %614  ;;  %v847_v1 = vsel %vm561_vm0, %v400_v53, 0.0 }
  0xd9   :  { %v612_v12 = vpop.xlane.xlu0 %611  ;;  %v1349_v18 = vadd.f32 %v3472_v38, %v615_v10 }
  0xda   :  { %v1947_v17 = vsel %vm1946_vm14, %v1945_v9, %v1940_v36  ;;  %v1348_v19 = vadd.f32 %v3472_v38, %v612_v12  ;;  %v844_v36 = vsel %vm561_vm0, %v399_v56, 0.0 }
  0xdb   :  { %v3622_v22 = vsel %vm1953_vm15, %v1952_v8, %v1947_v17  ;;  %v1962_v23 = vrot.slane %v1349_v18, %v3491_v54  ;;  %830 = vadd.xlane.f32.xlu1 %v829_v13  ;;  %v3647_v8 = vld [vmem:[#allocation6] ss:$0 sm:$0xff] }
  0xdc   :  { %v1958_v26 = vrot.slane %v1348_v19, %v3482_v49  ;;  %827 = vadd.xlane.f32.xlu0 %v826_v14  ;;  %v621_v28 = vpop.xlane.xlu1 %620  ;;  %v402_v9 = vmul.f32 %v3647_v8, %v139_v61  ;;  %v401_v10 = vmul.f32 %v3647_v8, %v138_v62 }
  0xdd   :  { %v618_v29 = vpop.xlane.xlu0 %617  ;;  %v1351_v39 = vadd.f32 %v3472_v38, %v621_v28  ;;  %v404_v28 = vmul.f32 %v3647_v8, %v141_v15 }
  0xde   :  { %v1963_v37 = vsel %vm1855_vm1, %v1962_v23, %v1958_v26  ;;  %v1350_v40 = vadd.f32 %v3472_v38, %v618_v29  ;;  %v853_v23 = vsel %vm561_vm0, %v402_v9, 0.0  ;;  %v850_v26 = vsel %vm561_vm0, %v401_v10, 0.0 }
  0xdf   :  { %v1972_v43 = vrot.slane %v1351_v39, %v3485_v50  ;;  %836 = vadd.xlane.f32.xlu1 %v835_v30  ;;  %v403_v29 = vmul.f32 %v3647_v8, %v140_v16 }
  0xe0   :  { %v1967_v44 = vrot.slane %v1350_v40, %v3496_v57  ;;  %833 = vadd.xlane.f32.xlu0 %v832_v33  ;;  %v627_v45 = vpop.xlane.xlu1 %626 }
  0xe1   :  { %v624_v47 = vpop.xlane.xlu0 %623  ;;  %v1353_v59 = vadd.f32 %v3472_v38, %v627_v45  ;;  %v856_v45 = vsel %vm561_vm0, %v403_v29, 0.0 }
  0xe2   :  { %v1968_v58 = vsel %vm1862_vm2, %v1967_v44, %v1963_v37  ;;  %v1352_v60 = vadd.f32 %v3472_v38, %v624_v47  ;;  %v142_v37 = vld [vmem:[#allocation3 + $0x320] sm:$0xff]  ;;  %v859_v44 = vsel %vm561_vm0, %v404_v28, 0.0  ;;  %v406_v47 = vmul.f32 %v3647_v8, %v143_v35 }
  0xe3   :  { %v1973_v63 = vsel %vm1869_vm3, %v1972_v43, %v1968_v58  ;;  %v1982_v0 = vrot.slane %v1353_v59, %v3504_v4  ;;  %842 = vadd.xlane.f32.xlu1 %v841_v31  ;;  %v405_v31 = vmul.f32 %v3647_v8, %v142_v37  ;;  %v145_v58 = vld [vmem:[#allocation3 + $0x338] sm:$0xff]  ;;  %v144_v59 = vld [vmem:[#allocation3 + $0x330] sm:$0xff] }
  0xe4   :  { %v1977_v2 = vrot.slane %v1352_v60, %v3507_v5  ;;  %839 = vadd.xlane.f32.xlu0 %v838_v51  ;;  %v633_v3 = vpop.xlane.xlu1 %632 }
  0xe5   :  { %v630_v6 = vpop.xlane.xlu0 %629  ;;  %v1355_v13 = vadd.f32 %v3472_v38, %v633_v3  ;;  %v862_v3 = vsel %vm561_vm0, %v405_v31, 0.0 }
  0xe6   :  { %v1978_v12 = vsel %vm1876_vm4, %v1977_v2, %v1973_v63  ;;  %v1354_v14 = vadd.f32 %v3472_v38, %v630_v6  ;;  %v865_v2 = vsel %vm561_vm0, %v406_v47, 0.0  ;;  %v408_v6 = vmul.f32 %v3647_v8, %v145_v58 }
  0xe7   :  { %v1983_v17 = vsel %vm1883_vm5, %v1982_v0, %v1978_v12  ;;  %v1992_v18 = vrot.slane %v1355_v13, %v3524_v24  ;;  %848 = vadd.xlane.f32.xlu1 %v847_v1  ;;  %v407_v1 = vmul.f32 %v3647_v8, %v144_v59  ;;  %v147_v12 = vld [vmem:[#allocation3 + $0x348] sm:$0xff]  ;;  %v146_v13 = vld [vmem:[#allocation3 + $0x340] sm:$0xff] }
  0xe8   :  { %v1987_v19 = vrot.slane %v1354_v14, %v3527_v25  ;;  %845 = vadd.xlane.f32.xlu0 %v844_v36  ;;  %v639_v20 = vpop.xlane.xlu1 %638 }
  0xe9   :  { %v636_v21 = vpop.xlane.xlu0 %635  ;;  %v1357_v33 = vadd.f32 %v3472_v38, %v639_v20  ;;  %v868_v20 = vsel %vm561_vm0, %v407_v1, 0.0 }
  0xea   :  { %v1988_v30 = vsel %vm1890_vm6, %v1987_v19, %v1983_v17  ;;  %v1356_v34 = vadd.f32 %v3472_v38, %v636_v21  ;;  %v871_v19 = vsel %vm561_vm0, %v408_v6, 0.0  ;;  %v410_v21 = vmul.f32 %v3647_v8, %v147_v12 }
  0xeb   :  { %v1993_v39 = vsel %vm1897_vm7, %v1992_v18, %v1988_v30  ;;  %v2002_v40 = vrot.slane %v1357_v33, %v3543_v46  ;;  %854 = vadd.xlane.f32.xlu1 %v853_v23  ;;  %v409_v23 = vmul.f32 %v3647_v8, %v146_v13  ;;  %v149_v30 = vld [vmem:[#allocation3 + $0x358] sm:$0xff]  ;;  %v148_v33 = vld [vmem:[#allocation3 + $0x350] sm:$0xff] }
  0xec   :  { %v1997_v41 = vrot.slane %v1356_v34, %v3549_v52  ;;  %851 = vadd.xlane.f32.xlu0 %v850_v26  ;;  %v645_v42 = vpop.xlane.xlu1 %644 }
  0xed   :  { %v642_v43 = vpop.xlane.xlu0 %641  ;;  %v1359_v53 = vadd.f32 %v3472_v38, %v645_v42  ;;  %v874_v42 = vsel %vm561_vm0, %v409_v23, 0.0  ;;  %v155_v23 = vld [vmem:[#allocation3 + $0x388] sm:$0xff] }
  0xee   :  { %v1998_v51 = vsel %vm1904_vm8, %v1997_v41, %v1993_v39  ;;  %v1358_v56 = vadd.f32 %v3472_v38, %v642_v43  ;;  %v877_v41 = vsel %vm561_vm0, %v410_v21, 0.0  ;;  %v412_v43 = vmul.f32 %v3647_v8, %v149_v30 }
  0xef   :  { %v2003_v60 = vsel %vm1911_vm9, %v2002_v40, %v1998_v51  ;;  %v2012_v61 = vrot.slane %v1359_v53, %v3561_v7  ;;  %860 = vadd.xlane.f32.xlu1 %v859_v44  ;;  %v411_v44 = vmul.f32 %v3647_v8, %v148_v33  ;;  %v151_v51 = vld [vmem:[#allocation3 + $0x368] sm:$0xff]  ;;  %v150_v53 = vld [vmem:[#allocation3 + $0x360] sm:$0xff] }
  0xf0   :  { %v2007_v62 = vrot.slane %v1358_v56, %v3567_v11  ;;  %857 = vadd.xlane.f32.xlu0 %v856_v45  ;;  %v651_v63 = vpop.xlane.xlu1 %650 }
  0xf1   :  { %v648_v0 = vpop.xlane.xlu0 %647  ;;  %v1361_v9 = vadd.f32 %v3472_v38, %v651_v63  ;;  %v883_v63 = vsel %vm561_vm0, %v412_v43, 0.0 }
  0xf2   :  { %v2008_v36 = vsel %vm4793_vm10, %v2007_v62, %v2003_v60  ;;  %v1360_v10 = vadd.f32 %v3472_v38, %v648_v0  ;;  %v880_v0 = vsel %vm561_vm0, %v411_v44, 0.0  ;;  %v157_v44 = vld [vmem:[#allocation3 + $0x398] sm:$0xff] }
  0xf3   :  { %v2013_v14 = vsel %vm4787_vm11, %v2012_v61, %v2008_v36  ;;  %v2022_v15 = vrot.slane %v1361_v9, %v3579_v27  ;;  %866 = vadd.xlane.f32.xlu1 %v865_v2  ;;  %vm4788_vm11 = vcmask 1041409   ;;  %v414_v2 = vmul.f32 %v3647_v8, %v151_v51  ;;  %v153_v36 = vld [vmem:[#allocation3 + $0x378] sm:$0xff]  ;;  %v152_v9 = vld [vmem:[#allocation3 + $0x370] sm:$0xff] }
  0xf4   :  { %v2017_v16 = vrot.slane %v1360_v10, %v3585_v32  ;;  %863 = vadd.xlane.f32.xlu0 %v862_v3  ;;  %v657_v17 = vpop.xlane.xlu1 %656  ;;  %v413_v3 = vmul.f32 %v3647_v8, %v150_v53 }
  0xf5   :  { %v654_v18 = vpop.xlane.xlu0 %653  ;;  %v1363_v28 = vadd.f32 %v3472_v38, %v657_v17  ;;  %v416_v17 = vmul.f32 %v3647_v8, %v153_v36 }
  0xf6   :  { %v2018_v26 = vsel %vm1932_vm12, %v2017_v16, %v2013_v14  ;;  %v1362_v29 = vadd.f32 %v3472_v38, %v654_v18  ;;  %v886_v16 = vsel %vm561_vm0, %v413_v3, 0.0  ;;  %v415_v18 = vmul.f32 %v3647_v8, %v152_v9  ;;  %v159_v3 = vld [vmem:[#allocation3 + $0x3a8] sm:$0xff] }
  0xf7   :  { %v2023_v34 = vsel %vm1939_vm13, %v2022_v15, %v2018_v26  ;;  %v2032_v35 = vrot.slane %v1363_v28, %v3597_v48  ;;  %872 = vadd.xlane.f32.xlu1 %v871_v19  ;;  %v889_v15 = vsel %vm561_vm0, %v414_v2, 0.0  ;;  %v154_v26 = vld [vmem:[#allocation3 + $0x380] sm:$0xff] }
  0xf8   :  { %v2027_v37 = vrot.slane %v1362_v29, %v3602_v55  ;;  %869 = vadd.xlane.f32.xlu0 %v868_v20  ;;  %v663_v39 = vpop.xlane.xlu1 %662 }
  0xf9   :  { %v660_v40 = vpop.xlane.xlu0 %659  ;;  %v1365_v47 = vadd.f32 %v3472_v38, %v663_v39  ;;  %v418_v39 = vmul.f32 %v3647_v8, %v155_v23 }
  0xfa   :  { %v2028_v45 = vsel %vm1946_vm14, %v2027_v37, %v2023_v34  ;;  %v1364_v31 = vadd.f32 %v3472_v38, %v660_v40  ;;  %v892_v37 = vsel %vm561_vm0, %v415_v18, 0.0  ;;  %v417_v40 = vmul.f32 %v3647_v8, %v154_v26 }
  0xfb   :  { %v2033_v56 = vsel %vm1953_vm15, %v2032_v35, %v2028_v45  ;;  %v2041_v59 = vrot.slane %v1365_v47, %v3491_v54  ;;  %878 = vadd.xlane.f32.xlu1 %v877_v41  ;;  %v895_v35 = vsel %vm561_vm0, %v416_v17, 0.0  ;;  %v156_v45 = vld [vmem:[#allocation3 + $0x390] sm:$0xff] }
  0xfc   :  { %v3707_v58 = vsel %vm4788_vm11, %v2033_v56, %v3622_v22  ;;  %v2037_v60 = vrot.slane %v1364_v31, %v3482_v49  ;;  %875 = vadd.xlane.f32.xlu0 %v874_v42  ;;  %v669_v61 = vpop.xlane.xlu1 %668  ;;  %vm4796_vm11 = vcmask 786112  }
  0xfd   :  { %v666_v62 = vpop.xlane.xlu0 %665  ;;  %v1367_v22 = vadd.f32 %v3472_v38, %v669_v61  ;;  %v420_v61 = vmul.f32 %v3647_v8, %v157_v44 }
  0xfe   :  { %v2042_v6 = vsel %vm1855_vm1, %v2041_v59, %v2037_v60  ;;  %v1366_v1 = vadd.f32 %v3472_v38, %v666_v62  ;;  %v901_v59 = vsel %vm561_vm0, %v418_v39, 0.0  ;;  %v898_v60 = vsel %vm561_vm0, %v417_v40, 0.0 }
  0xff   :  { %v2051_v10 = vrot.slane %v1367_v22, %v3485_v50  ;;  %884 = vadd.xlane.f32.xlu1 %v883_v63  ;;  %v419_v62 = vmul.f32 %v3647_v8, %v156_v45 }
 0x100   :  { %v2046_v12 = vrot.slane %v1366_v1, %v3496_v57  ;;  %881 = vadd.xlane.f32.xlu0 %v880_v0  ;;  %v675_v13 = vpop.xlane.xlu1 %674 }
 0x101   :  { %v672_v14 = vpop.xlane.xlu0 %671  ;;  %v1369_v20 = vadd.f32 %v3472_v38, %v675_v13  ;;  %v904_v13 = vsel %vm561_vm0, %v419_v62, 0.0 }
 0x102   :  { %v2047_v19 = vsel %vm1862_vm2, %v2046_v12, %v2042_v6  ;;  %v1368_v21 = vadd.f32 %v3472_v38, %v672_v14  ;;  %v158_v6 = vld [vmem:[#allocation3 + $0x3a0] sm:$0xff]  ;;  %v907_v12 = vsel %vm561_vm0, %v420_v61, 0.0  ;;  %v422_v14 = vmul.f32 %v3647_v8, %v159_v3 }
 0x103   :  { %v2052_v28 = vsel %vm1869_vm3, %v2051_v10, %v2047_v19  ;;  %v2061_v29 = vrot.slane %v1369_v20, %v3504_v4  ;;  %890 = vadd.xlane.f32.xlu1 %v889_v15  ;;  %v421_v15 = vmul.f32 %v3647_v8, %v158_v6  ;;  %v161_v19 = vld [vmem:[#allocation3 + $0x3b8] sm:$0xff]  ;;  %v160_v20 = vld [vmem:[#allocation3 + $0x3b0] sm:$0xff] }
 0x104   :  { %v2056_v30 = vrot.slane %v1368_v21, %v3507_v5  ;;  %887 = vadd.xlane.f32.xlu0 %v886_v16  ;;  %v681_v33 = vpop.xlane.xlu1 %680 }
 0x105   :  { %v678_v34 = vpop.xlane.xlu0 %677  ;;  %v1371_v42 = vadd.f32 %v3472_v38, %v681_v33  ;;  %v910_v33 = vsel %vm561_vm0, %v421_v15, 0.0 }
 0x106   :  { %v2057_v41 = vsel %vm1876_vm4, %v2056_v30, %v2052_v28  ;;  %v1370_v43 = vadd.f32 %v3472_v38, %v678_v34  ;;  %v913_v30 = vsel %vm561_vm0, %v422_v14, 0.0  ;;  %v424_v34 = vmul.f32 %v3647_v8, %v161_v19 }
 0x107   :  { %v2062_v47 = vsel %vm1883_vm5, %v2061_v29, %v2057_v41  ;;  %v2071_v31 = vrot.slane %v1371_v42, %v3524_v24  ;;  %896 = vadd.xlane.f32.xlu1 %v895_v35  ;;  %v423_v35 = vmul.f32 %v3647_v8, %v160_v20  ;;  %v163_v41 = vld [vmem:[#allocation3 + $0x3c8] sm:$0xff]  ;;  %v162_v42 = vld [vmem:[#allocation3 + $0x3c0] sm:$0xff] }
 0x108   :  { %v2066_v51 = vrot.slane %v1370_v43, %v3527_v25  ;;  %893 = vadd.xlane.f32.xlu0 %v892_v37  ;;  %v687_v53 = vpop.xlane.xlu1 %686 }
 0x109   :  { %v684_v56 = vpop.xlane.xlu0 %683  ;;  %v1373_v0 = vadd.f32 %v3472_v38, %v687_v53  ;;  %v916_v53 = vsel %vm561_vm0, %v423_v35, 0.0 }
 0x10a   :  { %v2067_v63 = vsel %vm1890_vm6, %v2066_v51, %v2062_v47  ;;  %v1372_v2 = vadd.f32 %v3472_v38, %v684_v56  ;;  %v919_v51 = vsel %vm561_vm0, %v424_v34, 0.0  ;;  %v426_v56 = vmul.f32 %v3647_v8, %v163_v41 }
 0x10b   :  { %v2072_v22 = vsel %vm1897_vm7, %v2071_v31, %v2067_v63  ;;  %v2081_v1 = vrot.slane %v1373_v0, %v3543_v46  ;;  %902 = vadd.xlane.f32.xlu1 %v901_v59  ;;  %v425_v59 = vmul.f32 %v3647_v8, %v162_v42  ;;  %v165_v63 = vld [vmem:[#allocation3 + $0x3d8] sm:$0xff]  ;;  %v164_v0 = vld [vmem:[#allocation3 + $0x3d0] sm:$0xff] }
 0x10c   :  { %v2076_v36 = vrot.slane %v1372_v2, %v3549_v52  ;;  %899 = vadd.xlane.f32.xlu0 %v898_v60  ;;  %v693_v9 = vpop.xlane.xlu1 %692 }
 0x10d   :  { %v690_v10 = vpop.xlane.xlu0 %689  ;;  %v1375_v17 = vadd.f32 %v3472_v38, %v693_v9  ;;  %v922_v9 = vsel %vm561_vm0, %v425_v59, 0.0  ;;  %v171_v59 = vld [vmem:[#allocation3 + $0x408] sm:$0xff] }
 0x10e   :  { %v2077_v16 = vsel %vm1904_vm8, %v2076_v36, %v2072_v22  ;;  %v1374_v18 = vadd.f32 %v3472_v38, %v690_v10  ;;  %v925_v36 = vsel %vm561_vm0, %v426_v56, 0.0  ;;  %v428_v10 = vmul.f32 %v3647_v8, %v165_v63 }
 0x10f   :  { %v2082_v21 = vsel %vm1911_vm9, %v2081_v1, %v2077_v16  ;;  %v2091_v23 = vrot.slane %v1375_v17, %v3561_v7  ;;  %908 = vadd.xlane.f32.xlu1 %v907_v12  ;;  %v427_v12 = vmul.f32 %v3647_v8, %v164_v0  ;;  %v167_v16 = vld [vmem:[#allocation3 + $0x3e8] sm:$0xff]  ;;  %v166_v17 = vld [vmem:[#allocation3 + $0x3e0] sm:$0xff] }
 0x110   :  { %v2086_v26 = vrot.slane %v1374_v18, %v3567_v11  ;;  %905 = vadd.xlane.f32.xlu0 %v904_v13  ;;  %v699_v28 = vpop.xlane.xlu1 %698 }
 0x111   :  { %v696_v29 = vpop.xlane.xlu0 %695  ;;  %v1377_v39 = vadd.f32 %v3472_v38, %v699_v28  ;;  %v931_v28 = vsel %vm561_vm0, %v428_v10, 0.0 }
 0x112   :  { %v2087_v37 = vsel %vm4793_vm10, %v2086_v26, %v2082_v21  ;;  %v1376_v40 = vadd.f32 %v3472_v38, %v696_v29  ;;  %v928_v29 = vsel %vm561_vm0, %v427_v12, 0.0  ;;  %v173_v12 = vld [vmem:[#allocation3 + $0x418] sm:$0xff] }
 0x113   :  { %v2092_v43 = vsel %vm4796_vm11, %v2091_v23, %v2087_v37  ;;  %v2101_v44 = vrot.slane %v1377_v39, %v3579_v27  ;;  %914 = vadd.xlane.f32.xlu1 %v913_v30  ;;  %vm4789_vm11 = vcmask 1042434   ;;  %v430_v30 = vmul.f32 %v3647_v8, %v167_v16  ;;  %v169_v37 = vld [vmem:[#allocation3 + $0x3f8] sm:$0xff]  ;;  %v168_v39 = vld [vmem:[#allocation3 + $0x3f0] sm:$0xff] }
 0x114   :  { %v2096_v45 = vrot.slane %v1376_v40, %v3585_v32  ;;  %911 = vadd.xlane.f32.xlu0 %v910_v33  ;;  %v705_v47 = vpop.xlane.xlu1 %704  ;;  %v429_v33 = vmul.f32 %v3647_v8, %v166_v17 }
 0x115   :  { %v702_v31 = vpop.xlane.xlu0 %701  ;;  %v1379_v61 = vadd.f32 %v3472_v38, %v705_v47  ;;  %v432_v47 = vmul.f32 %v3647_v8, %v169_v37 }
 0x116   :  { %v2097_v60 = vsel %vm1932_vm12, %v2096_v45, %v2092_v43  ;;  %v1378_v62 = vadd.f32 %v3472_v38, %v702_v31  ;;  %v934_v45 = vsel %vm561_vm0, %v429_v33, 0.0  ;;  %v431_v31 = vmul.f32 %v3647_v8, %v168_v39  ;;  %v175_v33 = vld [vmem:[#allocation3 + $0x428] sm:$0xff] }
 0x117   :  { %v2102_v2 = vsel %vm1939_vm13, %v2101_v44, %v2097_v60  ;;  %v2111_v3 = vrot.slane %v1379_v61, %v3597_v48  ;;  %920 = vadd.xlane.f32.xlu1 %v919_v51  ;;  %v937_v44 = vsel %vm561_vm0, %v430_v30, 0.0  ;;  %v170_v60 = vld [vmem:[#allocation3 + $0x400] sm:$0xff] }
 0x118   :  { %v2106_v6 = vrot.slane %v1378_v62, %v3602_v55  ;;  %917 = vadd.xlane.f32.xlu0 %v916_v53  ;;  %v711_v22 = vpop.xlane.xlu1 %710 }
 0x119   :  { %v708_v1 = vpop.xlane.xlu0 %707  ;;  %v1381_v14 = vadd.f32 %v3472_v38, %v711_v22  ;;  %v434_v22 = vmul.f32 %v3647_v8, %v171_v59 }
 0x11a   :  { %v2107_v13 = vsel %vm1946_vm14, %v2106_v6, %v2102_v2  ;;  %v1380_v15 = vadd.f32 %v3472_v38, %v708_v1  ;;  %v940_v6 = vsel %vm561_vm0, %v431_v31, 0.0  ;;  %v433_v1 = vmul.f32 %v3647_v8, %v170_v60 }
 0x11b   :  { %v2112_v18 = vsel %vm1953_vm15, %v2111_v3, %v2107_v13  ;;  %v2120_v20 = vrot.slane %v1381_v14, %v3491_v54  ;;  %926 = vadd.xlane.f32.xlu1 %v925_v36  ;;  %v943_v3 = vsel %vm561_vm0, %v432_v47, 0.0  ;;  %v172_v13 = vld [vmem:[#allocation3 + $0x410] sm:$0xff] }
 0x11c   :  { %v3790_v19 = vsel %vm4789_vm11, %v2112_v18, %v3707_v58  ;;  %v2116_v21 = vrot.slane %v1380_v15, %v3482_v49  ;;  %923 = vadd.xlane.f32.xlu0 %v922_v9  ;;  %v717_v23 = vpop.xlane.xlu1 %716  ;;  %vm4797_vm11 = vcmask 786112  }
 0x11d   :  { %v714_v26 = vpop.xlane.xlu0 %713  ;;  %v1383_v58 = vadd.f32 %v3472_v38, %v717_v23  ;;  %v436_v23 = vmul.f32 %v3647_v8, %v173_v12 }
 0x11e   :  { %v2121_v34 = vsel %vm1855_vm1, %v2120_v20, %v2116_v21  ;;  %v1382_v35 = vadd.f32 %v3472_v38, %v714_v26  ;;  %v949_v20 = vsel %vm561_vm0, %v434_v22, 0.0  ;;  %v946_v21 = vsel %vm561_vm0, %v433_v1, 0.0 }
 0x11f   :  { %v2130_v40 = vrot.slane %v1383_v58, %v3485_v50  ;;  %932 = vadd.xlane.f32.xlu1 %v931_v28  ;;  %v435_v26 = vmul.f32 %v3647_v8, %v172_v13 }
 0x120   :  { %v2125_v41 = vrot.slane %v1382_v35, %v3496_v57  ;;  %929 = vadd.xlane.f32.xlu0 %v928_v29  ;;  %v723_v42 = vpop.xlane.xlu1 %722 }
 0x121   :  { %v720_v43 = vpop.xlane.xlu0 %719  ;;  %v1385_v53 = vadd.f32 %v3472_v38, %v723_v42  ;;  %v952_v42 = vsel %vm561_vm0, %v435_v26, 0.0 }
 0x122   :  { %v2126_v51 = vsel %vm1862_vm2, %v2125_v41, %v2121_v34  ;;  %v1384_v56 = vadd.f32 %v3472_v38, %v720_v43  ;;  %v174_v34 = vld [vmem:[#allocation3 + $0x420] sm:$0xff]  ;;  %v955_v41 = vsel %vm561_vm0, %v436_v23, 0.0  ;;  %v438_v43 = vmul.f32 %v3647_v8, %v175_v33 }
 0x123   :  { %v2131_v61 = vsel %vm1869_vm3, %v2130_v40, %v2126_v51  ;;  %v2140_v62 = vrot.slane %v1385_v53, %v3504_v4  ;;  %938 = vadd.xlane.f32.xlu1 %v937_v44  ;;  %v437_v44 = vmul.f32 %v3647_v8, %v174_v34  ;;  %v177_v51 = vld [vmem:[#allocation3 + $0x438] sm:$0xff]  ;;  %v176_v53 = vld [vmem:[#allocation3 + $0x430] sm:$0xff] }
 0x124   :  { %v2135_v63 = vrot.slane %v1384_v56, %v3507_v5  ;;  %935 = vadd.xlane.f32.xlu0 %v934_v45  ;;  %v729_v0 = vpop.xlane.xlu1 %728 }
 0x125   :  { %v726_v2 = vpop.xlane.xlu0 %725  ;;  %v1387_v9 = vadd.f32 %v3472_v38, %v729_v0  ;;  %v958_v0 = vsel %vm561_vm0, %v437_v44, 0.0 }
 0x126   :  { %v2136_v36 = vsel %vm1876_vm4, %v2135_v63, %v2131_v61  ;;  %v1386_v10 = vadd.f32 %v3472_v38, %v726_v2  ;;  %v961_v63 = vsel %vm561_vm0, %v438_v43, 0.0  ;;  %v440_v2 = vmul.f32 %v3647_v8, %v177_v51 }
 0x127   :  { %v2141_v14 = vsel %vm1883_vm5, %v2140_v62, %v2136_v36  ;;  %v2150_v15 = vrot.slane %v1387_v9, %v3524_v24  ;;  %944 = vadd.xlane.f32.xlu1 %v943_v3  ;;  %v439_v3 = vmul.f32 %v3647_v8, %v176_v53  ;;  %v179_v36 = vld [vmem:[#allocation3 + $0x448] sm:$0xff]  ;;  %v178_v9 = vld [vmem:[#allocation3 + $0x440] sm:$0xff] }
 0x128   :  { %v2145_v16 = vrot.slane %v1386_v10, %v3527_v25  ;;  %941 = vadd.xlane.f32.xlu0 %v940_v6  ;;  %v735_v17 = vpop.xlane.xlu1 %734 }
 0x129   :  { %v732_v18 = vpop.xlane.xlu0 %731  ;;  %v1389_v29 = vadd.f32 %v3472_v38, %v735_v17  ;;  %v964_v17 = vsel %vm561_vm0, %v439_v3, 0.0 }
 0x12a   :  { %v2146_v28 = vsel %vm1890_vm6, %v2145_v16, %v2141_v14  ;;  %v1388_v30 = vadd.f32 %v3472_v38, %v732_v18  ;;  %v967_v16 = vsel %vm561_vm0, %v440_v2, 0.0  ;;  %v442_v18 = vmul.f32 %v3647_v8, %v179_v36 }
 0x12b   :  { %v2151_v58 = vsel %vm1897_vm7, %v2150_v15, %v2146_v28  ;;  %v2160_v35 = vrot.slane %v1389_v29, %v3543_v46  ;;  %950 = vadd.xlane.f32.xlu1 %v949_v20  ;;  %v441_v20 = vmul.f32 %v3647_v8, %v178_v9  ;;  %v181_v28 = vld [vmem:[#allocation3 + $0x458] sm:$0xff]  ;;  %v180_v29 = vld [vmem:[#allocation3 + $0x450] sm:$0xff] }
 0x12c   :  { %v2155_v37 = vrot.slane %v1388_v30, %v3549_v52  ;;  %947 = vadd.xlane.f32.xlu0 %v946_v21  ;;  %v741_v39 = vpop.xlane.xlu1 %740 }
 0x12d   :  { %v738_v40 = vpop.xlane.xlu0 %737  ;;  %v1391_v47 = vadd.f32 %v3472_v38, %v741_v39  ;;  %v970_v39 = vsel %vm561_vm0, %v441_v20, 0.0  ;;  %v187_v20 = vld [vmem:[#allocation3 + $0x488] sm:$0xff] }
 0x12e   :  { %v2156_v45 = vsel %vm1904_vm8, %v2155_v37, %v2151_v58  ;;  %v1390_v31 = vadd.f32 %v3472_v38, %v738_v40  ;;  %v973_v37 = vsel %vm561_vm0, %v442_v18, 0.0  ;;  %v444_v40 = vmul.f32 %v3647_v8, %v181_v28 }
 0x12f   :  { %v2161_v56 = vsel %vm1911_vm9, %v2160_v35, %v2156_v45  ;;  %v2170_v59 = vrot.slane %v1391_v47, %v3561_v7  ;;  %956 = vadd.xlane.f32.xlu1 %v955_v41  ;;  %v443_v41 = vmul.f32 %v3647_v8, %v180_v29  ;;  %v183_v45 = vld [vmem:[#allocation3 + $0x468] sm:$0xff]  ;;  %v182_v47 = vld [vmem:[#allocation3 + $0x460] sm:$0xff] }
 0x130   :  { %v2165_v60 = vrot.slane %v1390_v31, %v3567_v11  ;;  %953 = vadd.xlane.f32.xlu0 %v952_v42  ;;  %v747_v61 = vpop.xlane.xlu1 %746 }
 0x131   :  { %v744_v62 = vpop.xlane.xlu0 %743  ;;  %v1393_v22 = vadd.f32 %v3472_v38, %v747_v61  ;;  %v979_v61 = vsel %vm561_vm0, %v444_v40, 0.0 }
 0x132   :  { %v2166_v6 = vsel %vm4793_vm10, %v2165_v60, %v2161_v56  ;;  %v1392_v1 = vadd.f32 %v3472_v38, %v744_v62  ;;  %v976_v62 = vsel %vm561_vm0, %v443_v41, 0.0  ;;  %v189_v41 = vld [vmem:[#allocation3 + $0x498] sm:$0xff] }
 0x133   :  { %v2171_v10 = vsel %vm4797_vm11, %v2170_v59, %v2166_v6  ;;  %v2180_v12 = vrot.slane %v1393_v22, %v3579_v27  ;;  %962 = vadd.xlane.f32.xlu1 %v961_v63  ;;  %vm4790_vm11 = vcmask 1043459   ;;  %v446_v63 = vmul.f32 %v3647_v8, %v183_v45  ;;  %v185_v6 = vld [vmem:[#allocation3 + $0x478] sm:$0xff]  ;;  %v184_v22 = vld [vmem:[#allocation3 + $0x470] sm:$0xff] }
 0x134   :  { %v2175_v13 = vrot.slane %v1392_v1, %v3585_v32  ;;  %959 = vadd.xlane.f32.xlu0 %v958_v0  ;;  %v753_v14 = vpop.xlane.xlu1 %752  ;;  %v445_v0 = vmul.f32 %v3647_v8, %v182_v47 }
 0x135   :  { %v750_v15 = vpop.xlane.xlu0 %749  ;;  %v1395_v23 = vadd.f32 %v3472_v38, %v753_v14  ;;  %v448_v14 = vmul.f32 %v3647_v8, %v185_v6 }
 0x136   :  { %v2176_v21 = vsel %vm1932_vm12, %v2175_v13, %v2171_v10  ;;  %v1394_v26 = vadd.f32 %v3472_v38, %v750_v15  ;;  %v982_v13 = vsel %vm561_vm0, %v445_v0, 0.0  ;;  %v447_v15 = vmul.f32 %v3647_v8, %v184_v22  ;;  %v191_v0 = vld [vmem:[#allocation3 + $0x4a8] sm:$0xff] }
 0x137   :  { %v2181_v30 = vsel %vm1939_vm13, %v2180_v12, %v2176_v21  ;;  %v2190_v33 = vrot.slane %v1395_v23, %v3597_v48  ;;  %968 = vadd.xlane.f32.xlu1 %v967_v16  ;;  %v985_v12 = vsel %vm561_vm0, %v446_v63, 0.0  ;;  %v186_v21 = vld [vmem:[#allocation3 + $0x480] sm:$0xff] }
 0x138   :  { %v2185_v34 = vrot.slane %v1394_v26, %v3602_v55  ;;  %965 = vadd.xlane.f32.xlu0 %v964_v17  ;;  %v759_v58 = vpop.xlane.xlu1 %758 }
 0x139   :  { %v756_v35 = vpop.xlane.xlu0 %755  ;;  %v1397_v43 = vadd.f32 %v3472_v38, %v759_v58  ;;  %v450_v58 = vmul.f32 %v3647_v8, %v187_v20 }
 0x13a   :  { %v2186_v42 = vsel %vm1946_vm14, %v2185_v34, %v2181_v30  ;;  %v1396_v44 = vadd.f32 %v3472_v38, %v756_v35  ;;  %v988_v34 = vsel %vm561_vm0, %v447_v15, 0.0  ;;  %v449_v35 = vmul.f32 %v3647_v8, %v186_v21 }
 0x13b   :  { %v2191_v31 = vsel %vm1953_vm15, %v2190_v33, %v2186_v42  ;;  %v2199_v53 = vrot.slane %v1397_v43, %v3491_v54  ;;  %974 = vadd.xlane.f32.xlu1 %v973_v37  ;;  %v991_v33 = vsel %vm561_vm0, %v448_v14, 0.0  ;;  %v188_v42 = vld [vmem:[#allocation3 + $0x490] sm:$0xff] }
 0x13c   :  { %v3873_v51 = vsel %vm4790_vm11, %v2191_v31, %v3790_v19  ;;  %v2195_v56 = vrot.slane %v1396_v44, %v3482_v49  ;;  %971 = vadd.xlane.f32.xlu0 %v970_v39  ;;  %v765_v59 = vpop.xlane.xlu1 %764  ;;  %vm4798_vm11 = vcmask 786112  }
 0x13d   :  { %v762_v60 = vpop.xlane.xlu0 %761  ;;  %v1399_v19 = vadd.f32 %v3472_v38, %v765_v59  ;;  %v452_v59 = vmul.f32 %v3647_v8, %v189_v41 }
 0x13e   :  { %v2200_v2 = vsel %vm1855_vm1, %v2199_v53, %v2195_v56  ;;  %v1398_v3 = vadd.f32 %v3472_v38, %v762_v60  ;;  %v997_v53 = vsel %vm561_vm0, %v450_v58, 0.0  ;;  %v994_v56 = vsel %vm561_vm0, %v449_v35, 0.0 }
 0x13f   :  { %v2209_v1 = vrot.slane %v1399_v19, %v3485_v50  ;;  %980 = vadd.xlane.f32.xlu1 %v979_v61  ;;  %v451_v60 = vmul.f32 %v3647_v8, %v188_v42 }
 0x140   :  { %v2204_v36 = vrot.slane %v1398_v3, %v3496_v57  ;;  %977 = vadd.xlane.f32.xlu0 %v976_v62  ;;  %v771_v9 = vpop.xlane.xlu1 %770 }
 0x141   :  { %v768_v10 = vpop.xlane.xlu0 %767  ;;  %v1401_v17 = vadd.f32 %v3472_v38, %v771_v9  ;;  %v1000_v9 = vsel %vm561_vm0, %v451_v60, 0.0 }
 0x142   :  { %v2205_v16 = vsel %vm1862_vm2, %v2204_v36, %v2200_v2  ;;  %v1400_v18 = vadd.f32 %v3472_v38, %v768_v10  ;;  %v190_v2 = vld [vmem:[#allocation3 + $0x4a0] sm:$0xff]  ;;  %v1003_v36 = vsel %vm561_vm0, %v452_v59, 0.0  ;;  %v454_v10 = vmul.f32 %v3647_v8, %v191_v0 }
 0x143   :  { %v2210_v23 = vsel %vm1869_vm3, %v2209_v1, %v2205_v16  ;;  %v2219_v26 = vrot.slane %v1401_v17, %v3504_v4  ;;  %986 = vadd.xlane.f32.xlu1 %v985_v12  ;;  %v453_v12 = vmul.f32 %v3647_v8, %v190_v2  ;;  %v193_v16 = vld [vmem:[#allocation3 + $0x4b8] sm:$0xff]  ;;  %v192_v17 = vld [vmem:[#allocation3 + $0x4b0] sm:$0xff] }
 0x144   :  { %v2214_v28 = vrot.slane %v1400_v18, %v3507_v5  ;;  %983 = vadd.xlane.f32.xlu0 %v982_v13  ;;  %v777_v29 = vpop.xlane.xlu1 %776 }
 0x145   :  { %v774_v30 = vpop.xlane.xlu0 %773  ;;  %v1403_v39 = vadd.f32 %v3472_v38, %v777_v29  ;;  %v1006_v29 = vsel %vm561_vm0, %v453_v12, 0.0 }
 0x146   :  { %v2215_v37 = vsel %vm1876_vm4, %v2214_v28, %v2210_v23  ;;  %v1402_v40 = vadd.f32 %v3472_v38, %v774_v30  ;;  %v1009_v28 = vsel %vm561_vm0, %v454_v10, 0.0  ;;  %v456_v30 = vmul.f32 %v3647_v8, %v193_v16 }
 0x147   :  { %v2220_v43 = vsel %vm1883_vm5, %v2219_v26, %v2215_v37  ;;  %v2229_v44 = vrot.slane %v1403_v39, %v3524_v24  ;;  %992 = vadd.xlane.f32.xlu1 %v991_v33  ;;  %v455_v33 = vmul.f32 %v3647_v8, %v192_v17  ;;  %v194_v39 = vld [vmem:[#allocation3 + $0x4c0] sm:$0xff] }
 0x148   :  { %v2224_v45 = vrot.slane %v1402_v40, %v3527_v25  ;;  %989 = vadd.xlane.f32.xlu0 %v988_v34  ;;  %v783_v47 = vpop.xlane.xlu1 %782  ;;  %v195_v34 = vld [vmem:[#allocation3 + $0x4c8] sm:$0xff] }
 0x149   :  { %v780_v31 = vpop.xlane.xlu0 %779  ;;  %v1405_v62 = vadd.f32 %v3472_v38, %v783_v47  ;;  %v1015_v47 = vsel %vm561_vm0, %v456_v30, 0.0 }
 0x14a   :  { %v2225_v61 = vsel %vm1890_vm6, %v2224_v45, %v2220_v43  ;;  %v1404_v63 = vadd.f32 %v3472_v38, %v780_v31  ;;  %v458_v43 = vmul.f32 %v3647_v8, %v195_v34  ;;  %v1012_v31 = vsel %vm561_vm0, %v455_v33, 0.0 }
 0x14b   :  { %v2230_v19 = vsel %vm1897_vm7, %v2229_v44, %v2225_v61  ;;  %v2239_v3 = vrot.slane %v1405_v62, %v3543_v46  ;;  %998 = vadd.xlane.f32.xlu1 %v997_v53  ;;  %v457_v53 = vmul.f32 %v3647_v8, %v194_v39  ;;  %v197_v61 = vld [vmem:[#allocation3 + $0x4d8] sm:$0xff]  ;;  %v196_v62 = vld [vmem:[#allocation3 + $0x4d0] sm:$0xff] }
 0x14c   :  { %v2234_v6 = vrot.slane %v1404_v63, %v3549_v52  ;;  %995 = vadd.xlane.f32.xlu0 %v994_v56  ;;  %v789_v22 = vpop.xlane.xlu1 %788 }
 0x14d   :  { %v786_v1 = vpop.xlane.xlu0 %785  ;;  %v1407_v14 = vadd.f32 %v3472_v38, %v789_v22  ;;  %v1018_v22 = vsel %vm561_vm0, %v457_v53, 0.0  ;;  %v203_v53 = vld [vmem:[#allocation3 + $0x508] sm:$0xff] }
 0x14e   :  { %v2235_v13 = vsel %vm1904_vm8, %v2234_v6, %v2230_v19  ;;  %v1406_v15 = vadd.f32 %v3472_v38, %v786_v1  ;;  %v1021_v19 = vsel %vm561_vm0, %v458_v43, 0.0  ;;  %v460_v1 = vmul.f32 %v3647_v8, %v197_v61 }
 0x14f   :  { %v2240_v18 = vsel %vm1911_vm9, %v2239_v3, %v2235_v13  ;;  %v2249_v20 = vrot.slane %v1407_v14, %v3561_v7  ;;  %1004 = vadd.xlane.f32.xlu1 %v1003_v36  ;;  %v459_v36 = vmul.f32 %v3647_v8, %v196_v62  ;;  %v199_v13 = vld [vmem:[#allocation3 + $0x4e8] sm:$0xff]  ;;  %v198_v14 = vld [vmem:[#allocation3 + $0x4e0] sm:$0xff] }
 0x150   :  { %v2244_v21 = vrot.slane %v1406_v15, %v3567_v11  ;;  %1001 = vadd.xlane.f32.xlu0 %v1000_v9  ;;  %v795_v23 = vpop.xlane.xlu1 %794 }
 0x151   :  { %v792_v26 = vpop.xlane.xlu0 %791  ;;  %v1409_v35 = vadd.f32 %v3472_v38, %v795_v23  ;;  %v1027_v23 = vsel %vm561_vm0, %v460_v1, 0.0 }
 0x152   :  { %v2245_v58 = vsel %vm4793_vm10, %v2244_v21, %v2240_v18  ;;  %v1408_v37 = vadd.f32 %v3472_v38, %v792_v26  ;;  %v1024_v26 = vsel %vm561_vm0, %v459_v36, 0.0  ;;  %v205_v36 = vld [vmem:[#allocation3 + $0x518] sm:$0xff] }
 0x153   :  { %v2250_v40 = vsel %vm4798_vm11, %v2249_v20, %v2245_v58  ;;  %v2259_v41 = vrot.slane %v1409_v35, %v3579_v27  ;;  %1010 = vadd.xlane.f32.xlu1 %v1009_v28  ;;  %vm4791_vm11 = vcmask 1044484   ;;  %v462_v28 = vmul.f32 %v3647_v8, %v199_v13  ;;  %v201_v58 = vld [vmem:[#allocation3 + $0x4f8] sm:$0xff]  ;;  %v200_v35 = vld [vmem:[#allocation3 + $0x4f0] sm:$0xff] }
 0x154   :  { %v2254_v42 = vrot.slane %v1408_v37, %v3585_v32  ;;  %1007 = vadd.xlane.f32.xlu0 %v1006_v29  ;;  %v801_v44 = vpop.xlane.xlu1 %800  ;;  %v461_v29 = vmul.f32 %v3647_v8, %v198_v14  ;;  %v464_v43 = vmul.f32 %v3647_v8, %v201_v58 }
 0x155   :  { %v798_v45 = vpop.xlane.xlu0 %797  ;;  %v1411_v59 = vadd.f32 %v3472_v38, %v801_v44  ;;  %v463_v44 = vmul.f32 %v3647_v8, %v200_v35 }
 0x156   :  { %v2255_v56 = vsel %vm1932_vm12, %v2254_v42, %v2250_v40  ;;  %v1410_v60 = vadd.f32 %v3472_v38, %v798_v45  ;;  %v1030_v42 = vsel %vm561_vm0, %v461_v29, 0.0  ;;  %v1039_v8 = vsel %vm561_vm0, %v464_v43, 0.0  ;;  %v207_v29 = vld [vmem:[#allocation3 + $0x528] sm:$0xff] }
 0x157   :  { %v2260_v63 = vsel %vm1939_vm13, %v2259_v41, %v2255_v56  ;;  %v2269_v0 = vrot.slane %v1411_v59, %v3597_v48  ;;  %1016 = vadd.xlane.f32.xlu1 %v1015_v47  ;;  %v1033_v41 = vsel %vm561_vm0, %v462_v28, 0.0  ;;  %v202_v56 = vld [vmem:[#allocation3 + $0x500] sm:$0xff] }
 0x158   :  { %v2264_v2 = vrot.slane %v1410_v60, %v3602_v55  ;;  %1013 = vadd.xlane.f32.xlu0 %v1012_v31  ;;  %v807_v3 = vpop.xlane.xlu1 %806 }
 0x159   :  { %v804_v6 = vpop.xlane.xlu0 %803  ;;  %v1413_v10 = vadd.f32 %v3472_v38, %v807_v3 }
 0x15a   :  { %v2265_v9 = vsel %vm1946_vm14, %v2264_v2, %v2260_v63  ;;  %v1412_v12 = vadd.f32 %v3472_v38, %v804_v6  ;;  %v3981_v2 = vld [vmem:[#allocation6] ss:$0 sm:$0xff] }
 0x15b   :  { %v2270_v15 = vsel %vm1953_vm15, %v2269_v0, %v2265_v9  ;;  %v2278_v16 = vrot.slane %v1413_v10, %v3491_v54  ;;  %1022 = vadd.xlane.f32.xlu1 %v1021_v19  ;;  %v1036_v0 = vsel %vm561_vm0, %v463_v44, 0.0  ;;  %v466_v19 = vmul.f32 %v3981_v2, %v203_v53  ;;  %v204_v9 = vld [vmem:[#allocation3 + $0x510] sm:$0xff] }
 0x15c   :  { %v2274_v17 = vrot.slane %v1412_v12, %v3482_v49  ;;  %1019 = vadd.xlane.f32.xlu0 %v1018_v22  ;;  %v3958_v18 = vsel %vm4791_vm11, %v2270_v15, %v3873_v51  ;;  %v813_v20 = vpop.xlane.xlu1 %812  ;;  %v465_v3 = vmul.f32 %v3981_v2, %v202_v56  ;;  %vm4799_vm11 = vcmask 786112  }
 0x15d   :  { %v810_v21 = vpop.xlane.xlu0 %809  ;;  %v1415_v33 = vadd.f32 %v3472_v38, %v813_v20  ;;  %v468_v20 = vmul.f32 %v3981_v2, %v205_v36 }
 0x15e   :  { %v2279_v30 = vsel %vm1855_vm1, %v2278_v16, %v2274_v17  ;;  %v1414_v34 = vadd.f32 %v3472_v38, %v810_v21  ;;  %v1045_v16 = vsel %vm561_vm0, %v466_v19, 0.0  ;;  %v1042_v17 = vsel %vm561_vm0, %v465_v3, 0.0 }
 0x15f   :  { %v2288_v51 = vrot.slane %v1415_v33, %v3485_v50  ;;  %1028 = vadd.xlane.f32.xlu1 %v1027_v23  ;;  %v467_v21 = vmul.f32 %v3981_v2, %v204_v9 }
 0x160   :  { %v2283_v37 = vrot.slane %v1414_v34, %v3496_v57  ;;  %1025 = vadd.xlane.f32.xlu0 %v1024_v26  ;;  %v819_v39 = vpop.xlane.xlu1 %818 }
 0x161   :  { %v816_v40 = vpop.xlane.xlu0 %815  ;;  %v1417_v47 = vadd.f32 %v3472_v38, %v819_v39  ;;  %v1048_v39 = vsel %vm561_vm0, %v467_v21, 0.0 }
 0x162   :  { %v2284_v45 = vsel %vm1862_vm2, %v2283_v37, %v2279_v30  ;;  %v1416_v31 = vadd.f32 %v3472_v38, %v816_v40  ;;  %v206_v30 = vld [vmem:[#allocation3 + $0x520] sm:$0xff]  ;;  %v1051_v37 = vsel %vm561_vm0, %v468_v20, 0.0  ;;  %v470_v40 = vmul.f32 %v3981_v2, %v207_v29 }
 0x163   :  { %v2289_v59 = vsel %vm1869_vm3, %v2288_v51, %v2284_v45  ;;  %v2298_v60 = vrot.slane %v1417_v47, %v3504_v4  ;;  %1034 = vadd.xlane.f32.xlu1 %v1033_v41  ;;  %v469_v41 = vmul.f32 %v3981_v2, %v206_v30  ;;  %v209_v45 = vld [vmem:[#allocation3 + $0x538] sm:$0xff]  ;;  %v208_v47 = vld [vmem:[#allocation3 + $0x530] sm:$0xff] }
 0x164   :  { %v2293_v61 = vrot.slane %v1416_v31, %v3507_v5  ;;  %1031 = vadd.xlane.f32.xlu0 %v1030_v42  ;;  %v825_v62 = vpop.xlane.xlu1 %824 }
 0x165   :  { %v822_v63 = vpop.xlane.xlu0 %821  ;;  %v1419_v22 = vadd.f32 %v3472_v38, %v825_v62  ;;  %v1054_v62 = vsel %vm561_vm0, %v469_v41, 0.0  ;;  %v214_v41 = vld [vmem:[#allocation3 + $0x560] sm:$0xff] }
 0x166   :  { %v2294_v6 = vsel %vm1876_vm4, %v2293_v61, %v2289_v59  ;;  %v1418_v1 = vadd.f32 %v3472_v38, %v822_v63  ;;  %v1057_v61 = vsel %vm561_vm0, %v470_v40, 0.0  ;;  %v472_v63 = vmul.f32 %v3981_v2, %v209_v45  ;;  %v215_v40 = vld [vmem:[#allocation3 + $0x568] sm:$0xff] }
 0x167   :  { %v2299_v10 = vsel %vm1883_vm5, %v2298_v60, %v2294_v6  ;;  %v2308_v12 = vrot.slane %v1419_v22, %v3524_v24  ;;  %1040 = vadd.xlane.f32.xlu1 %v1039_v8  ;;  %v471_v8 = vmul.f32 %v3981_v2, %v208_v47  ;;  %v210_v22 = vld [vmem:[#allocation3 + $0x540] sm:$0xff] }
 0x168   :  { %v2303_v13 = vrot.slane %v1418_v1, %v3527_v25  ;;  %1037 = vadd.xlane.f32.xlu0 %v1036_v0  ;;  %v831_v14 = vpop.xlane.xlu1 %830  ;;  %v211_v0 = vld [vmem:[#allocation3 + $0x548] sm:$0xff] }
 0x169   :  { %v828_v15 = vpop.xlane.xlu0 %827  ;;  %v1421_v26 = vadd.f32 %v3472_v38, %v831_v14  ;;  %v1063_v14 = vsel %vm561_vm0, %v472_v63, 0.0 }
 0x16a   :  { %v2304_v23 = vsel %vm1890_vm6, %v2303_v13, %v2299_v10  ;;  %v1420_v28 = vadd.f32 %v3472_v38, %v828_v15  ;;  %v474_v10 = vmul.f32 %v3981_v2, %v211_v0  ;;  %v1060_v15 = vsel %vm561_vm0, %v471_v8, 0.0 }
 0x16b   :  { %v2309_v33 = vsel %vm1897_vm7, %v2308_v12, %v2304_v23  ;;  %v2318_v34 = vrot.slane %v1421_v26, %v3543_v46  ;;  %1046 = vadd.xlane.f32.xlu1 %v1045_v16  ;;  %v473_v16 = vmul.f32 %v3981_v2, %v210_v22  ;;  %v213_v23 = vld [vmem:[#allocation3 + $0x558] sm:$0xff]  ;;  %v212_v26 = vld [vmem:[#allocation3 + $0x550] sm:$0xff] }
 0x16c   :  { %v2313_v58 = vrot.slane %v1420_v28, %v3549_v52  ;;  %1043 = vadd.xlane.f32.xlu0 %v1042_v17  ;;  %v837_v35 = vpop.xlane.xlu1 %836 }
 0x16d   :  { %v834_v51 = vpop.xlane.xlu0 %833  ;;  %v1423_v43 = vadd.f32 %v3472_v38, %v837_v35  ;;  %v1066_v35 = vsel %vm561_vm0, %v473_v16, 0.0 }
 0x16e   :  { %v2314_v42 = vsel %vm1904_vm8, %v2313_v58, %v2309_v33  ;;  %v1422_v44 = vadd.f32 %v3472_v38, %v834_v51  ;;  %v1069_v33 = vsel %vm561_vm0, %v474_v10, 0.0  ;;  %v476_v51 = vmul.f32 %v3981_v2, %v213_v23  ;;  %v223_v23 = vld [vmem:[#allocation3 + $0x5a8] sm:$0xff] }
 0x16f   :  { %v2319_v31 = vsel %vm1911_vm9, %v2318_v34, %v2314_v42  ;;  %v2328_v53 = vrot.slane %v1423_v43, %v3561_v7  ;;  %1052 = vadd.xlane.f32.xlu1 %v1051_v37  ;;  %v475_v37 = vmul.f32 %v3981_v2, %v212_v26  ;;  %v222_v26 = vld [vmem:[#allocation3 + $0x5a0] sm:$0xff] }
 0x170   :  { %v2323_v56 = vrot.slane %v1422_v44, %v3567_v11  ;;  %1049 = vadd.xlane.f32.xlu0 %v1048_v39  ;;  %v843_v59 = vpop.xlane.xlu1 %842  ;;  %v1075_v47 = vsel %vm561_vm0, %v476_v51, 0.0  ;;  %v485_v51 = vmul.f32 %v3981_v2, %v222_v26 }
 0x171   :  { %v840_v60 = vpop.xlane.xlu0 %839  ;;  %v1425_v3 = vadd.f32 %v3472_v38, %v843_v59  ;;  %v217_v59 = vld [vmem:[#allocation3 + $0x578] sm:$0xff] }
 0x172   :  { %v2324_v19 = vsel %vm4793_vm10, %v2323_v56, %v2319_v31  ;;  %v1424_v6 = vadd.f32 %v3472_v38, %v840_v60  ;;  %v1072_v31 = vsel %vm561_vm0, %v475_v37, 0.0  ;;  %v477_v56 = vmul.f32 %v3981_v2, %v214_v41  ;;  %v216_v60 = vld [vmem:[#allocation3 + $0x570] sm:$0xff]  ;;  %v225_v37 = vld [vmem:[#allocation3 + $0x5b8] sm:$0xff] }
 0x173   :  { %v2329_v1 = vsel %vm4799_vm11, %v2328_v53, %v2324_v19  ;;  %v2338_v36 = vrot.slane %v1425_v3, %v3579_v27  ;;  %1058 = vadd.xlane.f32.xlu1 %v1057_v61  ;;  %vm4792_vm11 = vcmask 1045509   ;;  %v478_v53 = vmul.f32 %v3981_v2, %v215_v40  ;;  %v219_v19 = vld [vmem:[#allocation3 + $0x588] sm:$0xff]  ;;  %v218_v3 = vld [vmem:[#allocation3 + $0x580] sm:$0xff] }
 0x174   :  { %v2333_v9 = vrot.slane %v1424_v6, %v3585_v32  ;;  %1055 = vadd.xlane.f32.xlu0 %v1054_v62  ;;  %v849_v12 = vpop.xlane.xlu1 %848  ;;  %v1078_v63 = vsel %vm561_vm0, %v477_v56, 0.0  ;;  %v480_v8 = vmul.f32 %v3981_v2, %v217_v59  ;;  %v479_v0 = vmul.f32 %v3981_v2, %v216_v60  ;;  %v227_v60 = vld [vmem:[#allocation3 + $0x5c8] sm:$0xff] }
 0x175   :  { %v846_v13 = vpop.xlane.xlu0 %845  ;;  %v1427_v20 = vadd.f32 %v3472_v38, %v849_v12  ;;  %v481_v10 = vmul.f32 %v3981_v2, %v218_v3  ;;  %v221_v12 = vld [vmem:[#allocation3 + $0x598] sm:$0xff]  ;;  %v488_v40 = vmul.f32 %v3981_v2, %v225_v37  ;;  %v1102_v59 = vsel %vm561_vm0, %v485_v51, 0.0  ;;  %v230_v37 = vld [vmem:[#allocation3 + $0x5e0] sm:$0xff] }
 0x176   :  { %v2334_v17 = vsel %vm1932_vm12, %v2333_v9, %v2329_v1  ;;  %v1426_v21 = vadd.f32 %v3472_v38, %v846_v13  ;;  %v1087_v1 = vsel %vm561_vm0, %v480_v8, 0.0  ;;  %v482_v9 = vmul.f32 %v3981_v2, %v219_v19  ;;  %v220_v13 = vld [vmem:[#allocation3 + $0x590] sm:$0xff] }
 0x177   :  { %v2339_v28 = vsel %vm1939_vm13, %v2338_v36, %v2334_v17  ;;  %v2348_v29 = vrot.slane %v1427_v20, %v3597_v48  ;;  %1064 = vadd.xlane.f32.xlu1 %v1063_v14  ;;  %v1084_v36 = vsel %vm561_vm0, %v479_v0, 0.0  ;;  %v1090_v17 = vsel %vm561_vm0, %v481_v10, 0.0  ;;  %v228_v10 = vld [vmem:[#allocation3 + $0x5d0] sm:$0xff] }
 0x178   :  { %v2343_v30 = vrot.slane %v1426_v21, %v3602_v55  ;;  %1061 = vadd.xlane.f32.xlu0 %v1060_v15  ;;  %v4032_v34 = vpop.xlane.xlu1 %854  ;;  %v1093_v16 = vsel %vm561_vm0, %v482_v9, 0.0  ;;  %v484_v20 = vmul.f32 %v3981_v2, %v221_v12  ;;  %v483_v21 = vmul.f32 %v3981_v2, %v220_v13  ;;  %v229_v9 = vld [vmem:[#allocation3 + $0x5d8] sm:$0xff] }
 0x179   :  { %v4034_v58 = vpop.xlane.xlu0 %851  ;;  %v1111_v8 = vsel %vm561_vm0, %v488_v40, 0.0 }
 0x17a   :  { %v2344_v39 = vsel %vm1946_vm14, %v2343_v30, %v2339_v28  ;;  %v1099_v30 = vsel %vm561_vm0, %v484_v20, 0.0 }
 0x17b   :  { %v2349_v42 = vsel %vm1953_vm15, %v2348_v29, %v2344_v39  ;;  %1070 = vadd.xlane.f32.xlu1 %v1069_v33  ;;  %v1096_v33 = vsel %vm561_vm0, %v483_v21, 0.0  ;;  %v224_v39 = vld [vmem:[#allocation3 + $0x5b0] sm:$0xff] }
 0x17c   :  { %1067 = vadd.xlane.f32.xlu0 %v1066_v35  ;;  %v4043_v43 = vsel %vm4792_vm11, %v2349_v42, %v3958_v18  ;;  %v4045_v44 = vpop.xlane.xlu1 %860  ;;  %v1081_v18 = vsel %vm561_vm0, %v478_v53, 0.0  ;;  %v486_v35 = vmul.f32 %v3981_v2, %v223_v23  ;;  %v487_v41 = vmul.f32 %v3981_v2, %v224_v39 }
 0x17d   :  { %v858_v45 = vpop.xlane.xlu0 %857  ;;  %v1429_v42 = vadd.f32 %v3472_v38, %v4032_v34  ;;  %vm4800_vm11 = vcmask 786112  }
 0x17e   :  { %v1105_v56 = vsel %vm561_vm0, %v486_v35, 0.0  ;;  %v1108_v34 = vsel %vm561_vm0, %v487_v41, 0.0 }
 0x17f   :  { %1076 = vadd.xlane.f32.xlu1 %v1075_v47  ;;  %v1428_v47 = vadd.f32 %v3472_v38, %v4034_v58  ;;  %v2357_v58 = vrot.slane %v1429_v42, %v3491_v54 }
 0x180   :  { %1073 = vadd.xlane.f32.xlu0 %v1072_v31  ;;  %v4051_v61 = vpop.xlane.xlu1 %866 }
 0x181   :  { %v4053_v62 = vpop.xlane.xlu0 %863  ;;  %v2353_v0 = vrot.slane %v1428_v47, %v3482_v49 }
 0x182   :  { %v1432_v13 = vadd.f32 %v3472_v38, %v4053_v62  ;;  %v1433_v62 = vadd.f32 %v3472_v38, %v4051_v61 }
 0x183   :  { %1082 = vadd.xlane.f32.xlu1 %v1081_v18  ;;  %v226_v18 = vld [vmem:[#allocation3 + $0x5c0] sm:$0xff] }
 0x184   :  { %1079 = vadd.xlane.f32.xlu0 %v1078_v63  ;;  %v4059_v6 = vpop.xlane.xlu1 %872  ;;  %v1430_v63 = vadd.f32 %v3472_v38, %v858_v45  ;;  %v1431_v45 = vadd.f32 %v3472_v38, %v4045_v44  ;;  %v491_v44 = vmul.f32 %v3981_v2, %v228_v10  ;;  %v2372_v40 = vrot.slane %v1432_v13, %v3507_v5 }
 0x185   :  { %v4061_v22 = vpop.xlane.xlu0 %869 }
 0x186   :  { %v2362_v12 = vrot.slane %v1430_v63, %v3496_v57  ;;  %v1434_v41 = vadd.f32 %v3472_v38, %v4061_v22  ;;  %v493_v63 = vmul.f32 %v3981_v2, %v230_v37 }
 0x187   :  { %1088 = vadd.xlane.f32.xlu1 %v1087_v1  ;;  %v490_v1 = vmul.f32 %v3981_v2, %v227_v60 }
 0x188   :  { %1085 = vadd.xlane.f32.xlu0 %v1084_v36  ;;  %v4067_v14 = vpop.xlane.xlu1 %878  ;;  %v489_v36 = vmul.f32 %v3981_v2, %v226_v18  ;;  %v1120_v18 = vsel %vm561_vm0, %v491_v44, 0.0 }
 0x189   :  { %v4069_v15 = vpop.xlane.xlu0 %875  ;;  %v1117_v23 = vsel %vm561_vm0, %v490_v1, 0.0  ;;  %v232_v1 = vld [vmem:[#allocation3 + $0x5f0] sm:$0xff] }
 0x18a   :  { %v1114_v26 = vsel %vm561_vm0, %v489_v36, 0.0  ;;  %v1436_v10 = vadd.f32 %v3472_v38, %v4069_v15  ;;  %v495_v44 = vmul.f32 %v3981_v2, %v232_v1 }
 0x18b   :  { %1094 = vadd.xlane.f32.xlu1 %v1093_v16  ;;  %v492_v16 = vmul.f32 %v3981_v2, %v229_v9  ;;  %v1435_v9 = vadd.f32 %v3472_v38, %v4059_v6 }
 0x18c   :  { %1091 = vadd.xlane.f32.xlu0 %v1090_v17  ;;  %v4075_v28 = vpop.xlane.xlu1 %884  ;;  %v2358_v17 = vsel %vm1855_vm1, %v2357_v58, %v2353_v0 }
 0x18d   :  { %v4077_v29 = vpop.xlane.xlu0 %881  ;;  %v2363_v39 = vsel %vm1862_vm2, %v2362_v12, %v2358_v17  ;;  %v1123_v42 = vsel %vm561_vm0, %v492_v16, 0.0  ;;  %v235_v17 = vld [vmem:[#allocation3 + $0x608] sm:$0xff] }
 0x18f   :  { %1100 = vadd.xlane.f32.xlu1 %v1099_v30  ;;  %v231_v30 = vld [vmem:[#allocation3 + $0x5e8] sm:$0xff] }
 0x190   :  { %1097 = vadd.xlane.f32.xlu0 %v1096_v33  ;;  %v4089_v31 = vpop.xlane.xlu1 %890  ;;  %v2367_v33 = vrot.slane %v1431_v45, %v3485_v50  ;;  %v494_v47 = vmul.f32 %v3981_v2, %v231_v30  ;;  %v2382_v45 = vrot.slane %v1434_v41, %v3527_v25  ;;  %v237_v41 = vld [vmem:[#allocation3 + $0x618] sm:$0xff] }
 0x191   :  { %v4091_v53 = vpop.xlane.xlu0 %887 }
 0x192   :  { %v2368_v22 = vsel %vm1869_vm3, %v2367_v33, %v2363_v39  ;;  %v1129_v13 = vsel %vm561_vm0, %v494_v47, 0.0  ;;  %v1437_v39 = vadd.f32 %v3472_v38, %v4067_v14  ;;  %v1438_v47 = vadd.f32 %v3472_v38, %v4077_v29 }
 0x193   :  { %1106 = vadd.xlane.f32.xlu1 %v1105_v56  ;;  %v2373_v36 = vsel %vm1876_vm4, %v2372_v40, %v2368_v22  ;;  %v498_v40 = vmul.f32 %v3981_v2, %v235_v17  ;;  %v239_v17 = vld [vmem:[#allocation3 + $0x628] sm:$0xff] }
 0x194   :  { %1103 = vadd.xlane.f32.xlu0 %v1102_v59  ;;  %v4100_v19 = vpop.xlane.xlu1 %896  ;;  %v2397_v1 = vrot.slane %v1437_v39, %v3543_v46 }
 0x195   :  { %v4102_v3 = vpop.xlane.xlu0 %893 }
 0x197   :  { %1112 = vadd.xlane.f32.xlu1 %v1111_v8  ;;  %v233_v8 = vld [vmem:[#allocation3 + $0x5f8] sm:$0xff] }
 0x198   :  { %1109 = vadd.xlane.f32.xlu0 %v1108_v34  ;;  %v903_v20 = vpop.xlane.xlu1 %902  ;;  %v2377_v34 = vrot.slane %v1433_v62, %v3504_v4  ;;  %v496_v16 = vmul.f32 %v3981_v2, %v233_v8  ;;  %v1132_v8 = vsel %vm561_vm0, %v495_v44, 0.0 }
 0x199   :  { %v900_v21 = vpop.xlane.xlu0 %899  ;;  %v1445_v35 = vadd.f32 %v3472_v38, %v903_v20 }
 0x19a   :  { %v1444_v51 = vadd.f32 %v3472_v38, %v900_v21  ;;  %v2378_v15 = vsel %vm1883_vm5, %v2377_v34, %v2373_v36 }
 0x19b   :  { %1118 = vadd.xlane.f32.xlu1 %v1117_v23  ;;  %v2436_v61 = vrot.slane %v1445_v35, %v3491_v54  ;;  %v234_v35 = vld [vmem:[#allocation3 + $0x600] sm:$0xff]  ;;  %v2383_v37 = vsel %vm1890_vm6, %v2382_v45, %v2378_v15 }
 0x19c   :  { %1115 = vadd.xlane.f32.xlu0 %v1114_v26  ;;  %v2432_v56 = vrot.slane %v1444_v51, %v3482_v49  ;;  %v909_v59 = vpop.xlane.xlu1 %908  ;;  %v1126_v26 = vsel %vm561_vm0, %v493_v63, 0.0  ;;  %v2387_v51 = vrot.slane %v1435_v9, %v3524_v24  ;;  %v497_v34 = vmul.f32 %v3981_v2, %v234_v35 }
 0x19d   :  { %v906_v60 = vpop.xlane.xlu0 %905  ;;  %v1447_v58 = vadd.f32 %v3472_v38, %v909_v59  ;;  %v236_v59 = vld [vmem:[#allocation3 + $0x610] sm:$0xff]  ;;  %v1439_v9 = vadd.f32 %v3472_v38, %v4075_v28 }
 0x19e   :  { %v1446_v0 = vadd.f32 %v3472_v38, %v906_v60  ;;  %v2437_v20 = vsel %vm1855_vm1, %v2436_v61, %v2432_v56  ;;  %v1135_v56 = vsel %vm561_vm0, %v496_v16, 0.0  ;;  %v2388_v36 = vsel %vm1897_vm7, %v2387_v51, %v2383_v37 }
 0x19f   :  { %1124 = vadd.xlane.f32.xlu1 %v1123_v42  ;;  %v2446_v21 = vrot.slane %v1447_v58, %v3485_v50  ;;  %v2392_v42 = vrot.slane %v1436_v10, %v3549_v52  ;;  %v499_v45 = vmul.f32 %v3981_v2, %v236_v59  ;;  %v1141_v16 = vsel %vm561_vm0, %v498_v40, 0.0 }
 0x1a0   :  { %v2441_v12 = vrot.slane %v1446_v0, %v3496_v57  ;;  %1121 = vadd.xlane.f32.xlu0 %v1120_v18  ;;  %v915_v23 = vpop.xlane.xlu1 %914  ;;  %v500_v0 = vmul.f32 %v3981_v2, %v237_v41  ;;  %v1138_v44 = vsel %vm561_vm0, %v497_v34, 0.0  ;;  %v2407_v35 = vrot.slane %v1439_v9, %v3561_v7 }
 0x1a1   :  { %v912_v6 = vpop.xlane.xlu0 %911  ;;  %v1449_v33 = vadd.f32 %v3472_v38, %v915_v23  ;;  %v2393_v10 = vsel %vm1904_vm8, %v2392_v42, %v2388_v36  ;;  %v502_v51 = vmul.f32 %v3981_v2, %v239_v17  ;;  %v1441_v40 = vadd.f32 %v3472_v38, %v4089_v31 }
 0x1a2   :  { %v2442_v30 = vsel %vm1862_vm2, %v2441_v12, %v2437_v20  ;;  %v1448_v62 = vadd.f32 %v3472_v38, %v912_v6  ;;  %v2402_v12 = vrot.slane %v1438_v47, %v3567_v11  ;;  %v238_v20 = vld [vmem:[#allocation3 + $0x620] sm:$0xff]  ;;  %v1144_v42 = vsel %vm561_vm0, %v499_v45, 0.0  ;;  %v241_v47 = vld [vmem:[#allocation3 + $0x638] sm:$0xff]  ;;  %v243_v45 = vld [vmem:[#allocation3 + $0x648] sm:$0xff] }
 0x1a3   :  { %1130 = vadd.xlane.f32.xlu1 %v1129_v13  ;;  %v2456_v60 = vrot.slane %v1449_v33, %v3504_v4  ;;  %v2447_v18 = vsel %vm1869_vm3, %v2446_v21, %v2442_v30  ;;  %v1440_v21 = vadd.f32 %v3472_v38, %v4091_v53  ;;  %v2398_v53 = vsel %vm1911_vm9, %v2397_v1, %v2393_v10  ;;  %v242_v10 = vld [vmem:[#allocation3 + $0x640] sm:$0xff] }
 0x1a4   :  { %v2451_v61 = vrot.slane %v1448_v62, %v3507_v5  ;;  %1127 = vadd.xlane.f32.xlu0 %v1126_v26  ;;  %v921_v14 = vpop.xlane.xlu1 %920  ;;  %v1147_v62 = vsel %vm561_vm0, %v500_v0, 0.0  ;;  %v501_v37 = vmul.f32 %v3981_v2, %v238_v20  ;;  %v2403_v39 = vsel %vm4793_vm10, %v2402_v12, %v2398_v53 }
 0x1a5   :  { %v918_v63 = vpop.xlane.xlu0 %917  ;;  %v1451_v29 = vadd.f32 %v3472_v38, %v921_v14  ;;  %v1442_v59 = vadd.f32 %v3472_v38, %v4102_v3  ;;  %v2417_v0 = vrot.slane %v1441_v40, %v3579_v27  ;;  %v1443_v1 = vadd.f32 %v3472_v38, %v4100_v19 }
 0x1a6   :  { %v2452_v22 = vsel %vm1876_vm4, %v2451_v61, %v2447_v18  ;;  %v1450_v58 = vadd.f32 %v3472_v38, %v918_v63  ;;  %v240_v61 = vld [vmem:[#allocation3 + $0x630] sm:$0xff]  ;;  %v1150_v9 = vsel %vm561_vm0, %v501_v37, 0.0 }
 0x1a7   :  { %1136 = vadd.xlane.f32.xlu1 %v1135_v56  ;;  %v2466_v23 = vrot.slane %v1451_v29, %v3524_v24  ;;  %v2457_v28 = vsel %vm1883_vm5, %v2456_v60, %v2452_v22  ;;  %v2412_v56 = vrot.slane %v1440_v21, %v3585_v32  ;;  %v2408_v22 = vsel %vm4800_vm11, %v2407_v35, %v2403_v39 }
 0x1a8   :  { %v2461_v13 = vrot.slane %v1450_v58, %v3527_v25  ;;  %1133 = vadd.xlane.f32.xlu0 %v1132_v8  ;;  %v927_v6 = vpop.xlane.xlu1 %926  ;;  %v1153_v29 = vsel %vm561_vm0, %v502_v51, 0.0  ;;  %v504_v58 = vmul.f32 %v3981_v2, %v241_v47  ;;  %v503_v3 = vmul.f32 %v3981_v2, %v240_v61  ;;  %v245_v47 = vld [vmem:[#allocation3 + $0x658] sm:$0xff]  ;;  %v244_v61 = vld [vmem:[#allocation3 + $0x650] sm:$0xff] }
 0x1a9   :  { %v924_v26 = vpop.xlane.xlu0 %923  ;;  %v1453_v30 = vadd.f32 %v3472_v38, %v927_v6  ;;  %v2413_v12 = vsel %vm1932_vm12, %v2412_v56, %v2408_v22  ;;  %v506_v6 = vmul.f32 %v3981_v2, %v243_v45  ;;  %v507_v22 = vmul.f32 %v3981_v2, %v244_v61 }
 0x1aa   :  { %v2462_v15 = vsel %vm1890_vm6, %v2461_v13, %v2457_v28  ;;  %v1452_v33 = vadd.f32 %v3472_v38, %v924_v26  ;;  %v2422_v13 = vrot.slane %v1442_v59, %v3602_v55  ;;  %v505_v26 = vmul.f32 %v3981_v2, %v242_v10 }
 0x1ab   :  { %1142 = vadd.xlane.f32.xlu1 %v1141_v16  ;;  %v2476_v60 = vrot.slane %v1453_v30, %v3543_v46  ;;  %v2467_v18 = vsel %vm1897_vm7, %v2466_v23, %v2462_v15  ;;  %v2418_v15 = vsel %vm1939_vm13, %v2417_v0, %v2413_v12  ;;  %v1156_v39 = vsel %vm561_vm0, %v503_v3, 0.0  ;;  %v247_v0 = vld [vmem:[#allocation3 + $0x668] sm:$0xff] }
 0x1ac   :  { %v2471_v41 = vrot.slane %v1452_v33, %v3549_v52  ;;  %1139 = vadd.xlane.f32.xlu0 %v1138_v44  ;;  %v933_v14 = vpop.xlane.xlu1 %932  ;;  %v2427_v44 = vrot.slane %v1443_v1, %v3597_v48  ;;  %v1159_v33 = vsel %vm561_vm0, %v504_v58, 0.0  ;;  %v1165_v56 = vsel %vm561_vm0, %v506_v6, 0.0  ;;  %v246_v1 = vld [vmem:[#allocation3 + $0x660] sm:$0xff]  ;;  %v249_v6 = vld [vmem:[#allocation3 + $0x678] sm:$0xff] }
 0x1ad   :  { %v930_v63 = vpop.xlane.xlu0 %929  ;;  %v1455_v8 = vadd.f32 %v3472_v38, %v933_v14 }
 0x1ae   :  { %v2472_v31 = vsel %vm1904_vm8, %v2471_v41, %v2467_v18  ;;  %v1454_v34 = vadd.f32 %v3472_v38, %v930_v63  ;;  %v1162_v18 = vsel %vm561_vm0, %v505_v26, 0.0  ;;  %v248_v26 = vld [vmem:[#allocation3 + $0x670] sm:$0xff] }
 0x1af   :  { %1148 = vadd.xlane.f32.xlu1 %v1147_v62  ;;  %v2486_v16 = vrot.slane %v1455_v8, %v3561_v7  ;;  %v2477_v17 = vsel %vm1911_vm9, %v2476_v60, %v2472_v31  ;;  %v2423_v62 = vsel %vm1946_vm14, %v2422_v13, %v2418_v15 }
 0x1b0   :  { %v2481_v36 = vrot.slane %v1454_v34, %v3567_v11  ;;  %1145 = vadd.xlane.f32.xlu0 %v1144_v42  ;;  %v939_v20 = vpop.xlane.xlu1 %938  ;;  %v2428_v14 = vsel %vm1953_vm15, %v2427_v44, %v2423_v62  ;;  %v508_v34 = vmul.f32 %v3981_v2, %v245_v47 }
 0x1b1   :  { %v936_v21 = vpop.xlane.xlu0 %935  ;;  %v1457_v23 = vadd.f32 %v3472_v38, %v939_v20  ;;  %v1168_v20 = vsel %vm561_vm0, %v507_v22, 0.0 }
 0x1b2   :  { %v2482_v19 = vsel %vm4793_vm10, %v2481_v36, %v2477_v17  ;;  %v1456_v28 = vadd.f32 %v3472_v38, %v936_v21  ;;  %vm4795_vm10 = vcmask 1046534   ;;  %v1171_v17 = vsel %vm561_vm0, %v508_v34, 0.0 }
 0x1b3   :  { %1154 = vadd.xlane.f32.xlu1 %v1153_v29  ;;  %v2496_v35 = vrot.slane %v1457_v23, %v3579_v27  ;;  %v2487_v53 = vsel %vm4800_vm11, %v2486_v16, %v2482_v19  ;;  %vm4794_vm11 = vcmask 1047559   ;;  %v510_v21 = vmul.f32 %v3981_v2, %v247_v0 }
 0x1b4   :  { %v2491_v30 = vrot.slane %v1456_v28, %v3585_v32  ;;  %1151 = vadd.xlane.f32.xlu0 %v1150_v9  ;;  %v945_v51 = vpop.xlane.xlu1 %944  ;;  %v3151_v9 = vsel %vm4795_vm10, %v2428_v14, %v4043_v43  ;;  %v509_v19 = vmul.f32 %v3981_v2, %v246_v1  ;;  %vm4802_vm10 = vcmask 786112  }
 0x1b5   :  { %v942_v37 = vpop.xlane.xlu0 %941  ;;  %v1459_v41 = vadd.f32 %v3472_v38, %v945_v51  ;;  %v1177_v62 = vsel %vm561_vm0, %v510_v21, 0.0  ;;  %v511_v51 = vmul.f32 %v3981_v2, %v248_v26  ;;  %v253_v21 = vld [vmem:[#allocation3 + $0x698] sm:$0xff] }
 0x1b6   :  { %v2492_v40 = vsel %vm1932_vm12, %v2491_v30, %v2487_v53  ;;  %v1458_v42 = vadd.f32 %v3472_v38, %v942_v37  ;;  %v512_v53 = vmul.f32 %v3981_v2, %v249_v6 }
 0x1b7   :  { %v2506_v59 = vrot.slane %v1459_v41, %v3597_v48  ;;  %1160 = vadd.xlane.f32.xlu1 %v1159_v33  ;;  %v2497_v63 = vsel %vm1939_vm13, %v2496_v35, %v2492_v40  ;;  %v1174_v35 = vsel %vm561_vm0, %v509_v19, 0.0  ;;  %v251_v41 = vld [vmem:[#allocation3 + $0x688] sm:$0xff]  ;;  %v1180_v14 = vsel %vm561_vm0, %v511_v51, 0.0  ;;  %v282_v51 = vld [vmem:[#allocation3 + $0x780] sm:$0xff] }
 0x1b8   :  { %v2501_v60 = vrot.slane %v1458_v42, %v3602_v55  ;;  %1157 = vadd.xlane.f32.xlu0 %v1156_v39  ;;  %v951_v31 = vpop.xlane.xlu1 %950  ;;  %v250_v42 = vld [vmem:[#allocation3 + $0x680] sm:$0xff]  ;;  %v267_v19 = vld [vmem:[#allocation3 + $0x708] sm:$0xff] }
 0x1b9   :  { %v948_v8 = vpop.xlane.xlu0 %947  ;;  %v1461_v58 = vadd.f32 %v3472_v38, %v951_v31  ;;  %v513_v31 = vmul.f32 %v3981_v2, %v250_v42 }
 0x1ba   :  { %v2502_v29 = vsel %vm1946_vm14, %v2501_v60, %v2497_v63  ;;  %v1460_v3 = vadd.f32 %v3472_v38, %v948_v8  ;;  %v514_v63 = vmul.f32 %v3981_v2, %v251_v41 }
 0x1bb   :  { %v2507_v36 = vsel %vm1953_vm15, %v2506_v59, %v2502_v29  ;;  %v2515_v45 = vrot.slane %v1461_v58, %v3491_v54  ;;  %1166 = vadd.xlane.f32.xlu1 %v1165_v56  ;;  %v266_v29 = vld [vmem:[#allocation3 + $0x700] sm:$0xff]  ;;  %v252_v58 = vld [vmem:[#allocation3 + $0x690] sm:$0xff] }
 0x1bc   :  { %v2511_v10 = vrot.slane %v1460_v3, %v3482_v49  ;;  %1163 = vadd.xlane.f32.xlu0 %v1162_v18  ;;  %v3153_v12 = vsel %vm4794_vm11, %v2507_v36, %v3151_v9  ;;  %v957_v13 = vpop.xlane.xlu1 %956  ;;  %v1183_v18 = vsel %vm561_vm0, %v512_v53, 0.0  ;;  %vm4801_vm11 = vcmask 720512  }
 0x1bd   :  { %v954_v16 = vpop.xlane.xlu0 %953  ;;  %3163 = vst [vmem:[#allocation8] sm:$0xff] %v3153_v12  ;;  %v1463_v23 = vadd.f32 %v3472_v38, %v957_v13  ;;  %v529_v12 = vmul.f32 %v3981_v2, %v266_v29  ;;  %v515_v13 = vmul.f32 %v3981_v2, %v252_v58 }
 0x1be   :  { %v2516_v43 = vsel %vm1855_vm1, %v2515_v45, %v2511_v10  ;;  %v1462_v28 = vadd.f32 %v3472_v38, %v954_v16  ;;  %v1189_v45 = vsel %vm561_vm0, %v514_v63, 0.0  ;;  %v1186_v10 = vsel %vm561_vm0, %v513_v31, 0.0  ;;  %v254_v31 = vld [vmem:[#allocation3 + $0x6a0] sm:$0xff] }
 0x1bf   :  { %v2525_v44 = vrot.slane %v1463_v23, %v3485_v50  ;;  %1172 = vadd.xlane.f32.xlu1 %v1171_v17 }
 0x1c0   :  { %v2520_v15 = vrot.slane %v1462_v28, %v3496_v57  ;;  %1169 = vadd.xlane.f32.xlu0 %v1168_v20  ;;  %v963_v30 = vpop.xlane.xlu1 %962 }
 0x1c1   :  { %v960_v33 = vpop.xlane.xlu0 %959  ;;  %v1465_v39 = vadd.f32 %v3472_v38, %v963_v30  ;;  %v516_v30 = vmul.f32 %v3981_v2, %v253_v21 }
 0x1c2   :  { %v2521_v37 = vsel %vm1862_vm2, %v2520_v15, %v2516_v43  ;;  %v1464_v40 = vadd.f32 %v3472_v38, %v960_v33  ;;  %v1192_v15 = vsel %vm561_vm0, %v515_v13, 0.0  ;;  %v530_v33 = vmul.f32 %v3981_v2, %v267_v19  ;;  %v284_v13 = vld [vmem:[#allocation3 + $0x790] sm:$0xff] }
 0x1c3   :  { %v2526_v47 = vsel %vm1869_vm3, %v2525_v44, %v2521_v37  ;;  %v2535_v61 = vrot.slane %v1465_v39, %v3504_v4  ;;  %1178 = vadd.xlane.f32.xlu1 %v1177_v62  ;;  %v1234_v44 = vsel %vm561_vm0, %v529_v12, 0.0  ;;  %v268_v37 = vld [vmem:[#allocation3 + $0x710] sm:$0xff] }
 0x1c4   :  { %v2530_v56 = vrot.slane %v1464_v40, %v3507_v5  ;;  %1175 = vadd.xlane.f32.xlu0 %v1174_v35  ;;  %v969_v59 = vpop.xlane.xlu1 %968 }
 0x1c5   :  { %v966_v60 = vpop.xlane.xlu0 %965  ;;  %v1467_v34 = vadd.f32 %v3472_v38, %v969_v59  ;;  %v545_v59 = vmul.f32 %v3981_v2, %v282_v51 }
 0x1c6   :  { %v2531_v8 = vsel %vm1876_vm4, %v2530_v56, %v2526_v47  ;;  %v1466_v22 = vadd.f32 %v3472_v38, %v966_v60  ;;  %v1237_v56 = vsel %vm561_vm0, %v530_v33, 0.0  ;;  %v531_v60 = vmul.f32 %v3981_v2, %v268_v37  ;;  %v270_v33 = vld [vmem:[#allocation3 + $0x720] sm:$0xff] }
 0x1c7   :  { %v2536_v3 = vsel %vm1883_vm5, %v2535_v61, %v2531_v8  ;;  %v2545_v0 = vrot.slane %v1467_v34, %v3524_v24  ;;  %1184 = vadd.xlane.f32.xlu1 %v1183_v18  ;;  %v1195_v61 = vsel %vm561_vm0, %v516_v30, 0.0  ;;  %v283_v8 = vld [vmem:[#allocation3 + $0x788] sm:$0xff] }
 0x1c8   :  { %v2540_v1 = vrot.slane %v1466_v22, %v3527_v25  ;;  %1181 = vadd.xlane.f32.xlu0 %v1180_v14  ;;  %v975_v36 = vpop.xlane.xlu1 %974 }
 0x1c9   :  { %v972_v9 = vpop.xlane.xlu0 %971  ;;  %v1469_v17 = vadd.f32 %v3472_v38, %v975_v36  ;;  %v517_v36 = vmul.f32 %v3981_v2, %v254_v31 }
 0x1ca   :  { %v2541_v16 = vsel %vm1890_vm6, %v2540_v1, %v2536_v3  ;;  %v1468_v20 = vadd.f32 %v3472_v38, %v972_v9  ;;  %v1240_v1 = vsel %vm561_vm0, %v531_v60, 0.0  ;;  %v546_v9 = vmul.f32 %v3981_v2, %v283_v8  ;;  %v256_v60 = vld [vmem:[#allocation3 + $0x6b0] sm:$0xff] }
 0x1cb   :  { %v2546_v43 = vsel %vm1897_vm7, %v2545_v0, %v2541_v16  ;;  %v2555_v23 = vrot.slane %v1469_v17, %v3543_v46  ;;  %1190 = vadd.xlane.f32.xlu1 %v1189_v45  ;;  %v1282_v0 = vsel %vm561_vm0, %v545_v59, 0.0  ;;  %v269_v16 = vld [vmem:[#allocation3 + $0x718] sm:$0xff] }
 0x1cc   :  { %v2550_v28 = vrot.slane %v1468_v20, %v3549_v52  ;;  %1187 = vadd.xlane.f32.xlu0 %v1186_v10  ;;  %v981_v6 = vpop.xlane.xlu1 %980 }
 0x1cd   :  { %v978_v26 = vpop.xlane.xlu0 %977  ;;  %v1471_v35 = vadd.f32 %v3472_v38, %v981_v6  ;;  %v547_v6 = vmul.f32 %v3981_v2, %v284_v13 }
 0x1ce   :  { %v2551_v62 = vsel %vm1904_vm8, %v2550_v28, %v2546_v43  ;;  %v1470_v53 = vadd.f32 %v3472_v38, %v978_v26  ;;  %v1285_v28 = vsel %vm561_vm0, %v546_v9, 0.0  ;;  %v532_v26 = vmul.f32 %v3981_v2, %v269_v16  ;;  %v271_v9 = vld [vmem:[#allocation3 + $0x728] sm:$0xff] }
 0x1cf   :  { %v2556_v39 = vsel %vm1911_vm9, %v2555_v23, %v2551_v62  ;;  %v2565_v40 = vrot.slane %v1471_v35, %v3561_v7  ;;  %1235 = vadd.xlane.f32.xlu1 %v1234_v44  ;;  %v1198_v23 = vsel %vm561_vm0, %v517_v36, 0.0  ;;  %v255_v62 = vld [vmem:[#allocation3 + $0x6a8] sm:$0xff]  ;;  %v286_v36 = vld [vmem:[#allocation3 + $0x7a0] sm:$0xff] }
 0x1d0   :  { %v2560_v41 = vrot.slane %v1470_v53, %v3567_v11  ;;  %1193 = vadd.xlane.f32.xlu0 %v1192_v15  ;;  %v987_v42 = vpop.xlane.xlu1 %986 }
 0x1d1   :  { %v984_v47 = vpop.xlane.xlu0 %983  ;;  %v1473_v14 = vadd.f32 %v3472_v38, %v987_v42  ;;  %v533_v42 = vmul.f32 %v3981_v2, %v270_v33 }
 0x1d2   :  { %v2561_v18 = vsel %vm4801_vm11, %v2560_v41, %v2556_v39  ;;  %v1472_v63 = vadd.f32 %v3472_v38, %v984_v47  ;;  %v1243_v41 = vsel %vm561_vm0, %v532_v26, 0.0  ;;  %v518_v47 = vmul.f32 %v3981_v2, %v255_v62  ;;  %v257_v26 = vld [vmem:[#allocation3 + $0x6b8] sm:$0xff] }
 0x1d3   :  { %v2566_v34 = vsel %vm4802_vm10, %v2565_v40, %v2561_v18  ;;  %v2575_v22 = vrot.slane %v1473_v14, %v3579_v27  ;;  %1196 = vadd.xlane.f32.xlu1 %v1195_v61  ;;  %v1288_v40 = vsel %vm561_vm0, %v547_v6, 0.0  ;;  %v285_v18 = vld [vmem:[#allocation3 + $0x798] sm:$0xff]  ;;  %v272_v6 = vld [vmem:[#allocation3 + $0x730] sm:$0xff]  ;;  %vm4803_vm10 = vmmov %vm4801_vm11  ;;  %vm4804_vm11 = vcmask 786112  }
 0x1d4   :  { %v2570_v29 = vrot.slane %v1472_v63, %v3585_v32  ;;  %1238 = vadd.xlane.f32.xlu0 %v1237_v56  ;;  %v993_v58 = vpop.xlane.xlu1 %992 }
 0x1d5   :  { %v990_v3 = vpop.xlane.xlu0 %989  ;;  %v1475_v10 = vadd.f32 %v3472_v38, %v993_v58  ;;  %v548_v58 = vmul.f32 %v3981_v2, %v285_v18 }
 0x1d6   :  { %v2571_v45 = vsel %vm1932_vm12, %v2570_v29, %v2566_v34  ;;  %v1474_v12 = vadd.f32 %v3472_v38, %v990_v3  ;;  %v1246_v34 = vsel %vm561_vm0, %v533_v42, 0.0  ;;  %v519_v29 = vmul.f32 %v3981_v2, %v256_v60 }
 0x1d7   :  { %v2576_v17 = vsel %vm1939_vm13, %v2575_v22, %v2571_v45  ;;  %v2585_v20 = vrot.slane %v1475_v10, %v3597_v48  ;;  %1283 = vadd.xlane.f32.xlu1 %v1282_v0  ;;  %v1201_v22 = vsel %vm561_vm0, %v518_v47, 0.0  ;;  %v258_v47 = vld [vmem:[#allocation3 + $0x6c0] sm:$0xff] }
 0x1d8   :  { %v2580_v21 = vrot.slane %v1474_v12, %v3602_v55  ;;  %1241 = vadd.xlane.f32.xlu0 %v1240_v1  ;;  %v999_v19 = vpop.xlane.xlu1 %998  ;;  %v1204_v2 = vsel %vm561_vm0, %v519_v29, 0.0 }
 0x1d9   :  { %v996_v43 = vpop.xlane.xlu0 %995  ;;  %v1477_v15 = vadd.f32 %v3472_v38, %v999_v19 }
 0x1da   :  { %v2581_v44 = vsel %vm1946_vm14, %v2580_v21, %v2576_v17  ;;  %v1476_v30 = vadd.f32 %v3472_v38, %v996_v43  ;;  %v1291_v17 = vsel %vm561_vm0, %v548_v58, 0.0 }
 0x1db   :  { %v4328_v35 = vsel %vm1953_vm15, %v2585_v20, %v2581_v44  ;;  %v2594_v53 = vrot.slane %v1477_v15, %v3491_v54  ;;  %1199 = vadd.xlane.f32.xlu1 %v1198_v23  ;;  %v4353_v20 = vld [vmem:[#allocation6] ss:$0 sm:$0xff] }
 0x1dc   :  { %v2590_v51 = vrot.slane %v1476_v30, %v3482_v49  ;;  %1286 = vadd.xlane.f32.xlu0 %v1285_v28  ;;  %v1005_v37 = vpop.xlane.xlu1 %1004  ;;  %v549_v21 = vmul.f32 %v4353_v20, %v286_v36  ;;  %v534_v19 = vmul.f32 %v4353_v20, %v271_v9 }
 0x1dd   :  { %v1002_v39 = vpop.xlane.xlu0 %1001  ;;  %v1479_v56 = vadd.f32 %v3472_v38, %v1005_v37  ;;  %v535_v37 = vmul.f32 %v4353_v20, %v272_v6 }
 0x1de   :  { %v2595_v61 = vsel %vm1855_vm1, %v2594_v53, %v2590_v51  ;;  %v1478_v59 = vadd.f32 %v3472_v38, %v1002_v39  ;;  %v1294_v53 = vsel %vm561_vm0, %v549_v21, 0.0  ;;  %v1249_v51 = vsel %vm561_vm0, %v534_v19, 0.0 }
 0x1df   :  { %v2604_v14 = vrot.slane %v1479_v56, %v3485_v50  ;;  %1289 = vadd.xlane.f32.xlu1 %v1288_v40  ;;  %v520_v39 = vmul.f32 %v4353_v20, %v257_v26 }
 0x1e0   :  { %v2599_v63 = vrot.slane %v1478_v59, %v3496_v57  ;;  %1244 = vadd.xlane.f32.xlu0 %v1243_v41  ;;  %v1011_v31 = vpop.xlane.xlu1 %1010 }
 0x1e1   :  { %v1008_v8 = vpop.xlane.xlu0 %1007  ;;  %v1481_v0 = vadd.f32 %v3472_v38, %v1011_v31  ;;  %v1207_v31 = vsel %vm561_vm0, %v520_v39, 0.0 }
 0x1e2   :  { %v2600_v3 = vsel %vm1862_vm2, %v2599_v63, %v2595_v61  ;;  %v1480_v1 = vadd.f32 %v3472_v38, %v1008_v8  ;;  %v287_v61 = vld [vmem:[#allocation3 + $0x7a8] sm:$0xff]  ;;  %v1252_v63 = vsel %vm561_vm0, %v535_v37, 0.0  ;;  %v521_v8 = vmul.f32 %v4353_v20, %v258_v47 }
 0x1e3   :  { %v2605_v45 = vsel %vm1869_vm3, %v2604_v14, %v2600_v3  ;;  %v2614_v10 = vrot.slane %v1481_v0, %v3504_v4  ;;  %1247 = vadd.xlane.f32.xlu1 %v1246_v34  ;;  %v550_v34 = vmul.f32 %v4353_v20, %v287_v61  ;;  %v288_v3 = vld [vmem:[#allocation3 + $0x7b0] sm:$0xff]  ;;  %v273_v0 = vld [vmem:[#allocation3 + $0x738] sm:$0xff] }
 0x1e4   :  { %v2609_v12 = vrot.slane %v1480_v1, %v3507_v5  ;;  %1202 = vadd.xlane.f32.xlu0 %v1201_v22  ;;  %v1017_v13 = vpop.xlane.xlu1 %1016 }
 0x1e5   :  { %v1014_v16 = vpop.xlane.xlu0 %1013  ;;  %v1483_v23 = vadd.f32 %v3472_v38, %v1017_v13  ;;  %v1297_v13 = vsel %vm561_vm0, %v550_v34, 0.0 }
 0x1e6   :  { %v2610_v43 = vsel %vm1876_vm4, %v2609_v12, %v2605_v45  ;;  %v1482_v28 = vadd.f32 %v3472_v38, %v1014_v16  ;;  %v1210_v12 = vsel %vm561_vm0, %v521_v8, 0.0  ;;  %v551_v16 = vmul.f32 %v4353_v20, %v288_v3 }
 0x1e7   :  { %v2615_v44 = vsel %vm1883_vm5, %v2614_v10, %v2610_v43  ;;  %v2624_v15 = vrot.slane %v1483_v23, %v3524_v24  ;;  %1205 = vadd.xlane.f32.xlu1 %v1204_v2  ;;  %v536_v2 = vmul.f32 %v4353_v20, %v273_v0  ;;  %v274_v43 = vld [vmem:[#allocation3 + $0x740] sm:$0xff]  ;;  %v259_v23 = vld [vmem:[#allocation3 + $0x6c8] sm:$0xff] }
 0x1e8   :  { %v2619_v30 = vrot.slane %v1482_v28, %v3527_v25  ;;  %1292 = vadd.xlane.f32.xlu0 %v1291_v17  ;;  %v1023_v33 = vpop.xlane.xlu1 %1022 }
 0x1e9   :  { %v1020_v62 = vpop.xlane.xlu0 %1019  ;;  %v1485_v41 = vadd.f32 %v3472_v38, %v1023_v33  ;;  %v1255_v33 = vsel %vm561_vm0, %v536_v2, 0.0 }
 0x1ea   :  { %v2620_v40 = vsel %vm1890_vm6, %v2619_v30, %v2615_v44  ;;  %v1484_v42 = vadd.f32 %v3472_v38, %v1020_v62  ;;  %v1300_v30 = vsel %vm561_vm0, %v551_v16, 0.0  ;;  %v537_v62 = vmul.f32 %v4353_v20, %v274_v43 }
 0x1eb   :  { %v2625_v56 = vsel %vm1897_vm7, %v2624_v15, %v2620_v40  ;;  %v2634_v59 = vrot.slane %v1485_v41, %v3543_v46  ;;  %1295 = vadd.xlane.f32.xlu1 %v1294_v53  ;;  %v522_v53 = vmul.f32 %v4353_v20, %v259_v23  ;;  %v260_v40 = vld [vmem:[#allocation3 + $0x6d0] sm:$0xff]  ;;  %v289_v41 = vld [vmem:[#allocation3 + $0x7b8] sm:$0xff] }
 0x1ec   :  { %v2629_v60 = vrot.slane %v1484_v42, %v3549_v52  ;;  %1250 = vadd.xlane.f32.xlu0 %v1249_v51  ;;  %v1029_v18 = vpop.xlane.xlu1 %1028 }
 0x1ed   :  { %v1026_v14 = vpop.xlane.xlu0 %1025  ;;  %v1487_v29 = vadd.f32 %v3472_v38, %v1029_v18  ;;  %v1213_v18 = vsel %vm561_vm0, %v522_v53, 0.0  ;;  %v262_v53 = vld [vmem:[#allocation3 + $0x6e0] sm:$0xff] }
 0x1ee   :  { %v2630_v22 = vsel %vm1904_vm8, %v2629_v60, %v2625_v56  ;;  %v1486_v58 = vadd.f32 %v3472_v38, %v1026_v14  ;;  %v1258_v60 = vsel %vm561_vm0, %v537_v62, 0.0  ;;  %v523_v14 = vmul.f32 %v4353_v20, %v260_v40 }
 0x1ef   :  { %v2635_v1 = vsel %vm1911_vm9, %v2634_v59, %v2630_v22  ;;  %v2644_v36 = vrot.slane %v1487_v29, %v3561_v7  ;;  %1253 = vadd.xlane.f32.xlu1 %v1252_v63  ;;  %v552_v63 = vmul.f32 %v4353_v20, %v289_v41  ;;  %v290_v22 = vld [vmem:[#allocation3 + $0x7c0] sm:$0xff]  ;;  %v275_v29 = vld [vmem:[#allocation3 + $0x748] sm:$0xff] }
 0x1f0   :  { %v2639_v9 = vrot.slane %v1486_v58, %v3567_v11  ;;  %1208 = vadd.xlane.f32.xlu0 %v1207_v31  ;;  %v1035_v45 = vpop.xlane.xlu1 %1034 }
 0x1f1   :  { %v1032_v10 = vpop.xlane.xlu0 %1031  ;;  %v1489_v21 = vadd.f32 %v3472_v38, %v1035_v45  ;;  %v1216_v45 = vsel %vm561_vm0, %v523_v14, 0.0 }
 0x1f2   :  { %v2640_v17 = vsel %vm4803_vm10, %v2639_v9, %v2635_v1  ;;  %v1488_v19 = vadd.f32 %v3472_v38, %v1032_v10  ;;  %vm4805_vm10 = vcmask 1041409   ;;  %v1303_v10 = vsel %vm561_vm0, %v552_v63, 0.0  ;;  %v292_v63 = vld [vmem:[#allocation3 + $0x7d0] sm:$0xff] }
 0x1f3   :  { %v2645_v28 = vsel %vm4804_vm11, %v2644_v36, %v2640_v17  ;;  %v2654_v6 = vrot.slane %v1489_v21, %v3579_v27  ;;  %1211 = vadd.xlane.f32.xlu1 %v1210_v12  ;;  %v553_v12 = vmul.f32 %v4353_v20, %v290_v22  ;;  %v276_v17 = vld [vmem:[#allocation3 + $0x750] sm:$0xff]  ;;  %v261_v21 = vld [vmem:[#allocation3 + $0x6d8] sm:$0xff]  ;;  %vm4806_vm11 = vcmask 720512  }
 0x1f4   :  { %v2649_v26 = vrot.slane %v1488_v19, %v3585_v32  ;;  %1298 = vadd.xlane.f32.xlu0 %v1297_v13  ;;  %v1041_v44 = vpop.xlane.xlu1 %1040  ;;  %v538_v13 = vmul.f32 %v4353_v20, %v275_v29 }
 0x1f5   :  { %v1038_v15 = vpop.xlane.xlu0 %1037  ;;  %v1491_v37 = vadd.f32 %v3472_v38, %v1041_v44  ;;  %v539_v44 = vmul.f32 %v4353_v20, %v276_v17 }
 0x1f6   :  { %v2650_v51 = vsel %vm1932_vm12, %v2649_v26, %v2645_v28  ;;  %v1490_v39 = vadd.f32 %v3472_v38, %v1038_v15  ;;  %v1261_v26 = vsel %vm561_vm0, %v538_v13, 0.0  ;;  %v524_v15 = vmul.f32 %v4353_v20, %v261_v21  ;;  %v278_v13 = vld [vmem:[#allocation3 + $0x760] sm:$0xff] }
 0x1f7   :  { %v2655_v42 = vsel %vm1939_vm13, %v2654_v6, %v2650_v51  ;;  %v2664_v47 = vrot.slane %v1491_v37, %v3597_v48  ;;  %1301 = vadd.xlane.f32.xlu1 %v1300_v30  ;;  %v1306_v6 = vsel %vm561_vm0, %v553_v12, 0.0  ;;  %v291_v51 = vld [vmem:[#allocation3 + $0x7c8] sm:$0xff] }
 0x1f8   :  { %v2659_v61 = vrot.slane %v1490_v39, %v3602_v55  ;;  %1256 = vadd.xlane.f32.xlu0 %v1255_v33  ;;  %v1047_v56 = vpop.xlane.xlu1 %1046 }
 0x1f9   :  { %v1044_v59 = vpop.xlane.xlu0 %1043  ;;  %v1493_v8 = vadd.f32 %v3472_v38, %v1047_v56  ;;  %v525_v56 = vmul.f32 %v4353_v20, %v262_v53 }
 0x1fa   :  { %v2660_v31 = vsel %vm1946_vm14, %v2659_v61, %v2655_v42  ;;  %v1492_v34 = vadd.f32 %v3472_v38, %v1044_v59  ;;  %v1219_v61 = vsel %vm561_vm0, %v524_v15, 0.0  ;;  %v554_v59 = vmul.f32 %v4353_v20, %v291_v51 }
 0x1fb   :  { %v2665_v58 = vsel %vm1953_vm15, %v2664_v47, %v2660_v31  ;;  %v2673_v0 = vrot.slane %v1493_v8, %v3491_v54  ;;  %1259 = vadd.xlane.f32.xlu1 %v1258_v60  ;;  %v1264_v47 = vsel %vm561_vm0, %v539_v44, 0.0  ;;  %v277_v31 = vld [vmem:[#allocation3 + $0x758] sm:$0xff] }
 0x1fc   :  { %v4413_v3 = vsel %vm4805_vm10, %v2665_v58, %v4328_v35  ;;  %v2669_v1 = vrot.slane %v1492_v34, %v3482_v49  ;;  %1214 = vadd.xlane.f32.xlu0 %v1213_v18  ;;  %v1053_v36 = vpop.xlane.xlu1 %1052  ;;  %vm4807_vm10 = vcmask 786112  }
 0x1fd   :  { %v1050_v9 = vpop.xlane.xlu0 %1049  ;;  %v1495_v35 = vadd.f32 %v3472_v38, %v1053_v36  ;;  %v555_v36 = vmul.f32 %v4353_v20, %v292_v63 }
 0x1fe   :  { %v2674_v16 = vsel %vm1855_vm1, %v2673_v0, %v2669_v1  ;;  %v1494_v2 = vadd.f32 %v3472_v38, %v1050_v9  ;;  %v1222_v0 = vsel %vm561_vm0, %v525_v56, 0.0  ;;  %v1309_v1 = vsel %vm561_vm0, %v554_v59, 0.0 }
 0x1ff   :  { %v2683_v19 = vrot.slane %v1495_v35, %v3485_v50  ;;  %1217 = vadd.xlane.f32.xlu1 %v1216_v45  ;;  %v540_v9 = vmul.f32 %v4353_v20, %v277_v31 }
 0x200   :  { %v2678_v43 = vrot.slane %v1494_v2, %v3496_v57  ;;  %1304 = vadd.xlane.f32.xlu0 %v1303_v10  ;;  %v1059_v23 = vpop.xlane.xlu1 %1058 }
 0x201   :  { %v1056_v28 = vpop.xlane.xlu0 %1055  ;;  %v1497_v33 = vadd.f32 %v3472_v38, %v1059_v23  ;;  %v1267_v23 = vsel %vm561_vm0, %v540_v9, 0.0 }
 0x202   :  { %v2679_v30 = vsel %vm1862_vm2, %v2678_v43, %v2674_v16  ;;  %v1496_v62 = vadd.f32 %v3472_v38, %v1056_v28  ;;  %v263_v16 = vld [vmem:[#allocation3 + $0x6e8] sm:$0xff]  ;;  %v1312_v43 = vsel %vm561_vm0, %v555_v36, 0.0  ;;  %v541_v28 = vmul.f32 %v4353_v20, %v278_v13 }
 0x203   :  { %v2684_v37 = vsel %vm1869_vm3, %v2683_v19, %v2679_v30  ;;  %v2693_v39 = vrot.slane %v1497_v33, %v3504_v4  ;;  %1307 = vadd.xlane.f32.xlu1 %v1306_v6  ;;  %v526_v6 = vmul.f32 %v4353_v20, %v263_v16  ;;  %v264_v30 = vld [vmem:[#allocation3 + $0x6f0] sm:$0xff]  ;;  %v293_v33 = vld [vmem:[#allocation3 + $0x7d8] sm:$0xff] }
 0x204   :  { %v2688_v40 = vrot.slane %v1496_v62, %v3507_v5  ;;  %1262 = vadd.xlane.f32.xlu0 %v1261_v26  ;;  %v1065_v41 = vpop.xlane.xlu1 %1064 }
 0x205   :  { %v1062_v42 = vpop.xlane.xlu0 %1061  ;;  %v1499_v18 = vadd.f32 %v3472_v38, %v1065_v41  ;;  %v1225_v41 = vsel %vm561_vm0, %v526_v6, 0.0 }
 0x206   :  { %v2689_v60 = vsel %vm1876_vm4, %v2688_v40, %v2684_v37  ;;  %v1498_v14 = vadd.f32 %v3472_v38, %v1062_v42  ;;  %v1270_v40 = vsel %vm561_vm0, %v541_v28, 0.0  ;;  %v527_v42 = vmul.f32 %v4353_v20, %v264_v30 }
 0x207   :  { %v2694_v8 = vsel %vm1883_vm5, %v2693_v39, %v2689_v60  ;;  %v2703_v34 = vrot.slane %v1499_v18, %v3524_v24  ;;  %1265 = vadd.xlane.f32.xlu1 %v1264_v47  ;;  %v556_v47 = vmul.f32 %v4353_v20, %v293_v33  ;;  %v294_v60 = vld [vmem:[#allocation3 + $0x7e0] sm:$0xff]  ;;  %v279_v18 = vld [vmem:[#allocation3 + $0x768] sm:$0xff] }
 0x208   :  { %v2698_v22 = vrot.slane %v1498_v14, %v3527_v25  ;;  %1220 = vadd.xlane.f32.xlu0 %v1219_v61  ;;  %v1071_v29 = vpop.xlane.xlu1 %1070 }
 0x209   :  { %v1068_v58 = vpop.xlane.xlu0 %1067  ;;  %v1501_v10 = vadd.f32 %v3472_v38, %v1071_v29  ;;  %v1315_v29 = vsel %vm561_vm0, %v556_v47, 0.0 }
 0x20a   :  { %v2699_v45 = vsel %vm1890_vm6, %v2698_v22, %v2694_v8  ;;  %v1500_v12 = vadd.f32 %v3472_v38, %v1068_v58  ;;  %v1228_v22 = vsel %vm561_vm0, %v527_v42, 0.0  ;;  %v557_v58 = vmul.f32 %v4353_v20, %v294_v60 }
 0x20b   :  { %v2704_v35 = vsel %vm1897_vm7, %v2703_v34, %v2699_v45  ;;  %v2713_v2 = vrot.slane %v1501_v10, %v3543_v46  ;;  %1223 = vadd.xlane.f32.xlu1 %v1222_v0  ;;  %v542_v0 = vmul.f32 %v4353_v20, %v279_v18  ;;  %v280_v45 = vld [vmem:[#allocation3 + $0x770] sm:$0xff]  ;;  %v265_v10 = vld [vmem:[#allocation3 + $0x6f8] sm:$0xff] }
 0x20c   :  { %v2708_v17 = vrot.slane %v1500_v12, %v3549_v52  ;;  %1310 = vadd.xlane.f32.xlu0 %v1309_v1  ;;  %v1077_v21 = vpop.xlane.xlu1 %1076 }
 0x20d   :  { %v1074_v19 = vpop.xlane.xlu0 %1073  ;;  %v1503_v44 = vadd.f32 %v3472_v38, %v1077_v21  ;;  %v1273_v21 = vsel %vm561_vm0, %v542_v0, 0.0 }
 0x20e   :  { %v2709_v26 = vsel %vm1904_vm8, %v2708_v17, %v2704_v35  ;;  %v1502_v15 = vadd.f32 %v3472_v38, %v1074_v19  ;;  %v1318_v17 = vsel %vm561_vm0, %v557_v58, 0.0  ;;  %v543_v19 = vmul.f32 %v4353_v20, %v280_v45 }
 0x20f   :  { %v2714_v62 = vsel %vm1911_vm9, %v2713_v2, %v2709_v26  ;;  %v2723_v53 = vrot.slane %v1503_v44, %v3561_v7  ;;  %1313 = vadd.xlane.f32.xlu1 %v1312_v43  ;;  %v528_v43 = vmul.f32 %v4353_v20, %v265_v10  ;;  %v281_v26 = vld [vmem:[#allocation3 + $0x778] sm:$0xff]  ;;  %v295_v44 = vld [vmem:[#allocation3 + $0x7e8] sm:$0xff] }
 0x210   :  { %v2718_v51 = vrot.slane %v1502_v15, %v3567_v11  ;;  %1268 = vadd.xlane.f32.xlu0 %v1267_v23  ;;  %v1083_v37 = vpop.xlane.xlu1 %1082 }
 0x211   :  { %v1080_v39 = vpop.xlane.xlu0 %1079  ;;  %v1505_v56 = vadd.f32 %v3472_v38, %v1083_v37  ;;  %v1276_v37 = vsel %vm561_vm0, %v543_v19, 0.0 }
 0x212   :  { %v2719_v61 = vsel %vm4806_vm11, %v2718_v51, %v2714_v62  ;;  %v1504_v59 = vadd.f32 %v3472_v38, %v1080_v39  ;;  %vm4808_vm11 = vcmask 1042434   ;;  %v1231_v39 = vsel %vm561_vm0, %v528_v43, 0.0 }
 0x213   :  { %v2724_v14 = vsel %vm4807_vm10, %v2723_v53, %v2719_v61  ;;  %v2733_v63 = vrot.slane %v1505_v56, %v3579_v27  ;;  %1271 = vadd.xlane.f32.xlu1 %v1270_v40  ;;  %v544_v40 = vmul.f32 %v4353_v20, %v281_v26  ;;  %v296_v61 = vld [vmem:[#allocation3 + $0x7f0] sm:$0xff]  ;;  %v297_v56 = vld [vmem:[#allocation3 + $0x7f8] sm:$0xff] }
 0x214   :  { %v2728_v31 = vrot.slane %v1504_v59, %v3585_v32  ;;  %1226 = vadd.xlane.f32.xlu0 %v1225_v41  ;;  %v1089_v8 = vpop.xlane.xlu1 %1088  ;;  %v558_v41 = vmul.f32 %v4353_v20, %v295_v44 }
 0x215   :  { %v1086_v34 = vpop.xlane.xlu0 %1085  ;;  %v1507_v36 = vadd.f32 %v3472_v38, %v1089_v8  ;;  %v559_v8 = vmul.f32 %v4353_v20, %v296_v61 }
 0x216   :  { %v2729_v1 = vsel %vm1932_vm12, %v2728_v31, %v2724_v14  ;;  %v1506_v9 = vadd.f32 %v3472_v38, %v1086_v34  ;;  %v1321_v31 = vsel %vm561_vm0, %v558_v41, 0.0  ;;  %v560_v34 = vmul.f32 %v4353_v20, %v297_v56 }
 0x217   :  { %v2734_v12 = vsel %vm1939_vm13, %v2733_v63, %v2729_v1  ;;  %v2743_v13 = vrot.slane %v1507_v36, %v3597_v48  ;;  %1229 = vadd.xlane.f32.xlu1 %v1228_v22  ;;  %v1279_v63 = vsel %vm561_vm0, %v544_v40, 0.0  ;;  %v1324_v10 = vsel %vm561_vm0, %v559_v8, 0.0 }
 0x218   :  { %v2738_v16 = vrot.slane %v1506_v9, %v3602_v55  ;;  %1316 = vadd.xlane.f32.xlu0 %v1315_v29  ;;  %v1095_v35 = vpop.xlane.xlu1 %1094  ;;  %v1327_v20 = vsel %vm561_vm0, %v560_v34, 0.0  ;;  %vm4809_vm0 = vcmask 720512  }
 0x219   :  { %v1092_v2 = vpop.xlane.xlu0 %1091  ;;  %v1509_v28 = vadd.f32 %v3472_v38, %v1095_v35 }
 0x21a   :  { %v2739_v23 = vsel %vm1946_vm14, %v2738_v16, %v2734_v12  ;;  %v1508_v6 = vadd.f32 %v3472_v38, %v1092_v2 }
 0x21b   :  { %v2744_v15 = vsel %vm1953_vm15, %v2743_v13, %v2739_v23  ;;  %v2752_v33 = vrot.slane %v1509_v28, %v3491_v54  ;;  %1319 = vadd.xlane.f32.xlu1 %v1318_v17 }
 0x21c   :  { %v4496_v30 = vsel %vm4808_vm11, %v2744_v15, %v4413_v3  ;;  %v2748_v62 = vrot.slane %v1508_v6, %v3482_v49  ;;  %1274 = vadd.xlane.f32.xlu0 %v1273_v21  ;;  %v1101_v53 = vpop.xlane.xlu1 %1100  ;;  %vm4810_vm11 = vcmask 1043459  }
 0x21d   :  { %v1098_v51 = vpop.xlane.xlu0 %1097  ;;  %v1511_v3 = vadd.f32 %v3472_v38, %v1101_v53 }
 0x21e   :  { %v2753_v42 = vsel %vm1855_vm1, %v2752_v33, %v2748_v62  ;;  %v1510_v47 = vadd.f32 %v3472_v38, %v1098_v51 }
 0x21f   :  { %v2762_v59 = vrot.slane %v1511_v3, %v3485_v50  ;;  %1277 = vadd.xlane.f32.xlu1 %v1276_v37 }
 0x220   :  { %v2757_v60 = vrot.slane %v1510_v47, %v3496_v57  ;;  %1232 = vadd.xlane.f32.xlu0 %v1231_v39  ;;  %v1107_v18 = vpop.xlane.xlu1 %1106 }
 0x221   :  { %v1104_v14 = vpop.xlane.xlu0 %1103  ;;  %v1513_v29 = vadd.f32 %v3472_v38, %v1107_v18 }
 0x222   :  { %v2758_v22 = vsel %vm1862_vm2, %v2757_v60, %v2753_v42  ;;  %v1512_v58 = vadd.f32 %v3472_v38, %v1104_v14 }
 0x223   :  { %v2763_v0 = vsel %vm1869_vm3, %v2762_v59, %v2758_v22  ;;  %v2772_v1 = vrot.slane %v1513_v29, %v3504_v4  ;;  %1280 = vadd.xlane.f32.xlu1 %v1279_v63 }
 0x224   :  { %v2767_v36 = vrot.slane %v1512_v58, %v3507_v5  ;;  %1322 = vadd.xlane.f32.xlu0 %v1321_v31  ;;  %v1113_v9 = vpop.xlane.xlu1 %1112 }
 0x225   :  { %v1110_v45 = vpop.xlane.xlu0 %1109  ;;  %v1515_v13 = vadd.f32 %v3472_v38, %v1113_v9 }
 0x226   :  { %v2768_v12 = vsel %vm1876_vm4, %v2767_v36, %v2763_v0  ;;  %v1514_v16 = vadd.f32 %v3472_v38, %v1110_v45 }
 0x227   :  { %v2773_v35 = vsel %vm1883_vm5, %v2772_v1, %v2768_v12  ;;  %v2782_v2 = vrot.slane %v1515_v13, %v3524_v24  ;;  %1328 = vadd.xlane.f32.xlu1 %v1327_v20 }
 0x228   :  { %v2777_v17 = vrot.slane %v1514_v16, %v3527_v25  ;;  %1325 = vadd.xlane.f32.xlu0 %v1324_v10  ;;  %v1119_v21 = vpop.xlane.xlu1 %1118 }
 0x229   :  { %v1116_v19 = vpop.xlane.xlu0 %1115  ;;  %v1517_v23 = vadd.f32 %v3472_v38, %v1119_v21 }
 0x22a   :  { %v2778_v43 = vsel %vm1890_vm6, %v2777_v17, %v2773_v35  ;;  %v1516_v28 = vadd.f32 %v3472_v38, %v1116_v19 }
 0x22b   :  { %v2783_v6 = vsel %vm1897_vm7, %v2782_v2, %v2778_v43  ;;  %v2792_v26 = vrot.slane %v1517_v23, %v3543_v46 }
 0x22c   :  { %v2787_v44 = vrot.slane %v1516_v28, %v3549_v52  ;;  %v1125_v15 = vpop.xlane.xlu1 %1124 }
 0x22d   :  { %v1122_v33 = vpop.xlane.xlu0 %1121  ;;  %v1519_v53 = vadd.f32 %v3472_v38, %v1125_v15 }
 0x22e   :  { %v2788_v62 = vsel %vm1904_vm8, %v2787_v44, %v2783_v6  ;;  %v1518_v51 = vadd.f32 %v3472_v38, %v1122_v33 }
 0x22f   :  { %v2793_v37 = vsel %vm1911_vm9, %v2792_v26, %v2788_v62  ;;  %v2802_v39 = vrot.slane %v1519_v53, %v3561_v7 }
 0x230   :  { %v2797_v40 = vrot.slane %v1518_v51, %v3567_v11  ;;  %v1131_v41 = vpop.xlane.xlu1 %1130 }
 0x231   :  { %v1128_v42 = vpop.xlane.xlu0 %1127  ;;  %v1521_v47 = vadd.f32 %v3472_v38, %v1131_v41 }
 0x232   :  { %v2798_v3 = vsel %vm4809_vm0, %v2797_v40, %v2793_v37  ;;  %v1520_v61 = vadd.f32 %v3472_v38, %v1128_v42 }
 0x233   :  { %v2803_v56 = vsel %vm4807_vm10, %v2802_v39, %v2798_v3  ;;  %v2812_v59 = vrot.slane %v1521_v47, %v3579_v27 }
 0x234   :  { %v2807_v60 = vrot.slane %v1520_v61, %v3585_v32  ;;  %v1137_v18 = vpop.xlane.xlu1 %1136 }
 0x235   :  { %v1134_v14 = vpop.xlane.xlu0 %1133  ;;  %v1523_v31 = vadd.f32 %v3472_v38, %v1137_v18 }
 0x236   :  { %v2808_v63 = vsel %vm1932_vm12, %v2807_v60, %v2803_v56  ;;  %v1522_v8 = vadd.f32 %v3472_v38, %v1134_v14 }
 0x237   :  { %v2813_v34 = vsel %vm1939_vm13, %v2812_v59, %v2808_v63  ;;  %v2822_v22 = vrot.slane %v1523_v31, %v3597_v48 }
 0x238   :  { %v2817_v29 = vrot.slane %v1522_v8, %v3602_v55  ;;  %v1143_v58 = vpop.xlane.xlu1 %1142 }
 0x239   :  { %v1140_v0 = vpop.xlane.xlu0 %1139  ;;  %v1525_v36 = vadd.f32 %v3472_v38, %v1143_v58 }
 0x23a   :  { %v2818_v1 = vsel %vm1946_vm14, %v2817_v29, %v2813_v34  ;;  %v1524_v9 = vadd.f32 %v3472_v38, %v1140_v0 }
 0x23b   :  { %v2823_v45 = vsel %vm1953_vm15, %v2822_v22, %v2818_v1  ;;  %v2831_v20 = vrot.slane %v1525_v36, %v3491_v54 }
 0x23c   :  { %v4557_v10 = vsel %vm4810_vm11, %v2823_v45, %v4496_v30  ;;  %v2827_v12 = vrot.slane %v1524_v9, %v3482_v49  ;;  %v1149_v13 = vpop.xlane.xlu1 %1148  ;;  %vm4811_vm11 = vcmask 1044484  }
 0x23d   :  { %v1146_v16 = vpop.xlane.xlu0 %1145  ;;  %v1527_v2 = vadd.f32 %v3472_v38, %v1149_v13 }
 0x23e   :  { %v2832_v35 = vsel %vm1855_vm1, %v2831_v20, %v2827_v12  ;;  %v1526_v17 = vadd.f32 %v3472_v38, %v1146_v16 }
 0x23f   :  { %v2841_v21 = vrot.slane %v1527_v2, %v3485_v50 }
 0x240   :  { %v2836_v19 = vrot.slane %v1526_v17, %v3496_v57  ;;  %v1155_v43 = vpop.xlane.xlu1 %1154 }
 0x241   :  { %v1152_v23 = vpop.xlane.xlu0 %1151  ;;  %v1529_v28 = vadd.f32 %v3472_v38, %v1155_v43 }
 0x242   :  { %v2837_v30 = vsel %vm1862_vm2, %v2836_v19, %v2832_v35  ;;  %v1528_v6 = vadd.f32 %v3472_v38, %v1152_v23 }
 0x243   :  { %v2842_v26 = vsel %vm1869_vm3, %v2841_v21, %v2837_v30  ;;  %v2851_v44 = vrot.slane %v1529_v28, %v3504_v4 }
 0x244   :  { %v2846_v15 = vrot.slane %v1528_v6, %v3507_v5  ;;  %v1161_v33 = vpop.xlane.xlu1 %1160 }
 0x245   :  { %v1158_v62 = vpop.xlane.xlu0 %1157  ;;  %v1531_v51 = vadd.f32 %v3472_v38, %v1161_v33 }
 0x246   :  { %v2847_v53 = vsel %vm1876_vm4, %v2846_v15, %v2842_v26  ;;  %v1530_v37 = vadd.f32 %v3472_v38, %v1158_v62 }
 0x247   :  { %v2852_v39 = vsel %vm1883_vm5, %v2851_v44, %v2847_v53  ;;  %v2861_v40 = vrot.slane %v1531_v51, %v3524_v24 }
 0x248   :  { %v2856_v41 = vrot.slane %v1530_v37, %v3527_v25  ;;  %v1167_v42 = vpop.xlane.xlu1 %1166 }
 0x249   :  { %v1164_v3 = vpop.xlane.xlu0 %1163  ;;  %v1533_v61 = vadd.f32 %v3472_v38, %v1167_v42 }
 0x24a   :  { %v2857_v47 = vsel %vm1890_vm6, %v2856_v41, %v2852_v39  ;;  %v1532_v56 = vadd.f32 %v3472_v38, %v1164_v3 }
 0x24b   :  { %v2862_v59 = vsel %vm1897_vm7, %v2861_v40, %v2857_v47  ;;  %v2871_v60 = vrot.slane %v1533_v61, %v3543_v46 }
 0x24c   :  { %v2866_v18 = vrot.slane %v1532_v56, %v3549_v52  ;;  %v1173_v14 = vpop.xlane.xlu1 %1172 }
 0x24d   :  { %v1170_v63 = vpop.xlane.xlu0 %1169  ;;  %v1535_v8 = vadd.f32 %v3472_v38, %v1173_v14 }
 0x24e   :  { %v2867_v31 = vsel %vm1904_vm8, %v2866_v18, %v2862_v59  ;;  %v1534_v34 = vadd.f32 %v3472_v38, %v1170_v63 }
 0x24f   :  { %v2872_v22 = vsel %vm1911_vm9, %v2871_v60, %v2867_v31  ;;  %v2881_v29 = vrot.slane %v1535_v8, %v3561_v7 }
 0x250   :  { %v2876_v58 = vrot.slane %v1534_v34, %v3567_v11  ;;  %v1179_v0 = vpop.xlane.xlu1 %1178 }
 0x251   :  { %v1176_v1 = vpop.xlane.xlu0 %1175  ;;  %v1537_v9 = vadd.f32 %v3472_v38, %v1179_v0 }
 0x252   :  { %v2877_v36 = vsel %vm4809_vm0, %v2876_v58, %v2872_v22  ;;  %v1536_v45 = vadd.f32 %v3472_v38, %v1176_v1 }
 0x253   :  { %v2882_v20 = vsel %vm4807_vm10, %v2881_v29, %v2877_v36  ;;  %v2891_v12 = vrot.slane %v1537_v9, %v3579_v27 }
 0x254   :  { %v2886_v13 = vrot.slane %v1536_v45, %v3585_v32  ;;  %v1185_v16 = vpop.xlane.xlu1 %1184 }
 0x255   :  { %v1182_v35 = vpop.xlane.xlu0 %1181  ;;  %v1539_v17 = vadd.f32 %v3472_v38, %v1185_v16 }
 0x256   :  { %v2887_v2 = vsel %vm1932_vm12, %v2886_v13, %v2882_v20  ;;  %v1538_v21 = vadd.f32 %v3472_v38, %v1182_v35 }
 0x257   :  { %v2892_v19 = vsel %vm1939_vm13, %v2891_v12, %v2887_v2  ;;  %v2901_v43 = vrot.slane %v1539_v17, %v3597_v48 }
 0x258   :  { %v2896_v23 = vrot.slane %v1538_v21, %v3602_v55  ;;  %v1191_v30 = vpop.xlane.xlu1 %1190 }
 0x259   :  { %v1188_v28 = vpop.xlane.xlu0 %1187  ;;  %v1541_v26 = vadd.f32 %v3472_v38, %v1191_v30 }
 0x25a   :  { %v2897_v6 = vsel %vm1946_vm14, %v2896_v23, %v2892_v19  ;;  %v1540_v44 = vadd.f32 %v3472_v38, %v1188_v28 }
 0x25b   :  { %v2902_v15 = vsel %vm1953_vm15, %v2901_v43, %v2897_v6  ;;  %v2910_v33 = vrot.slane %v1541_v26, %v3491_v54 }
 0x25c   :  { %v2906_v62 = vrot.slane %v1540_v44, %v3482_v49  ;;  %v4610_v53 = vsel %vm4811_vm11, %v2902_v15, %v4557_v10  ;;  %v1236_v51 = vpop.xlane.xlu1 %1235 }
 0x25d   :  { %v1194_v37 = vpop.xlane.xlu0 %1193  ;;  %v1556_v41 = vadd.f32 %v3472_v38, %v1236_v51 }
 0x25e   :  { %v2911_v39 = vsel %vm1855_vm1, %v2910_v33, %v2906_v62  ;;  %v1542_v40 = vadd.f32 %v3472_v38, %v1194_v37 }
 0x25f   :  { %v2985_v10 = vrot.slane %v1556_v41, %v3482_v49 }
 0x260   :  { %v2915_v42 = vrot.slane %v1542_v40, %v3496_v57  ;;  %v1197_v3 = vpop.xlane.xlu1 %1196 }
 0x261   :  { %v1239_v47 = vpop.xlane.xlu0 %1238  ;;  %v1543_v56 = vadd.f32 %v3472_v38, %v1197_v3 }
 0x262   :  { %v2916_v61 = vsel %vm1862_vm2, %v2915_v42, %v2911_v39  ;;  %v1557_v59 = vadd.f32 %v3472_v38, %v1239_v47 }
 0x263   :  { %v2920_v60 = vrot.slane %v1543_v56, %v3485_v50 }
 0x264   :  { %v2989_v18 = vrot.slane %v1557_v59, %v3491_v54  ;;  %v1284_v14 = vpop.xlane.xlu1 %1283 }
 0x265   :  { %v1242_v63 = vpop.xlane.xlu0 %1241  ;;  %v2921_v31 = vsel %vm1869_vm3, %v2920_v60, %v2916_v61  ;;  %v1572_v37 = vadd.f32 %v3472_v38, %v1284_v14 }
 0x266   :  { %v2990_v8 = vsel %vm1855_vm1, %v2989_v18, %v2985_v10  ;;  %v1558_v34 = vadd.f32 %v3472_v38, %v1242_v63 }
 0x267   :  { %v3064_v60 = vrot.slane %v1572_v37, %v3482_v49 }
 0x268   :  { %v2994_v22 = vrot.slane %v1558_v34, %v3496_v57  ;;  %v1200_v29 = vpop.xlane.xlu1 %1199 }
 0x269   :  { %v1287_v58 = vpop.xlane.xlu0 %1286  ;;  %v1544_v62 = vadd.f32 %v3472_v38, %v1200_v29 }
 0x26a   :  { %v2995_v0 = vsel %vm1862_vm2, %v2994_v22, %v2990_v8  ;;  %v1573_v51 = vadd.f32 %v3472_v38, %v1287_v58 }
 0x26b   :  { %v2925_v3 = vrot.slane %v1544_v62, %v3507_v5 }
 0x26c   :  { %v1290_v1 = vpop.xlane.xlu1 %1289  ;;  %v3068_v47 = vrot.slane %v1573_v51, %v3491_v54 }
 0x26d   :  { %v1245_v36 = vpop.xlane.xlu0 %1244  ;;  %v1574_v39 = vadd.f32 %v3472_v38, %v1290_v1  ;;  %v2926_v29 = vsel %vm1876_vm4, %v2925_v3, %v2921_v31 }
 0x26e   :  { %v1559_v40 = vadd.f32 %v3472_v38, %v1245_v36  ;;  %v3069_v58 = vsel %vm1855_vm1, %v3068_v47, %v3064_v60  ;;  %vm4812_vm1 = vmmov %vm4809_vm0 }
 0x26f   :  { %v3073_v18 = vrot.slane %v1574_v39, %v3496_v57 }
 0x270   :  { %v1248_v9 = vpop.xlane.xlu1 %1247  ;;  %v2999_v8 = vrot.slane %v1559_v40, %v3485_v50 }
 0x271   :  { %v1203_v45 = vpop.xlane.xlu0 %1202  ;;  %v1560_v56 = vadd.f32 %v3472_v38, %v1248_v9 }
 0x272   :  { %v1545_v61 = vadd.f32 %v3472_v38, %v1203_v45 }
 0x273   :  { %v3004_v57 = vrot.slane %v1560_v56, %v3507_v5 }
 0x274   :  { %v1206_v20 = vpop.xlane.xlu1 %1205  ;;  %v2930_v1 = vrot.slane %v1545_v61, %v3504_v4 }
 0x275   :  { %v1293_v12 = vpop.xlane.xlu0 %1292  ;;  %v1546_v59 = vadd.f32 %v3472_v38, %v1206_v20  ;;  %v3074_v20 = vsel %vm1862_vm2, %v3073_v18, %v3069_v58  ;;  %vm4813_vm2 = vmmov %vm4807_vm10 }
 0x276   :  { %v1575_v10 = vadd.f32 %v3472_v38, %v1293_v12 }
 0x277   :  { %v2935_v36 = vrot.slane %v1546_v59, %v3527_v25 }
 0x278   :  { %v1296_v13 = vpop.xlane.xlu1 %1295  ;;  %v3078_v9 = vrot.slane %v1575_v10, %v3485_v50 }
 0x279   :  { %v1251_v16 = vpop.xlane.xlu0 %1250  ;;  %v1576_v14 = vadd.f32 %v3472_v38, %v1296_v13 }
 0x27a   :  { %v1561_v63 = vadd.f32 %v3472_v38, %v1251_v16  ;;  %v3000_v16 = vsel %vm1869_vm3, %v2999_v8, %v2995_v0  ;;  %v3079_v40 = vsel %vm1869_vm3, %v3078_v9, %v3074_v20  ;;  %vm4814_vm3 = vmmov %vm4809_vm0 }
 0x27b   :  { %v3083_v12 = vrot.slane %v1576_v14, %v3507_v5 }
 0x27c   :  { %v1254_v35 = vpop.xlane.xlu1 %1253  ;;  %v3009_v31 = vrot.slane %v1561_v63, %v3504_v4 }
 0x27d   :  { %v1209_v2 = vpop.xlane.xlu0 %1208  ;;  %v1562_v54 = vadd.f32 %v3472_v38, %v1254_v35 }
 0x27e   :  { %v1547_v49 = vadd.f32 %v3472_v38, %v1209_v2 }
 0x27f   :  { %v3014_v35 = vrot.slane %v1562_v54, %v3527_v25 }
 0x280   :  { %v1212_v17 = vpop.xlane.xlu1 %1211  ;;  %v2940_v37 = vrot.slane %v1547_v49, %v3524_v24 }
 0x281   :  { %v1299_v21 = vpop.xlane.xlu0 %1298  ;;  %v1548_v45 = vadd.f32 %v3472_v38, %v1212_v17  ;;  %v2931_v17 = vsel %vm1883_vm5, %v2930_v1, %v2926_v29 }
 0x282   :  { %v1577_v13 = vadd.f32 %v3472_v38, %v1299_v21  ;;  %v3005_v21 = vsel %vm1876_vm4, %v3004_v57, %v3000_v16  ;;  %v2936_v0 = vsel %vm1890_vm6, %v2935_v36, %v2931_v17 }
 0x283   :  { %v3010_v3 = vsel %vm1883_vm5, %v3009_v31, %v3005_v21  ;;  %v2941_v18 = vsel %vm1897_vm7, %v2940_v37, %v2936_v0 }
 0x284   :  { %v1302_v19 = vpop.xlane.xlu1 %1301  ;;  %v3088_v47 = vrot.slane %v1577_v13, %v3504_v4 }
 0x285   :  { %v1257_v43 = vpop.xlane.xlu0 %1256  ;;  %v1578_v2 = vadd.f32 %v3472_v38, %v1302_v19  ;;  %v2945_v19 = vrot.slane %v1548_v45, %v3549_v52 }
 0x286   :  { %v1563_v62 = vadd.f32 %v3472_v38, %v1257_v43  ;;  %v3084_v43 = vsel %vm1876_vm4, %v3083_v12, %v3079_v40  ;;  %vm4815_vm4 = vmmov %vm4813_vm2 }
 0x287   :  { %v3089_v54 = vsel %vm1883_vm5, %v3088_v47, %v3084_v43  ;;  %vm4816_vm5 = vcmask 1045509  }
 0x288   :  { %v1260_v23 = vpop.xlane.xlu1 %1259  ;;  %v3019_v56 = vrot.slane %v1563_v62, %v3524_v24 }
 0x289   :  { %v1215_v30 = vpop.xlane.xlu0 %1214  ;;  %v1564_v5 = vadd.f32 %v3472_v38, %v1260_v23  ;;  %v3015_v23 = vsel %vm1890_vm6, %v3014_v35, %v3010_v3 }
 0x28a   :  { %v1549_v39 = vadd.f32 %v3472_v38, %v1215_v30  ;;  %v3093_v30 = vrot.slane %v1578_v2, %v3527_v25  ;;  %v3020_v49 = vsel %vm1897_vm7, %v3019_v56, %v3015_v23 }
 0x28b   :  { %v3024_v14 = vrot.slane %v1564_v5, %v3549_v52 }
 0x28c   :  { %v1218_v28 = vpop.xlane.xlu1 %1217  ;;  %v2950_v63 = vrot.slane %v1549_v39, %v3543_v46 }
 0x28d   :  { %v4627_v6 = vpop.xlane.xlu0 %1304  ;;  %v1550_v61 = vadd.f32 %v3472_v38, %v1218_v28  ;;  %v2946_v28 = vsel %vm1904_vm8, %v2945_v19, %v2941_v18 }
 0x28e   :  { %v1579_v8 = vadd.f32 %v3472_v38, %v4627_v6  ;;  %v2951_v9 = vsel %vm1911_vm9, %v2950_v63, %v2946_v28 }
 0x28f   :  { %v2955_v29 = vrot.slane %v1550_v61, %v3567_v11 }
 0x290   :  { %v4629_v26 = vpop.xlane.xlu1 %1307  ;;  %v3098_v20 = vrot.slane %v1579_v8, %v3524_v24 }
 0x291   :  { %v1263_v44 = vpop.xlane.xlu0 %1262  ;;  %v1580_v58 = vadd.f32 %v3472_v38, %v4629_v26  ;;  %v2956_v16 = vsel %vm4812_vm1, %v2955_v29, %v2951_v9 }
 0x292   :  { %v1565_v59 = vadd.f32 %v3472_v38, %v1263_v44 }
 0x293   :  { %v3103_v35 = vrot.slane %v1580_v58, %v3549_v52 }
 0x294   :  { %v4631_v15 = vpop.xlane.xlu1 %1265  ;;  %v3029_v6 = vrot.slane %v1565_v59, %v3543_v46 }
 0x295   :  { %v1221_v33 = vpop.xlane.xlu0 %1220  ;;  %v1566_v25 = vadd.f32 %v3472_v38, %v4631_v15 }
 0x296   :  { %v1551_v4 = vadd.f32 %v3472_v38, %v1221_v33  ;;  %v3094_v33 = vsel %vm1890_vm6, %v3093_v30, %v3089_v54  ;;  %vm4817_vm6 = vmmov %vm4809_vm0 }
 0x297   :  { %v3034_v12 = vrot.slane %v1566_v25, %v3567_v11 }
 0x298   :  { %v1224_v41 = vpop.xlane.xlu1 %1223  ;;  %v2960_v45 = vrot.slane %v1551_v4, %v3561_v7  ;;  %v3099_v4 = vsel %vm1897_vm7, %v3098_v20, %v3094_v33  ;;  %vm4818_vm7 = vmmov %vm4813_vm2 }
 0x299   :  { %v4638_v42 = vpop.xlane.xlu0 %1310  ;;  %v1552_v44 = vadd.f32 %v3472_v38, %v1224_v41  ;;  %v3025_v41 = vsel %vm1904_vm8, %v3024_v14, %v3020_v49  ;;  %v3104_v8 = vsel %vm1904_vm8, %v3103_v35, %v3099_v4  ;;  %vm4819_vm8 = vcmask 1046534  }
 0x29a   :  { %v2961_v5 = vsel %vm4813_vm2, %v2960_v45, %v2956_v16 }
 0x29b   :  { %v2965_v31 = vrot.slane %v1552_v44, %v3585_v32 }
 0x29c   :  { %v4652_v34 = vpop.xlane.xlu1 %1313 }
 0x29d   :  { %v1269_v22 = vpop.xlane.xlu0 %1268  ;;  %v1582_v24 = vadd.f32 %v3472_v38, %v4652_v34  ;;  %v2966_v40 = vsel %vm1932_vm12, %v2965_v31, %v2961_v5 }
 0x29e   :  { %v1567_v26 = vadd.f32 %v3472_v38, %v1269_v22  ;;  %v1581_v22 = vadd.f32 %v3472_v38, %v4638_v42 }
 0x29f   :  { %v3113_v23 = vrot.slane %v1582_v24, %v3567_v11 }
 0x2a0   :  { %v1272_v51 = vpop.xlane.xlu1 %1271  ;;  %v3039_v52 = vrot.slane %v1567_v26, %v3561_v7  ;;  %v3108_v61 = vrot.slane %v1581_v22, %v3543_v46 }
 0x2a1   :  { %v1227_v50 = vpop.xlane.xlu0 %1226  ;;  %v1568_v13 = vadd.f32 %v3472_v38, %v1272_v51 }
 0x2a2   :  { %v1553_v1 = vadd.f32 %v3472_v38, %v1227_v50  ;;  %v3030_v50 = vsel %vm1911_vm9, %v3029_v6, %v3025_v41  ;;  %v3109_v29 = vsel %vm1911_vm9, %v3108_v61, %v3104_v8  ;;  %vm4820_vm9 = vcmask 1047559  }
 0x2a3   :  { %v3035_v0 = vsel %vm4814_vm3, %v3034_v12, %v3030_v50  ;;  %v3044_v42 = vrot.slane %v1568_v13, %v3585_v32 }
 0x2a4   :  { %v1230_v10 = vpop.xlane.xlu1 %1229  ;;  %v2970_v2 = vrot.slane %v1553_v1, %v3579_v27 }
 0x2a5   :  { %v1317_v60 = vpop.xlane.xlu0 %1316  ;;  %v1554_v57 = vadd.f32 %v3472_v38, %v1230_v10 }
 0x2a6   :  { %v1583_v34 = vadd.f32 %v3472_v38, %v1317_v60  ;;  %v2971_v19 = vsel %vm1939_vm13, %v2970_v2, %v2966_v40  ;;  %v3040_v60 = vsel %vm4815_vm4, %v3039_v52, %v3035_v0 }
 0x2a7   :  { %v2975_v17 = vrot.slane %v1554_v57, %v3602_v55  ;;  %v3045_v46 = vsel %vm1932_vm12, %v3044_v42, %v3040_v60 }
 0x2a8   :  { %v1320_v15 = vpop.xlane.xlu1 %1319  ;;  %v3118_v11 = vrot.slane %v1583_v34, %v3561_v7  ;;  %v3114_v7 = vsel %vm4817_vm6, %v3113_v23, %v3109_v29 }
 0x2a9   :  { %v1275_v36 = vpop.xlane.xlu0 %1274  ;;  %v1584_v43 = vadd.f32 %v3472_v38, %v1320_v15  ;;  %v2976_v30 = vsel %vm1946_vm14, %v2975_v17, %v2971_v19 }
 0x2aa   :  { %v1569_v62 = vadd.f32 %v3472_v38, %v1275_v36  ;;  %v3119_v57 = vsel %vm4818_vm7, %v3118_v11, %v3114_v7 }
 0x2ab   :  { %v3123_v25 = vrot.slane %v1584_v43, %v3585_v32 }
 0x2ac   :  { %v1278_v37 = vpop.xlane.xlu1 %1277  ;;  %v3049_v3 = vrot.slane %v1569_v62, %v3579_v27 }
 0x2ad   :  { %v1233_v51 = vpop.xlane.xlu0 %1232  ;;  %v1570_v39 = vadd.f32 %v3472_v38, %v1278_v37  ;;  %v3124_v36 = vsel %vm1932_vm12, %v3123_v25, %v3119_v57 }
 0x2ae   :  { %v1555_v21 = vadd.f32 %v3472_v38, %v1233_v51  ;;  %v3050_v44 = vsel %vm1939_vm13, %v3049_v3, %v3045_v46 }
 0x2af   :  { %v3054_v56 = vrot.slane %v1570_v39, %v3602_v55 }
 0x2b0   :  { %v2980_v47 = vrot.slane %v1555_v21, %v3597_v48  ;;  %v1281_v59 = vpop.xlane.xlu1 %1280 }
 0x2b1   :  { %v1323_v10 = vpop.xlane.xlu0 %1322  ;;  %v1571_v14 = vadd.f32 %v3472_v38, %v1281_v59  ;;  %v3055_v58 = vsel %vm1946_vm14, %v3054_v56, %v3050_v44 }
 0x2b2   :  { %v2981_v18 = vsel %vm1953_vm15, %v2980_v47, %v2976_v30  ;;  %v1585_v63 = vadd.f32 %v3472_v38, %v1323_v10 }
 0x2b3   :  { %v3158_v28 = vsel %vm4816_vm5, %v2981_v18, %v4610_v53  ;;  %v3059_v54 = vrot.slane %v1571_v14, %v3597_v48 }
 0x2b4   :  { %v3128_v1 = vrot.slane %v1585_v63, %v3579_v27  ;;  %v1329_v49 = vpop.xlane.xlu1 %1328 }
 0x2b5   :  { %v1326_v33 = vpop.xlane.xlu0 %1325  ;;  %v3060_v53 = vsel %vm1953_vm15, %v3059_v54, %v3055_v58  ;;  %v1587_v32 = vadd.f32 %v3472_v38, %v1329_v49 }
 0x2b6   :  { %v1586_v6 = vadd.f32 %v3472_v38, %v1326_v33  ;;  %v3159_v15 = vsel %vm4819_vm8, %v3060_v53, %v3158_v28  ;;  %v3129_v9 = vsel %vm1939_vm13, %v3128_v1, %v3124_v36 }
 0x2b7   :  { %v3138_v27 = vrot.slane %v1587_v32, %v3597_v48 }
 0x2b8   :  { %v3133_v41 = vrot.slane %v1586_v6, %v3602_v55 }
 0x2ba   :  { %v3134_v45 = vsel %vm1946_vm14, %v3133_v41, %v3129_v9 }
 0x2bb   :  { %v3139_v26 = vsel %vm1953_vm15, %v3138_v27, %v3134_v45 }
 0x2bc   :  { %v3160_v38 = vsel %vm4820_vm9, %v3139_v26, %v3159_v15 }
 0x2bd   :  { %3164 = vst [vmem:[#allocation8 + $0x8] sm:$0xff] %v3160_v38 }
 0x2be   :  { %3247 = shalt.err (!%p3244_p6)
}
 0x2bf   :  { %s3248_s16 = scalar_lea.hbm %s4786_s3, 256 }
 0x2c0   :  { %p3249_p7 = scmp.ne.s32.totalorder %s4786_s3, %s3248_s16  ;;  %p3252_p8 = scmp.lt.u32.totalorder %s3248_s16, %s4786_s3 }
 0x2c2   :  { %p3254_p9 = pnand %p3252_p8, %p3249_p7 }
 0x2c4   :  { %3257 = shalt.err (!%p3254_p9)
}
 0x2c5   :  { %3176 = dma.vmem_to_hbm [thread:$0]  %s3171_s12, 256, %s4786_s3, [#allocation5], %s3265_s22, %s3265_s22, %s3266_s23  }
 0x2c6   :  { %3262 = dma.done.wait [#allocation5], 256  }
 0x2c7   :  { %3263 = vsyncadd [#allocation5], 4294967040 }
 0x2c8   :  { %3180 = vsyncpa [#allocation4], 1 }
 0x2c9   :  { %3181 = vsyncpa [#allocation7], 1 }
 0x2ca   :  { %3182 = vsyncpa [#allocation5], 1 }

</bundles_post_ra>
